<compile_context>
chip_gen: v6e
topology: v6e:2x2x1
jax: 0.10.0
libtpu: 0.0.40
codegen_flags: <defaults>
</compile_context>

<pallas_src>
import functools

import jax
import jax.numpy as jnp
from jax import lax
from jax.experimental import pallas as pl
from jax.experimental.pallas import tpu as pltpu


def _round_up(x, m):
    return (x + m - 1) // m * m


def _lstm_chunk_kernel(xp_ref, whh_ref, out_ref, hn_ref, cn_ref,
                       h_scr, c_scr, *, seq_len, chunk, hp):
    """One grid step == `chunk` timesteps of the LSTM recurrence for one batch tile.

    xp_ref : (chunk, BC, 4*HP) bf16  precomputed x@W_ih^T + bias (gate-padded layout)
    whh_ref: (HP, 4*HP)        bf16  recurrent weights W_hh^T, resident across grid
    out_ref: (BC, chunk, HP)   f32   hidden states for this chunk, batch-major
    hn_ref, cn_ref: (BC, HP)   f32   final state (written on the last time chunk)
    h_scr, c_scr : (BC, HP)    f32   recurrent state, resident in VMEM scratch
    """
    t_blk = pl.program_id(1)

    @pl.when(t_blk == 0)
    def _():
        h_scr[...] = jnp.zeros_like(h_scr)
        c_scr[...] = jnp.zeros_like(c_scr)

    needs_mask = (seq_len % chunk) != 0   # static; only traced when time is padded

    h = h_scr[...]
    c = c_scr[...]
    h_bf = h.astype(whh_ref.dtype)

    # Fully unrolled time loop: `t` is a Python int, so the xp slices and the
    # batch-major output stores are all static.
    for t in range(chunk):
        def gate(k, hb=h_bf):
            # Per-gate (BC,HP)@(HP,HP) dot keeps the live set small at large BC.
            acc = jnp.dot(hb, whh_ref[:, k * hp:(k + 1) * hp],
                          preferred_element_type=jnp.float32)
            return acc + xp_ref[t, :, k * hp:(k + 1) * hp].astype(jnp.float32)

        # PyTorch gate order: input, forget, cell(g), output — each HP lanes wide.
        i_g = jax.nn.sigmoid(gate(0))
        f_g = jax.nn.sigmoid(gate(1))
        g_g = jnp.tanh(gate(2))
        o_g = jax.nn.sigmoid(gate(3))
        c_new = f_g * c + i_g * g_g
        h_new = o_g * jnp.tanh(c_new)
        if needs_mask:
            valid = (t_blk * chunk + t) < seq_len
            h_new = jnp.where(valid, h_new, h)
            c_new = jnp.where(valid, c_new, c)
        out_ref[:, t, :] = h_new
        h_bf = h_new.astype(whh_ref.dtype)   # bf16 operand for the next dot
        h, c = h_new, c_new

    h_scr[...] = h
    c_scr[...] = c

    @pl.when(t_blk == pl.num_programs(1) - 1)
    def _():
        hn_ref[...] = h
        cn_ref[...] = c


@jax.jit
def encoder_forward(token_ids, embedding, w_ih, w_hh, b_ih, b_hh):
    """token_ids: (B, T) int32. Returns (outputs (B,T,H), hidden (1,B,H), cell (1,B,H))."""
    B, T = token_ids.shape
    E = embedding.shape[1]
    H = w_hh.shape[1]
    f32 = jnp.float32

    HP = _round_up(H, 128)              # per-gate lane padding

    # --- tile sizes: batch tile (multiple of 8, up to 128), time chunk (T or 32) ---
    BC = min(_round_up(B, 8), 128)
    TC = T if T <= 32 else 32

    def ws_bytes(bc, tc):
        xp = tc * bc * 4 * HP * 2       # bf16 x_proj block
        out = bc * tc * HP * 4          # f32 output block
        whh = HP * 4 * HP * 2           # bf16 recurrent weights
        state = 2 * bc * HP * 4         # hn + cn blocks
        scratch = 2 * bc * HP * 4       # h/c scratch
        return 2 * (xp + out + whh + state) + scratch   # x2 ~ double buffering

    VMEM_BUDGET = 40 * 1024 * 1024      # conservative: fits v7x (64 MiB physical)
    while BC > 8 and ws_bytes(BC, TC) > VMEM_BUDGET:
        BC = max(8, _round_up(BC // 2, 8))
    while T > 32 and TC > 8 and ws_bytes(BC, TC) > VMEM_BUDGET:
        TC //= 2

    BP = _round_up(B, BC)
    TP = _round_up(T, TC)
    nb = BP // BC
    nt = TP // TC

    # --- weights / bias pre-padded into the gate-padded layout (pad the small
    #     weights once, not the (T,B,4H) activation tensor) ---
    w_ih_g = jnp.pad(w_ih.astype(f32).reshape(4, H, E), ((0, 0), (0, HP - H), (0, 0)))
    w_ih_p = jnp.transpose(w_ih_g, (2, 0, 1)).reshape(E, 4 * HP)        # (E, 4*HP)
    bias_p = jnp.pad((b_ih + b_hh).astype(f32).reshape(4, H),
                     ((0, 0), (0, HP - H))).reshape(4 * HP)             # (4*HP,)
    w_hh_g = jnp.pad(w_hh.astype(f32).reshape(4, H, H),
                     ((0, 0), (0, HP - H), (0, HP - H)))                # (4, HP, HP)
    whh_t = jnp.transpose(w_hh_g, (2, 0, 1)).reshape(HP, 4 * HP).astype(jnp.bfloat16)

    # --- embedding gather, time-major; pad via the tiny id tensor (id 0 is valid) ---
    ids_tb = jnp.pad(token_ids.T, ((0, TP - T), (0, BP - B)))           # (TP, BP)
    emb = jnp.take(embedding.astype(f32), ids_tb, axis=0)              # (TP, BP, E)

    # --- hoisted input projection: one big MXU matmul, already gate-padded; bf16 ---
    xp = (emb.reshape(TP * BP, E) @ w_ih_p + bias_p).reshape(TP, BP, 4 * HP)
    xp = xp.astype(jnp.bfloat16)

    kernel = functools.partial(_lstm_chunk_kernel, seq_len=T, chunk=TC, hp=HP)

    grid_spec = pltpu.PrefetchScalarGridSpec(
        num_scalar_prefetch=0,
        grid=(nb, nt),
        in_specs=[
            pl.BlockSpec((TC, BC, 4 * HP), lambda b, t: (t, b, 0)),     # x_proj chunk
            pl.BlockSpec((HP, 4 * HP), lambda b, t: (0, 0)),            # W_hh^T (resident)
        ],
        out_specs=[
            pl.BlockSpec((BC, TC, HP), lambda b, t: (b, t, 0)),         # outputs (batch-major)
            pl.BlockSpec((BC, HP), lambda b, t: (b, 0)),                # h_n
            pl.BlockSpec((BC, HP), lambda b, t: (b, 0)),                # c_n
        ],
        scratch_shapes=[
            pltpu.VMEM((BC, HP), jnp.float32),                          # h state
            pltpu.VMEM((BC, HP), jnp.float32),                          # c state
        ],
    )

    out_bth, h_n, c_n = pl.pallas_call(
        kernel,
        out_shape=(
            jax.ShapeDtypeStruct((BP, TP, HP), jnp.float32),
            jax.ShapeDtypeStruct((BP, HP), jnp.float32),
            jax.ShapeDtypeStruct((BP, HP), jnp.float32),
        ),
        grid_spec=grid_spec,
        compiler_params=pltpu.CompilerParams(
            # batch tiles are independent (v7x 2-TC sharding); time is sequential.
            dimension_semantics=("parallel", "arbitrary"),
            vmem_limit_bytes=48 * 1024 * 1024,
        ),
    )(xp, whh_t)

    outputs = out_bth[:B, :T, :H]            # (B, T, H), already batch-first
    hidden = h_n[:B, :H][None]               # (1, B, H)
    cell = c_n[:B, :H][None]                 # (1, B, H)
    return outputs, hidden, cell


def _reference_encoder(token_ids, embedding, w_ih, w_hh, b_ih, b_hh):
    """Pure-JAX f32 reference (PyTorch LSTM semantics) for correctness checking."""
    emb = jnp.take(embedding, token_ids, axis=0)                  # (B, T, E)
    B, T, _ = emb.shape
    H = w_hh.shape[1]
    bias = b_ih + b_hh

    def step(carry, x_t):
        h, c = carry
        gates = x_t @ w_ih.T + h @ w_hh.T + bias
        i = jax.nn.sigmoid(gates[:, 0 * H:1 * H])
        f = jax.nn.sigmoid(gates[:, 1 * H:2 * H])
        g = jnp.tanh(gates[:, 2 * H:3 * H])
        o = jax.nn.sigmoid(gates[:, 3 * H:4 * H])
        c = f * c + i * g
        h = o * jnp.tanh(c)
        return (h, c), h

    init = (jnp.zeros((B, H), jnp.float32), jnp.zeros((B, H), jnp.float32))
    (h_n, c_n), hs = lax.scan(step, init, jnp.transpose(emb, (1, 0, 2)))
    return jnp.transpose(hs, (1, 0, 2)), h_n[None], c_n[None]


if __name__ == "__main__":
    # Small, PyTorch-consistent sizes: vocab=32, embed=32, hidden=32, batch=2, seq=8.
    VOCAB, E, H = 32, 32, 32
    B, T = 2, 8

    key = jax.random.PRNGKey(0)
    k_emb, k_wih, k_whh, k_bih, k_bhh, k_ids = jax.random.split(key, 6)

    bound = 1.0 / jnp.sqrt(jnp.float32(H))
    embedding = jax.random.normal(k_emb, (VOCAB, E), dtype=jnp.float32)
    w_ih = jax.random.uniform(k_wih, (4 * H, E), minval=-bound, maxval=bound, dtype=jnp.float32)
    w_hh = jax.random.uniform(k_whh, (4 * H, H), minval=-bound, maxval=bound, dtype=jnp.float32)
    b_ih = jax.random.uniform(k_bih, (4 * H,), minval=-bound, maxval=bound, dtype=jnp.float32)
    b_hh = jax.random.uniform(k_bhh, (4 * H,), minval=-bound, maxval=bound, dtype=jnp.float32)

    token_ids = jax.random.randint(k_ids, (B, T), 0, VOCAB, dtype=jnp.int32)

    outputs, hidden, cell = encoder_forward(token_ids, embedding, w_ih, w_hh, b_ih, b_hh)
    jax.block_until_ready((outputs, hidden, cell))

    assert outputs.shape == (B, T, H)
    assert hidden.shape == (1, B, H)
    assert cell.shape == (1, B, H)
    # Last-timestep output must equal the returned hidden state (exact: same values).
    assert jnp.allclose(outputs[:, -1, :], hidden[0], atol=1e-6)

    # Numerical check vs pure-f32 JAX reference (loose tol: W_hh / x_proj are bf16).
    ref_out, ref_h, ref_c = _reference_encoder(token_ids, embedding, w_ih, w_hh, b_ih, b_hh)
    assert jnp.allclose(outputs, ref_out, atol=5e-2)
    assert jnp.allclose(hidden, ref_h, atol=5e-2)
    assert jnp.allclose(cell, ref_c, atol=5e-2)

    print("KERNEL_OK")
</pallas_src>

<mosaic_0001>
module attributes {stable_mosaic.version = 11 : i64} {
  func.func @_lstm_chunk_kernel(%arg0: i32, %arg1: i32, %arg2: memref<8x8x512xbf16, #tpu.memory_space<vmem>>, %arg3: memref<128x512xbf16, #tpu.memory_space<vmem>>, %arg4: memref<8x8x128xf32, #tpu.memory_space<vmem>>, %arg5: memref<8x128xf32, #tpu.memory_space<vmem>>, %arg6: memref<8x128xf32, #tpu.memory_space<vmem>>, %arg7: memref<8x128xf32, #tpu.memory_space<vmem>>, %arg8: memref<8x128xf32, #tpu.memory_space<vmem>>) attributes {dimension_semantics = [#tpu.dimension_semantics<parallel>, #tpu.dimension_semantics<arbitrary>], iteration_bounds = array<i64: 1, 1>, scalar_prefetch = 0 : i64, scratch_operands = 2 : i64, tpu.core_type = #tpu.core_type<tc>, window_params = [{transform_indices = @transform_0, window_bounds = array<i64: 8, 8, 512>}, {pipeline_mode = #tpu.pipeline_mode<synchronous>, transform_indices = @transform_1, window_bounds = array<i64: 128, 512>}, {transform_indices = @transform_2, window_bounds = array<i64: 8, 8, 128>}, {transform_indices = @transform_3, window_bounds = array<i64: 8, 128>}, {transform_indices = @transform_4, window_bounds = array<i64: 8, 128>}]} {
    %c0_i32 = arith.constant 0 : i32
    %0 = arith.cmpi eq, %arg1, %c0_i32 : i32
    %1 = arith.extui %0 : i1 to i32
    %c0_i32_0 = arith.constant 0 : i32
    %2 = arith.cmpi ne, %1, %c0_i32_0 : i32
    scf.if %2 {
      %cst_239 = arith.constant 0.000000e+00 : f32
      %402 = vector.broadcast %cst_239 : f32 to vector<8x128xf32>
      %c0_240 = arith.constant 0 : index
      %c0_241 = arith.constant 0 : index
      %403 = vector.load %arg7[%c0_240, %c0_241] : memref<8x128xf32, #tpu.memory_space<vmem>>, vector<8x128xf32>
      tpu.vector_store %arg7[%c0_240, %c0_241], %402 {strides = array<i32>} : memref<8x128xf32, #tpu.memory_space<vmem>>, vector<8x128xf32>,
      %cst_242 = arith.constant 0.000000e+00 : f32
      %404 = vector.broadcast %cst_242 : f32 to vector<8x128xf32>
      %c0_243 = arith.constant 0 : index
      %c0_244 = arith.constant 0 : index
      %405 = vector.load %arg8[%c0_243, %c0_244] : memref<8x128xf32, #tpu.memory_space<vmem>>, vector<8x128xf32>
      tpu.vector_store %arg8[%c0_243, %c0_244], %404 {strides = array<i32>} : memref<8x128xf32, #tpu.memory_space<vmem>>, vector<8x128xf32>,
    } else {
    }
    %c0 = arith.constant 0 : index
    %c0_1 = arith.constant 0 : index
    %3 = vector.load %arg7[%c0, %c0_1] : memref<8x128xf32, #tpu.memory_space<vmem>>, vector<8x128xf32>
    %c0_2 = arith.constant 0 : index
    %c0_3 = arith.constant 0 : index
    %4 = vector.load %arg8[%c0_2, %c0_3] : memref<8x128xf32, #tpu.memory_space<vmem>>, vector<8x128xf32>
    %5 = arith.truncf %3 : vector<8x128xf32> to vector<8x128xbf16>
    %c0_4 = arith.constant 0 : index
    %c0_5 = arith.constant 0 : index
    %6 = vector.load %arg3[%c0_4, %c0_5] : memref<128x512xbf16, #tpu.memory_space<vmem>>, vector<128x128xbf16>
    %cst = arith.constant dense<0.000000e+00> : vector<8x128xf32>
    %7 = tpu.matmul %5, %6, %cst {dimension_numbers = #tpu.dot_dimension_numbers<[1], [0], [0], [1], [0, 0, 1, 1], [], []>} : vector<8x128xbf16>, vector<128x128xbf16>, vector<8x128xf32> -> vector<8x128xf32>
    %c0_6 = arith.constant 0 : index
    %c0_7 = arith.constant 0 : index
    %c0_8 = arith.constant 0 : index
    %8 = vector.load %arg2[%c0_6, %c0_7, %c0_8] : memref<8x8x512xbf16, #tpu.memory_space<vmem>>, vector<1x8x128xbf16>
    %9 = vector.shape_cast %8 : vector<1x8x128xbf16> to vector<8x128xbf16>
    %10 = arith.extf %9 : vector<8x128xbf16> to vector<8x128xf32>
    %11 = arith.addf %7, %10 : vector<8x128xf32>
    %12 = arith.negf %11 : vector<8x128xf32>
    %13 = math.exp %12 : vector<8x128xf32>
    %cst_9 = arith.constant 1.000000e+00 : f32
    %14 = vector.broadcast %cst_9 : f32 to vector<8x128xf32>
    %15 = arith.addf %14, %13 : vector<8x128xf32>
    %16 = arith.divf %14, %15 : vector<8x128xf32>
    %c0_10 = arith.constant 0 : index
    %c128 = arith.constant 128 : index
    %17 = vector.load %arg3[%c0_10, %c128] : memref<128x512xbf16, #tpu.memory_space<vmem>>, vector<128x128xbf16>
    %cst_11 = arith.constant dense<0.000000e+00> : vector<8x128xf32>
    %18 = tpu.matmul %5, %17, %cst_11 {dimension_numbers = #tpu.dot_dimension_numbers<[1], [0], [0], [1], [0, 0, 1, 1], [], []>} : vector<8x128xbf16>, vector<128x128xbf16>, vector<8x128xf32> -> vector<8x128xf32>
    %c0_12 = arith.constant 0 : index
    %c0_13 = arith.constant 0 : index
    %c128_14 = arith.constant 128 : index
    %19 = vector.load %arg2[%c0_12, %c0_13, %c128_14] : memref<8x8x512xbf16, #tpu.memory_space<vmem>>, vector<1x8x128xbf16>
    %20 = vector.shape_cast %19 : vector<1x8x128xbf16> to vector<8x128xbf16>
    %21 = arith.extf %20 : vector<8x128xbf16> to vector<8x128xf32>
    %22 = arith.addf %18, %21 : vector<8x128xf32>
    %23 = arith.negf %22 : vector<8x128xf32>
    %24 = math.exp %23 : vector<8x128xf32>
    %cst_15 = arith.constant 1.000000e+00 : f32
    %25 = vector.broadcast %cst_15 : f32 to vector<8x128xf32>
    %26 = arith.addf %25, %24 : vector<8x128xf32>
    %27 = arith.divf %25, %26 : vector<8x128xf32>
    %c0_16 = arith.constant 0 : index
    %c256 = arith.constant 256 : index
    %28 = vector.load %arg3[%c0_16, %c256] : memref<128x512xbf16, #tpu.memory_space<vmem>>, vector<128x128xbf16>
    %cst_17 = arith.constant dense<0.000000e+00> : vector<8x128xf32>
    %29 = tpu.matmul %5, %28, %cst_17 {dimension_numbers = #tpu.dot_dimension_numbers<[1], [0], [0], [1], [0, 0, 1, 1], [], []>} : vector<8x128xbf16>, vector<128x128xbf16>, vector<8x128xf32> -> vector<8x128xf32>
    %c0_18 = arith.constant 0 : index
    %c0_19 = arith.constant 0 : index
    %c256_20 = arith.constant 256 : index
    %30 = vector.load %arg2[%c0_18, %c0_19, %c256_20] : memref<8x8x512xbf16, #tpu.memory_space<vmem>>, vector<1x8x128xbf16>
    %31 = vector.shape_cast %30 : vector<1x8x128xbf16> to vector<8x128xbf16>
    %32 = arith.extf %31 : vector<8x128xbf16> to vector<8x128xf32>
    %33 = arith.addf %29, %32 : vector<8x128xf32>
    %34 = math.tanh %33 : vector<8x128xf32>
    %c0_21 = arith.constant 0 : index
    %c384 = arith.constant 384 : index
    %35 = vector.load %arg3[%c0_21, %c384] : memref<128x512xbf16, #tpu.memory_space<vmem>>, vector<128x128xbf16>
    %cst_22 = arith.constant dense<0.000000e+00> : vector<8x128xf32>
    %36 = tpu.matmul %5, %35, %cst_22 {dimension_numbers = #tpu.dot_dimension_numbers<[1], [0], [0], [1], [0, 0, 1, 1], [], []>} : vector<8x128xbf16>, vector<128x128xbf16>, vector<8x128xf32> -> vector<8x128xf32>
    %c0_23 = arith.constant 0 : index
    %c0_24 = arith.constant 0 : index
    %c384_25 = arith.constant 384 : index
    %37 = vector.load %arg2[%c0_23, %c0_24, %c384_25] : memref<8x8x512xbf16, #tpu.memory_space<vmem>>, vector<1x8x128xbf16>
    %38 = vector.shape_cast %37 : vector<1x8x128xbf16> to vector<8x128xbf16>
    %39 = arith.extf %38 : vector<8x128xbf16> to vector<8x128xf32>
    %40 = arith.addf %36, %39 : vector<8x128xf32>
    %41 = arith.negf %40 : vector<8x128xf32>
    %42 = math.exp %41 : vector<8x128xf32>
    %cst_26 = arith.constant 1.000000e+00 : f32
    %43 = vector.broadcast %cst_26 : f32 to vector<8x128xf32>
    %44 = arith.addf %43, %42 : vector<8x128xf32>
    %45 = arith.divf %43, %44 : vector<8x128xf32>
    %46 = arith.mulf %27, %4 : vector<8x128xf32>
    %47 = arith.mulf %16, %34 : vector<8x128xf32>
    %48 = arith.addf %46, %47 : vector<8x128xf32>
    %49 = math.tanh %48 : vector<8x128xf32>
    %50 = arith.mulf %45, %49 : vector<8x128xf32>
    %c0_27 = arith.constant 0 : index
    %c0_28 = arith.constant 0 : index
    %c0_29 = arith.constant 0 : index
    %51 = vector.load %arg4[%c0_27, %c0_28, %c0_29] : memref<8x8x128xf32, #tpu.memory_space<vmem>>, vector<8x1x128xf32>
    %52 = vector.shape_cast %51 : vector<8x1x128xf32> to vector<8x128xf32>
    %53 = vector.shape_cast %50 : vector<8x128xf32> to vector<8x1x128xf32>
    tpu.vector_store %arg4[%c0_27, %c0_28, %c0_29], %53 {strides = array<i32>} : memref<8x8x128xf32, #tpu.memory_space<vmem>>, vector<8x1x128xf32>,
    %54 = arith.truncf %50 : vector<8x128xf32> to vector<8x128xbf16>
    %c0_30 = arith.constant 0 : index
    %c0_31 = arith.constant 0 : index
    %55 = vector.load %arg3[%c0_30, %c0_31] : memref<128x512xbf16, #tpu.memory_space<vmem>>, vector<128x128xbf16>
    %cst_32 = arith.constant dense<0.000000e+00> : vector<8x128xf32>
    %56 = tpu.matmul %54, %55, %cst_32 {dimension_numbers = #tpu.dot_dimension_numbers<[1], [0], [0], [1], [0, 0, 1, 1], [], []>} : vector<8x128xbf16>, vector<128x128xbf16>, vector<8x128xf32> -> vector<8x128xf32>
    %c1 = arith.constant 1 : index
    %c0_33 = arith.constant 0 : index
    %c0_34 = arith.constant 0 : index
    %57 = vector.load %arg2[%c1, %c0_33, %c0_34] : memref<8x8x512xbf16, #tpu.memory_space<vmem>>, vector<1x8x128xbf16>
    %58 = vector.shape_cast %57 : vector<1x8x128xbf16> to vector<8x128xbf16>
    %59 = arith.extf %58 : vector<8x128xbf16> to vector<8x128xf32>
    %60 = arith.addf %56, %59 : vector<8x128xf32>
    %61 = arith.negf %60 : vector<8x128xf32>
    %62 = math.exp %61 : vector<8x128xf32>
    %cst_35 = arith.constant 1.000000e+00 : f32
    %63 = vector.broadcast %cst_35 : f32 to vector<8x128xf32>
    %64 = arith.addf %63, %62 : vector<8x128xf32>
    %65 = arith.divf %63, %64 : vector<8x128xf32>
    %c0_36 = arith.constant 0 : index
    %c128_37 = arith.constant 128 : index
    %66 = vector.load %arg3[%c0_36, %c128_37] : memref<128x512xbf16, #tpu.memory_space<vmem>>, vector<128x128xbf16>
    %cst_38 = arith.constant dense<0.000000e+00> : vector<8x128xf32>
    %67 = tpu.matmul %54, %66, %cst_38 {dimension_numbers = #tpu.dot_dimension_numbers<[1], [0], [0], [1], [0, 0, 1, 1], [], []>} : vector<8x128xbf16>, vector<128x128xbf16>, vector<8x128xf32> -> vector<8x128xf32>
    %c1_39 = arith.constant 1 : index
    %c0_40 = arith.constant 0 : index
    %c128_41 = arith.constant 128 : index
    %68 = vector.load %arg2[%c1_39, %c0_40, %c128_41] : memref<8x8x512xbf16, #tpu.memory_space<vmem>>, vector<1x8x128xbf16>
    %69 = vector.shape_cast %68 : vector<1x8x128xbf16> to vector<8x128xbf16>
    %70 = arith.extf %69 : vector<8x128xbf16> to vector<8x128xf32>
    %71 = arith.addf %67, %70 : vector<8x128xf32>
    %72 = arith.negf %71 : vector<8x128xf32>
    %73 = math.exp %72 : vector<8x128xf32>
    %cst_42 = arith.constant 1.000000e+00 : f32
    %74 = vector.broadcast %cst_42 : f32 to vector<8x128xf32>
    %75 = arith.addf %74, %73 : vector<8x128xf32>
    %76 = arith.divf %74, %75 : vector<8x128xf32>
    %c0_43 = arith.constant 0 : index
    %c256_44 = arith.constant 256 : index
    %77 = vector.load %arg3[%c0_43, %c256_44] : memref<128x512xbf16, #tpu.memory_space<vmem>>, vector<128x128xbf16>
    %cst_45 = arith.constant dense<0.000000e+00> : vector<8x128xf32>
    %78 = tpu.matmul %54, %77, %cst_45 {dimension_numbers = #tpu.dot_dimension_numbers<[1], [0], [0], [1], [0, 0, 1, 1], [], []>} : vector<8x128xbf16>, vector<128x128xbf16>, vector<8x128xf32> -> vector<8x128xf32>
    %c1_46 = arith.constant 1 : index
    %c0_47 = arith.constant 0 : index
    %c256_48 = arith.constant 256 : index
    %79 = vector.load %arg2[%c1_46, %c0_47, %c256_48] : memref<8x8x512xbf16, #tpu.memory_space<vmem>>, vector<1x8x128xbf16>
    %80 = vector.shape_cast %79 : vector<1x8x128xbf16> to vector<8x128xbf16>
    %81 = arith.extf %80 : vector<8x128xbf16> to vector<8x128xf32>
    %82 = arith.addf %78, %81 : vector<8x128xf32>
    %83 = math.tanh %82 : vector<8x128xf32>
    %c0_49 = arith.constant 0 : index
    %c384_50 = arith.constant 384 : index
    %84 = vector.load %arg3[%c0_49, %c384_50] : memref<128x512xbf16, #tpu.memory_space<vmem>>, vector<128x128xbf16>
    %cst_51 = arith.constant dense<0.000000e+00> : vector<8x128xf32>
    %85 = tpu.matmul %54, %84, %cst_51 {dimension_numbers = #tpu.dot_dimension_numbers<[1], [0], [0], [1], [0, 0, 1, 1], [], []>} : vector<8x128xbf16>, vector<128x128xbf16>, vector<8x128xf32> -> vector<8x128xf32>
    %c1_52 = arith.constant 1 : index
    %c0_53 = arith.constant 0 : index
    %c384_54 = arith.constant 384 : index
    %86 = vector.load %arg2[%c1_52, %c0_53, %c384_54] : memref<8x8x512xbf16, #tpu.memory_space<vmem>>, vector<1x8x128xbf16>
    %87 = vector.shape_cast %86 : vector<1x8x128xbf16> to vector<8x128xbf16>
    %88 = arith.extf %87 : vector<8x128xbf16> to vector<8x128xf32>
    %89 = arith.addf %85, %88 : vector<8x128xf32>
    %90 = arith.negf %89 : vector<8x128xf32>
    %91 = math.exp %90 : vector<8x128xf32>
    %cst_55 = arith.constant 1.000000e+00 : f32
    %92 = vector.broadcast %cst_55 : f32 to vector<8x128xf32>
    %93 = arith.addf %92, %91 : vector<8x128xf32>
    %94 = arith.divf %92, %93 : vector<8x128xf32>
    %95 = arith.mulf %76, %48 : vector<8x128xf32>
    %96 = arith.mulf %65, %83 : vector<8x128xf32>
    %97 = arith.addf %95, %96 : vector<8x128xf32>
    %98 = math.tanh %97 : vector<8x128xf32>
    %99 = arith.mulf %94, %98 : vector<8x128xf32>
    %c0_56 = arith.constant 0 : index
    %c1_57 = arith.constant 1 : index
    %c0_58 = arith.constant 0 : index
    %100 = vector.load %arg4[%c0_56, %c1_57, %c0_58] : memref<8x8x128xf32, #tpu.memory_space<vmem>>, vector<8x1x128xf32>
    %101 = vector.shape_cast %100 : vector<8x1x128xf32> to vector<8x128xf32>
    %102 = vector.shape_cast %99 : vector<8x128xf32> to vector<8x1x128xf32>
    tpu.vector_store %arg4[%c0_56, %c1_57, %c0_58], %102 {strides = array<i32>} : memref<8x8x128xf32, #tpu.memory_space<vmem>>, vector<8x1x128xf32>,
    %103 = arith.truncf %99 : vector<8x128xf32> to vector<8x128xbf16>
    %c0_59 = arith.constant 0 : index
    %c0_60 = arith.constant 0 : index
    %104 = vector.load %arg3[%c0_59, %c0_60] : memref<128x512xbf16, #tpu.memory_space<vmem>>, vector<128x128xbf16>
    %cst_61 = arith.constant dense<0.000000e+00> : vector<8x128xf32>
    %105 = tpu.matmul %103, %104, %cst_61 {dimension_numbers = #tpu.dot_dimension_numbers<[1], [0], [0], [1], [0, 0, 1, 1], [], []>} : vector<8x128xbf16>, vector<128x128xbf16>, vector<8x128xf32> -> vector<8x128xf32>
    %c2 = arith.constant 2 : index
    %c0_62 = arith.constant 0 : index
    %c0_63 = arith.constant 0 : index
    %106 = vector.load %arg2[%c2, %c0_62, %c0_63] : memref<8x8x512xbf16, #tpu.memory_space<vmem>>, vector<1x8x128xbf16>
    %107 = vector.shape_cast %106 : vector<1x8x128xbf16> to vector<8x128xbf16>
    %108 = arith.extf %107 : vector<8x128xbf16> to vector<8x128xf32>
    %109 = arith.addf %105, %108 : vector<8x128xf32>
    %110 = arith.negf %109 : vector<8x128xf32>
    %111 = math.exp %110 : vector<8x128xf32>
    %cst_64 = arith.constant 1.000000e+00 : f32
    %112 = vector.broadcast %cst_64 : f32 to vector<8x128xf32>
    %113 = arith.addf %112, %111 : vector<8x128xf32>
    %114 = arith.divf %112, %113 : vector<8x128xf32>
    %c0_65 = arith.constant 0 : index
    %c128_66 = arith.constant 128 : index
    %115 = vector.load %arg3[%c0_65, %c128_66] : memref<128x512xbf16, #tpu.memory_space<vmem>>, vector<128x128xbf16>
    %cst_67 = arith.constant dense<0.000000e+00> : vector<8x128xf32>
    %116 = tpu.matmul %103, %115, %cst_67 {dimension_numbers = #tpu.dot_dimension_numbers<[1], [0], [0], [1], [0, 0, 1, 1], [], []>} : vector<8x128xbf16>, vector<128x128xbf16>, vector<8x128xf32> -> vector<8x128xf32>
    %c2_68 = arith.constant 2 : index
    %c0_69 = arith.constant 0 : index
    %c128_70 = arith.constant 128 : index
    %117 = vector.load %arg2[%c2_68, %c0_69, %c128_70] : memref<8x8x512xbf16, #tpu.memory_space<vmem>>, vector<1x8x128xbf16>
    %118 = vector.shape_cast %117 : vector<1x8x128xbf16> to vector<8x128xbf16>
    %119 = arith.extf %118 : vector<8x128xbf16> to vector<8x128xf32>
    %120 = arith.addf %116, %119 : vector<8x128xf32>
    %121 = arith.negf %120 : vector<8x128xf32>
    %122 = math.exp %121 : vector<8x128xf32>
    %cst_71 = arith.constant 1.000000e+00 : f32
    %123 = vector.broadcast %cst_71 : f32 to vector<8x128xf32>
    %124 = arith.addf %123, %122 : vector<8x128xf32>
    %125 = arith.divf %123, %124 : vector<8x128xf32>
    %c0_72 = arith.constant 0 : index
    %c256_73 = arith.constant 256 : index
    %126 = vector.load %arg3[%c0_72, %c256_73] : memref<128x512xbf16, #tpu.memory_space<vmem>>, vector<128x128xbf16>
    %cst_74 = arith.constant dense<0.000000e+00> : vector<8x128xf32>
    %127 = tpu.matmul %103, %126, %cst_74 {dimension_numbers = #tpu.dot_dimension_numbers<[1], [0], [0], [1], [0, 0, 1, 1], [], []>} : vector<8x128xbf16>, vector<128x128xbf16>, vector<8x128xf32> -> vector<8x128xf32>
    %c2_75 = arith.constant 2 : index
    %c0_76 = arith.constant 0 : index
    %c256_77 = arith.constant 256 : index
    %128 = vector.load %arg2[%c2_75, %c0_76, %c256_77] : memref<8x8x512xbf16, #tpu.memory_space<vmem>>, vector<1x8x128xbf16>
    %129 = vector.shape_cast %128 : vector<1x8x128xbf16> to vector<8x128xbf16>
    %130 = arith.extf %129 : vector<8x128xbf16> to vector<8x128xf32>
    %131 = arith.addf %127, %130 : vector<8x128xf32>
    %132 = math.tanh %131 : vector<8x128xf32>
    %c0_78 = arith.constant 0 : index
    %c384_79 = arith.constant 384 : index
    %133 = vector.load %arg3[%c0_78, %c384_79] : memref<128x512xbf16, #tpu.memory_space<vmem>>, vector<128x128xbf16>
    %cst_80 = arith.constant dense<0.000000e+00> : vector<8x128xf32>
    %134 = tpu.matmul %103, %133, %cst_80 {dimension_numbers = #tpu.dot_dimension_numbers<[1], [0], [0], [1], [0, 0, 1, 1], [], []>} : vector<8x128xbf16>, vector<128x128xbf16>, vector<8x128xf32> -> vector<8x128xf32>
    %c2_81 = arith.constant 2 : index
    %c0_82 = arith.constant 0 : index
    %c384_83 = arith.constant 384 : index
    %135 = vector.load %arg2[%c2_81, %c0_82, %c384_83] : memref<8x8x512xbf16, #tpu.memory_space<vmem>>, vector<1x8x128xbf16>
    %136 = vector.shape_cast %135 : vector<1x8x128xbf16> to vector<8x128xbf16>
    %137 = arith.extf %136 : vector<8x128xbf16> to vector<8x128xf32>
    %138 = arith.addf %134, %137 : vector<8x128xf32>
    %139 = arith.negf %138 : vector<8x128xf32>
    %140 = math.exp %139 : vector<8x128xf32>
    %cst_84 = arith.constant 1.000000e+00 : f32
    %141 = vector.broadcast %cst_84 : f32 to vector<8x128xf32>
    %142 = arith.addf %141, %140 : vector<8x128xf32>
    %143 = arith.divf %141, %142 : vector<8x128xf32>
    %144 = arith.mulf %125, %97 : vector<8x128xf32>
    %145 = arith.mulf %114, %132 : vector<8x128xf32>
    %146 = arith.addf %144, %145 : vector<8x128xf32>
    %147 = math.tanh %146 : vector<8x128xf32>
    %148 = arith.mulf %143, %147 : vector<8x128xf32>
    %c0_85 = arith.constant 0 : index
    %c2_86 = arith.constant 2 : index
    %c0_87 = arith.constant 0 : index
    %149 = vector.load %arg4[%c0_85, %c2_86, %c0_87] : memref<8x8x128xf32, #tpu.memory_space<vmem>>, vector<8x1x128xf32>
    %150 = vector.shape_cast %149 : vector<8x1x128xf32> to vector<8x128xf32>
    %151 = vector.shape_cast %148 : vector<8x128xf32> to vector<8x1x128xf32>
    tpu.vector_store %arg4[%c0_85, %c2_86, %c0_87], %151 {strides = array<i32>} : memref<8x8x128xf32, #tpu.memory_space<vmem>>, vector<8x1x128xf32>,
    %152 = arith.truncf %148 : vector<8x128xf32> to vector<8x128xbf16>
    %c0_88 = arith.constant 0 : index
    %c0_89 = arith.constant 0 : index
    %153 = vector.load %arg3[%c0_88, %c0_89] : memref<128x512xbf16, #tpu.memory_space<vmem>>, vector<128x128xbf16>
    %cst_90 = arith.constant dense<0.000000e+00> : vector<8x128xf32>
    %154 = tpu.matmul %152, %153, %cst_90 {dimension_numbers = #tpu.dot_dimension_numbers<[1], [0], [0], [1], [0, 0, 1, 1], [], []>} : vector<8x128xbf16>, vector<128x128xbf16>, vector<8x128xf32> -> vector<8x128xf32>
    %c3 = arith.constant 3 : index
    %c0_91 = arith.constant 0 : index
    %c0_92 = arith.constant 0 : index
    %155 = vector.load %arg2[%c3, %c0_91, %c0_92] : memref<8x8x512xbf16, #tpu.memory_space<vmem>>, vector<1x8x128xbf16>
    %156 = vector.shape_cast %155 : vector<1x8x128xbf16> to vector<8x128xbf16>
    %157 = arith.extf %156 : vector<8x128xbf16> to vector<8x128xf32>
    %158 = arith.addf %154, %157 : vector<8x128xf32>
    %159 = arith.negf %158 : vector<8x128xf32>
    %160 = math.exp %159 : vector<8x128xf32>
    %cst_93 = arith.constant 1.000000e+00 : f32
    %161 = vector.broadcast %cst_93 : f32 to vector<8x128xf32>
    %162 = arith.addf %161, %160 : vector<8x128xf32>
    %163 = arith.divf %161, %162 : vector<8x128xf32>
    %c0_94 = arith.constant 0 : index
    %c128_95 = arith.constant 128 : index
    %164 = vector.load %arg3[%c0_94, %c128_95] : memref<128x512xbf16, #tpu.memory_space<vmem>>, vector<128x128xbf16>
    %cst_96 = arith.constant dense<0.000000e+00> : vector<8x128xf32>
    %165 = tpu.matmul %152, %164, %cst_96 {dimension_numbers = #tpu.dot_dimension_numbers<[1], [0], [0], [1], [0, 0, 1, 1], [], []>} : vector<8x128xbf16>, vector<128x128xbf16>, vector<8x128xf32> -> vector<8x128xf32>
    %c3_97 = arith.constant 3 : index
    %c0_98 = arith.constant 0 : index
    %c128_99 = arith.constant 128 : index
    %166 = vector.load %arg2[%c3_97, %c0_98, %c128_99] : memref<8x8x512xbf16, #tpu.memory_space<vmem>>, vector<1x8x128xbf16>
    %167 = vector.shape_cast %166 : vector<1x8x128xbf16> to vector<8x128xbf16>
    %168 = arith.extf %167 : vector<8x128xbf16> to vector<8x128xf32>
    %169 = arith.addf %165, %168 : vector<8x128xf32>
    %170 = arith.negf %169 : vector<8x128xf32>
    %171 = math.exp %170 : vector<8x128xf32>
    %cst_100 = arith.constant 1.000000e+00 : f32
    %172 = vector.broadcast %cst_100 : f32 to vector<8x128xf32>
    %173 = arith.addf %172, %171 : vector<8x128xf32>
    %174 = arith.divf %172, %173 : vector<8x128xf32>
    %c0_101 = arith.constant 0 : index
    %c256_102 = arith.constant 256 : index
    %175 = vector.load %arg3[%c0_101, %c256_102] : memref<128x512xbf16, #tpu.memory_space<vmem>>, vector<128x128xbf16>
    %cst_103 = arith.constant dense<0.000000e+00> : vector<8x128xf32>
    %176 = tpu.matmul %152, %175, %cst_103 {dimension_numbers = #tpu.dot_dimension_numbers<[1], [0], [0], [1], [0, 0, 1, 1], [], []>} : vector<8x128xbf16>, vector<128x128xbf16>, vector<8x128xf32> -> vector<8x128xf32>
    %c3_104 = arith.constant 3 : index
    %c0_105 = arith.constant 0 : index
    %c256_106 = arith.constant 256 : index
    %177 = vector.load %arg2[%c3_104, %c0_105, %c256_106] : memref<8x8x512xbf16, #tpu.memory_space<vmem>>, vector<1x8x128xbf16>
    %178 = vector.shape_cast %177 : vector<1x8x128xbf16> to vector<8x128xbf16>
    %179 = arith.extf %178 : vector<8x128xbf16> to vector<8x128xf32>
    %180 = arith.addf %176, %179 : vector<8x128xf32>
    %181 = math.tanh %180 : vector<8x128xf32>
    %c0_107 = arith.constant 0 : index
    %c384_108 = arith.constant 384 : index
    %182 = vector.load %arg3[%c0_107, %c384_108] : memref<128x512xbf16, #tpu.memory_space<vmem>>, vector<128x128xbf16>
    %cst_109 = arith.constant dense<0.000000e+00> : vector<8x128xf32>
    %183 = tpu.matmul %152, %182, %cst_109 {dimension_numbers = #tpu.dot_dimension_numbers<[1], [0], [0], [1], [0, 0, 1, 1], [], []>} : vector<8x128xbf16>, vector<128x128xbf16>, vector<8x128xf32> -> vector<8x128xf32>
    %c3_110 = arith.constant 3 : index
    %c0_111 = arith.constant 0 : index
    %c384_112 = arith.constant 384 : index
    %184 = vector.load %arg2[%c3_110, %c0_111, %c384_112] : memref<8x8x512xbf16, #tpu.memory_space<vmem>>, vector<1x8x128xbf16>
    %185 = vector.shape_cast %184 : vector<1x8x128xbf16> to vector<8x128xbf16>
    %186 = arith.extf %185 : vector<8x128xbf16> to vector<8x128xf32>
    %187 = arith.addf %183, %186 : vector<8x128xf32>
    %188 = arith.negf %187 : vector<8x128xf32>
    %189 = math.exp %188 : vector<8x128xf32>
    %cst_113 = arith.constant 1.000000e+00 : f32
    %190 = vector.broadcast %cst_113 : f32 to vector<8x128xf32>
    %191 = arith.addf %190, %189 : vector<8x128xf32>
    %192 = arith.divf %190, %191 : vector<8x128xf32>
    %193 = arith.mulf %174, %146 : vector<8x128xf32>
    %194 = arith.mulf %163, %181 : vector<8x128xf32>
    %195 = arith.addf %193, %194 : vector<8x128xf32>
    %196 = math.tanh %195 : vector<8x128xf32>
    %197 = arith.mulf %192, %196 : vector<8x128xf32>
    %c0_114 = arith.constant 0 : index
    %c3_115 = arith.constant 3 : index
    %c0_116 = arith.constant 0 : index
    %198 = vector.load %arg4[%c0_114, %c3_115, %c0_116] : memref<8x8x128xf32, #tpu.memory_space<vmem>>, vector<8x1x128xf32>
    %199 = vector.shape_cast %198 : vector<8x1x128xf32> to vector<8x128xf32>
    %200 = vector.shape_cast %197 : vector<8x128xf32> to vector<8x1x128xf32>
    tpu.vector_store %arg4[%c0_114, %c3_115, %c0_116], %200 {strides = array<i32>} : memref<8x8x128xf32, #tpu.memory_space<vmem>>, vector<8x1x128xf32>,
    %201 = arith.truncf %197 : vector<8x128xf32> to vector<8x128xbf16>
    %c0_117 = arith.constant 0 : index
    %c0_118 = arith.constant 0 : index
    %202 = vector.load %arg3[%c0_117, %c0_118] : memref<128x512xbf16, #tpu.memory_space<vmem>>, vector<128x128xbf16>
    %cst_119 = arith.constant dense<0.000000e+00> : vector<8x128xf32>
    %203 = tpu.matmul %201, %202, %cst_119 {dimension_numbers = #tpu.dot_dimension_numbers<[1], [0], [0], [1], [0, 0, 1, 1], [], []>} : vector<8x128xbf16>, vector<128x128xbf16>, vector<8x128xf32> -> vector<8x128xf32>
    %c4 = arith.constant 4 : index
    %c0_120 = arith.constant 0 : index
    %c0_121 = arith.constant 0 : index
    %204 = vector.load %arg2[%c4, %c0_120, %c0_121] : memref<8x8x512xbf16, #tpu.memory_space<vmem>>, vector<1x8x128xbf16>
    %205 = vector.shape_cast %204 : vector<1x8x128xbf16> to vector<8x128xbf16>
    %206 = arith.extf %205 : vector<8x128xbf16> to vector<8x128xf32>
    %207 = arith.addf %203, %206 : vector<8x128xf32>
    %208 = arith.negf %207 : vector<8x128xf32>
    %209 = math.exp %208 : vector<8x128xf32>
    %cst_122 = arith.constant 1.000000e+00 : f32
    %210 = vector.broadcast %cst_122 : f32 to vector<8x128xf32>
    %211 = arith.addf %210, %209 : vector<8x128xf32>
    %212 = arith.divf %210, %211 : vector<8x128xf32>
    %c0_123 = arith.constant 0 : index
    %c128_124 = arith.constant 128 : index
    %213 = vector.load %arg3[%c0_123, %c128_124] : memref<128x512xbf16, #tpu.memory_space<vmem>>, vector<128x128xbf16>
    %cst_125 = arith.constant dense<0.000000e+00> : vector<8x128xf32>
    %214 = tpu.matmul %201, %213, %cst_125 {dimension_numbers = #tpu.dot_dimension_numbers<[1], [0], [0], [1], [0, 0, 1, 1], [], []>} : vector<8x128xbf16>, vector<128x128xbf16>, vector<8x128xf32> -> vector<8x128xf32>
    %c4_126 = arith.constant 4 : index
    %c0_127 = arith.constant 0 : index
    %c128_128 = arith.constant 128 : index
    %215 = vector.load %arg2[%c4_126, %c0_127, %c128_128] : memref<8x8x512xbf16, #tpu.memory_space<vmem>>, vector<1x8x128xbf16>
    %216 = vector.shape_cast %215 : vector<1x8x128xbf16> to vector<8x128xbf16>
    %217 = arith.extf %216 : vector<8x128xbf16> to vector<8x128xf32>
    %218 = arith.addf %214, %217 : vector<8x128xf32>
    %219 = arith.negf %218 : vector<8x128xf32>
    %220 = math.exp %219 : vector<8x128xf32>
    %cst_129 = arith.constant 1.000000e+00 : f32
    %221 = vector.broadcast %cst_129 : f32 to vector<8x128xf32>
    %222 = arith.addf %221, %220 : vector<8x128xf32>
    %223 = arith.divf %221, %222 : vector<8x128xf32>
    %c0_130 = arith.constant 0 : index
    %c256_131 = arith.constant 256 : index
    %224 = vector.load %arg3[%c0_130, %c256_131] : memref<128x512xbf16, #tpu.memory_space<vmem>>, vector<128x128xbf16>
    %cst_132 = arith.constant dense<0.000000e+00> : vector<8x128xf32>
    %225 = tpu.matmul %201, %224, %cst_132 {dimension_numbers = #tpu.dot_dimension_numbers<[1], [0], [0], [1], [0, 0, 1, 1], [], []>} : vector<8x128xbf16>, vector<128x128xbf16>, vector<8x128xf32> -> vector<8x128xf32>
    %c4_133 = arith.constant 4 : index
    %c0_134 = arith.constant 0 : index
    %c256_135 = arith.constant 256 : index
    %226 = vector.load %arg2[%c4_133, %c0_134, %c256_135] : memref<8x8x512xbf16, #tpu.memory_space<vmem>>, vector<1x8x128xbf16>
    %227 = vector.shape_cast %226 : vector<1x8x128xbf16> to vector<8x128xbf16>
    %228 = arith.extf %227 : vector<8x128xbf16> to vector<8x128xf32>
    %229 = arith.addf %225, %228 : vector<8x128xf32>
    %230 = math.tanh %229 : vector<8x128xf32>
    %c0_136 = arith.constant 0 : index
    %c384_137 = arith.constant 384 : index
    %231 = vector.load %arg3[%c0_136, %c384_137] : memref<128x512xbf16, #tpu.memory_space<vmem>>, vector<128x128xbf16>
    %cst_138 = arith.constant dense<0.000000e+00> : vector<8x128xf32>
    %232 = tpu.matmul %201, %231, %cst_138 {dimension_numbers = #tpu.dot_dimension_numbers<[1], [0], [0], [1], [0, 0, 1, 1], [], []>} : vector<8x128xbf16>, vector<128x128xbf16>, vector<8x128xf32> -> vector<8x128xf32>
    %c4_139 = arith.constant 4 : index
    %c0_140 = arith.constant 0 : index
    %c384_141 = arith.constant 384 : index
    %233 = vector.load %arg2[%c4_139, %c0_140, %c384_141] : memref<8x8x512xbf16, #tpu.memory_space<vmem>>, vector<1x8x128xbf16>
    %234 = vector.shape_cast %233 : vector<1x8x128xbf16> to vector<8x128xbf16>
    %235 = arith.extf %234 : vector<8x128xbf16> to vector<8x128xf32>
    %236 = arith.addf %232, %235 : vector<8x128xf32>
    %237 = arith.negf %236 : vector<8x128xf32>
    %238 = math.exp %237 : vector<8x128xf32>
    %cst_142 = arith.constant 1.000000e+00 : f32
    %239 = vector.broadcast %cst_142 : f32 to vector<8x128xf32>
    %240 = arith.addf %239, %238 : vector<8x128xf32>
    %241 = arith.divf %239, %240 : vector<8x128xf32>
    %242 = arith.mulf %223, %195 : vector<8x128xf32>
    %243 = arith.mulf %212, %230 : vector<8x128xf32>
    %244 = arith.addf %242, %243 : vector<8x128xf32>
    %245 = math.tanh %244 : vector<8x128xf32>
    %246 = arith.mulf %241, %245 : vector<8x128xf32>
    %c0_143 = arith.constant 0 : index
    %c4_144 = arith.constant 4 : index
    %c0_145 = arith.constant 0 : index
    %247 = vector.load %arg4[%c0_143, %c4_144, %c0_145] : memref<8x8x128xf32, #tpu.memory_space<vmem>>, vector<8x1x128xf32>
    %248 = vector.shape_cast %247 : vector<8x1x128xf32> to vector<8x128xf32>
    %249 = vector.shape_cast %246 : vector<8x128xf32> to vector<8x1x128xf32>
    tpu.vector_store %arg4[%c0_143, %c4_144, %c0_145], %249 {strides = array<i32>} : memref<8x8x128xf32, #tpu.memory_space<vmem>>, vector<8x1x128xf32>,
    %250 = arith.truncf %246 : vector<8x128xf32> to vector<8x128xbf16>
    %c0_146 = arith.constant 0 : index
    %c0_147 = arith.constant 0 : index
    %251 = vector.load %arg3[%c0_146, %c0_147] : memref<128x512xbf16, #tpu.memory_space<vmem>>, vector<128x128xbf16>
    %cst_148 = arith.constant dense<0.000000e+00> : vector<8x128xf32>
    %252 = tpu.matmul %250, %251, %cst_148 {dimension_numbers = #tpu.dot_dimension_numbers<[1], [0], [0], [1], [0, 0, 1, 1], [], []>} : vector<8x128xbf16>, vector<128x128xbf16>, vector<8x128xf32> -> vector<8x128xf32>
    %c5 = arith.constant 5 : index
    %c0_149 = arith.constant 0 : index
    %c0_150 = arith.constant 0 : index
    %253 = vector.load %arg2[%c5, %c0_149, %c0_150] : memref<8x8x512xbf16, #tpu.memory_space<vmem>>, vector<1x8x128xbf16>
    %254 = vector.shape_cast %253 : vector<1x8x128xbf16> to vector<8x128xbf16>
    %255 = arith.extf %254 : vector<8x128xbf16> to vector<8x128xf32>
    %256 = arith.addf %252, %255 : vector<8x128xf32>
    %257 = arith.negf %256 : vector<8x128xf32>
    %258 = math.exp %257 : vector<8x128xf32>
    %cst_151 = arith.constant 1.000000e+00 : f32
    %259 = vector.broadcast %cst_151 : f32 to vector<8x128xf32>
    %260 = arith.addf %259, %258 : vector<8x128xf32>
    %261 = arith.divf %259, %260 : vector<8x128xf32>
    %c0_152 = arith.constant 0 : index
    %c128_153 = arith.constant 128 : index
    %262 = vector.load %arg3[%c0_152, %c128_153] : memref<128x512xbf16, #tpu.memory_space<vmem>>, vector<128x128xbf16>
    %cst_154 = arith.constant dense<0.000000e+00> : vector<8x128xf32>
    %263 = tpu.matmul %250, %262, %cst_154 {dimension_numbers = #tpu.dot_dimension_numbers<[1], [0], [0], [1], [0, 0, 1, 1], [], []>} : vector<8x128xbf16>, vector<128x128xbf16>, vector<8x128xf32> -> vector<8x128xf32>
    %c5_155 = arith.constant 5 : index
    %c0_156 = arith.constant 0 : index
    %c128_157 = arith.constant 128 : index
    %264 = vector.load %arg2[%c5_155, %c0_156, %c128_157] : memref<8x8x512xbf16, #tpu.memory_space<vmem>>, vector<1x8x128xbf16>
    %265 = vector.shape_cast %264 : vector<1x8x128xbf16> to vector<8x128xbf16>
    %266 = arith.extf %265 : vector<8x128xbf16> to vector<8x128xf32>
    %267 = arith.addf %263, %266 : vector<8x128xf32>
    %268 = arith.negf %267 : vector<8x128xf32>
    %269 = math.exp %268 : vector<8x128xf32>
    %cst_158 = arith.constant 1.000000e+00 : f32
    %270 = vector.broadcast %cst_158 : f32 to vector<8x128xf32>
    %271 = arith.addf %270, %269 : vector<8x128xf32>
    %272 = arith.divf %270, %271 : vector<8x128xf32>
    %c0_159 = arith.constant 0 : index
    %c256_160 = arith.constant 256 : index
    %273 = vector.load %arg3[%c0_159, %c256_160] : memref<128x512xbf16, #tpu.memory_space<vmem>>, vector<128x128xbf16>
    %cst_161 = arith.constant dense<0.000000e+00> : vector<8x128xf32>
    %274 = tpu.matmul %250, %273, %cst_161 {dimension_numbers = #tpu.dot_dimension_numbers<[1], [0], [0], [1], [0, 0, 1, 1], [], []>} : vector<8x128xbf16>, vector<128x128xbf16>, vector<8x128xf32> -> vector<8x128xf32>
    %c5_162 = arith.constant 5 : index
    %c0_163 = arith.constant 0 : index
    %c256_164 = arith.constant 256 : index
    %275 = vector.load %arg2[%c5_162, %c0_163, %c256_164] : memref<8x8x512xbf16, #tpu.memory_space<vmem>>, vector<1x8x128xbf16>
    %276 = vector.shape_cast %275 : vector<1x8x128xbf16> to vector<8x128xbf16>
    %277 = arith.extf %276 : vector<8x128xbf16> to vector<8x128xf32>
    %278 = arith.addf %274, %277 : vector<8x128xf32>
    %279 = math.tanh %278 : vector<8x128xf32>
    %c0_165 = arith.constant 0 : index
    %c384_166 = arith.constant 384 : index
    %280 = vector.load %arg3[%c0_165, %c384_166] : memref<128x512xbf16, #tpu.memory_space<vmem>>, vector<128x128xbf16>
    %cst_167 = arith.constant dense<0.000000e+00> : vector<8x128xf32>
    %281 = tpu.matmul %250, %280, %cst_167 {dimension_numbers = #tpu.dot_dimension_numbers<[1], [0], [0], [1], [0, 0, 1, 1], [], []>} : vector<8x128xbf16>, vector<128x128xbf16>, vector<8x128xf32> -> vector<8x128xf32>
    %c5_168 = arith.constant 5 : index
    %c0_169 = arith.constant 0 : index
    %c384_170 = arith.constant 384 : index
    %282 = vector.load %arg2[%c5_168, %c0_169, %c384_170] : memref<8x8x512xbf16, #tpu.memory_space<vmem>>, vector<1x8x128xbf16>
    %283 = vector.shape_cast %282 : vector<1x8x128xbf16> to vector<8x128xbf16>
    %284 = arith.extf %283 : vector<8x128xbf16> to vector<8x128xf32>
    %285 = arith.addf %281, %284 : vector<8x128xf32>
    %286 = arith.negf %285 : vector<8x128xf32>
    %287 = math.exp %286 : vector<8x128xf32>
    %cst_171 = arith.constant 1.000000e+00 : f32
    %288 = vector.broadcast %cst_171 : f32 to vector<8x128xf32>
    %289 = arith.addf %288, %287 : vector<8x128xf32>
    %290 = arith.divf %288, %289 : vector<8x128xf32>
    %291 = arith.mulf %272, %244 : vector<8x128xf32>
    %292 = arith.mulf %261, %279 : vector<8x128xf32>
    %293 = arith.addf %291, %292 : vector<8x128xf32>
    %294 = math.tanh %293 : vector<8x128xf32>
    %295 = arith.mulf %290, %294 : vector<8x128xf32>
    %c0_172 = arith.constant 0 : index
    %c5_173 = arith.constant 5 : index
    %c0_174 = arith.constant 0 : index
    %296 = vector.load %arg4[%c0_172, %c5_173, %c0_174] : memref<8x8x128xf32, #tpu.memory_space<vmem>>, vector<8x1x128xf32>
    %297 = vector.shape_cast %296 : vector<8x1x128xf32> to vector<8x128xf32>
    %298 = vector.shape_cast %295 : vector<8x128xf32> to vector<8x1x128xf32>
    tpu.vector_store %arg4[%c0_172, %c5_173, %c0_174], %298 {strides = array<i32>} : memref<8x8x128xf32, #tpu.memory_space<vmem>>, vector<8x1x128xf32>,
    %299 = arith.truncf %295 : vector<8x128xf32> to vector<8x128xbf16>
    %c0_175 = arith.constant 0 : index
    %c0_176 = arith.constant 0 : index
    %300 = vector.load %arg3[%c0_175, %c0_176] : memref<128x512xbf16, #tpu.memory_space<vmem>>, vector<128x128xbf16>
    %cst_177 = arith.constant dense<0.000000e+00> : vector<8x128xf32>
    %301 = tpu.matmul %299, %300, %cst_177 {dimension_numbers = #tpu.dot_dimension_numbers<[1], [0], [0], [1], [0, 0, 1, 1], [], []>} : vector<8x128xbf16>, vector<128x128xbf16>, vector<8x128xf32> -> vector<8x128xf32>
    %c6 = arith.constant 6 : index
    %c0_178 = arith.constant 0 : index
    %c0_179 = arith.constant 0 : index
    %302 = vector.load %arg2[%c6, %c0_178, %c0_179] : memref<8x8x512xbf16, #tpu.memory_space<vmem>>, vector<1x8x128xbf16>
    %303 = vector.shape_cast %302 : vector<1x8x128xbf16> to vector<8x128xbf16>
    %304 = arith.extf %303 : vector<8x128xbf16> to vector<8x128xf32>
    %305 = arith.addf %301, %304 : vector<8x128xf32>
    %306 = arith.negf %305 : vector<8x128xf32>
    %307 = math.exp %306 : vector<8x128xf32>
    %cst_180 = arith.constant 1.000000e+00 : f32
    %308 = vector.broadcast %cst_180 : f32 to vector<8x128xf32>
    %309 = arith.addf %308, %307 : vector<8x128xf32>
    %310 = arith.divf %308, %309 : vector<8x128xf32>
    %c0_181 = arith.constant 0 : index
    %c128_182 = arith.constant 128 : index
    %311 = vector.load %arg3[%c0_181, %c128_182] : memref<128x512xbf16, #tpu.memory_space<vmem>>, vector<128x128xbf16>
    %cst_183 = arith.constant dense<0.000000e+00> : vector<8x128xf32>
    %312 = tpu.matmul %299, %311, %cst_183 {dimension_numbers = #tpu.dot_dimension_numbers<[1], [0], [0], [1], [0, 0, 1, 1], [], []>} : vector<8x128xbf16>, vector<128x128xbf16>, vector<8x128xf32> -> vector<8x128xf32>
    %c6_184 = arith.constant 6 : index
    %c0_185 = arith.constant 0 : index
    %c128_186 = arith.constant 128 : index
    %313 = vector.load %arg2[%c6_184, %c0_185, %c128_186] : memref<8x8x512xbf16, #tpu.memory_space<vmem>>, vector<1x8x128xbf16>
    %314 = vector.shape_cast %313 : vector<1x8x128xbf16> to vector<8x128xbf16>
    %315 = arith.extf %314 : vector<8x128xbf16> to vector<8x128xf32>
    %316 = arith.addf %312, %315 : vector<8x128xf32>
    %317 = arith.negf %316 : vector<8x128xf32>
    %318 = math.exp %317 : vector<8x128xf32>
    %cst_187 = arith.constant 1.000000e+00 : f32
    %319 = vector.broadcast %cst_187 : f32 to vector<8x128xf32>
    %320 = arith.addf %319, %318 : vector<8x128xf32>
    %321 = arith.divf %319, %320 : vector<8x128xf32>
    %c0_188 = arith.constant 0 : index
    %c256_189 = arith.constant 256 : index
    %322 = vector.load %arg3[%c0_188, %c256_189] : memref<128x512xbf16, #tpu.memory_space<vmem>>, vector<128x128xbf16>
    %cst_190 = arith.constant dense<0.000000e+00> : vector<8x128xf32>
    %323 = tpu.matmul %299, %322, %cst_190 {dimension_numbers = #tpu.dot_dimension_numbers<[1], [0], [0], [1], [0, 0, 1, 1], [], []>} : vector<8x128xbf16>, vector<128x128xbf16>, vector<8x128xf32> -> vector<8x128xf32>
    %c6_191 = arith.constant 6 : index
    %c0_192 = arith.constant 0 : index
    %c256_193 = arith.constant 256 : index
    %324 = vector.load %arg2[%c6_191, %c0_192, %c256_193] : memref<8x8x512xbf16, #tpu.memory_space<vmem>>, vector<1x8x128xbf16>
    %325 = vector.shape_cast %324 : vector<1x8x128xbf16> to vector<8x128xbf16>
    %326 = arith.extf %325 : vector<8x128xbf16> to vector<8x128xf32>
    %327 = arith.addf %323, %326 : vector<8x128xf32>
    %328 = math.tanh %327 : vector<8x128xf32>
    %c0_194 = arith.constant 0 : index
    %c384_195 = arith.constant 384 : index
    %329 = vector.load %arg3[%c0_194, %c384_195] : memref<128x512xbf16, #tpu.memory_space<vmem>>, vector<128x128xbf16>
    %cst_196 = arith.constant dense<0.000000e+00> : vector<8x128xf32>
    %330 = tpu.matmul %299, %329, %cst_196 {dimension_numbers = #tpu.dot_dimension_numbers<[1], [0], [0], [1], [0, 0, 1, 1], [], []>} : vector<8x128xbf16>, vector<128x128xbf16>, vector<8x128xf32> -> vector<8x128xf32>
    %c6_197 = arith.constant 6 : index
    %c0_198 = arith.constant 0 : index
    %c384_199 = arith.constant 384 : index
    %331 = vector.load %arg2[%c6_197, %c0_198, %c384_199] : memref<8x8x512xbf16, #tpu.memory_space<vmem>>, vector<1x8x128xbf16>
    %332 = vector.shape_cast %331 : vector<1x8x128xbf16> to vector<8x128xbf16>
    %333 = arith.extf %332 : vector<8x128xbf16> to vector<8x128xf32>
    %334 = arith.addf %330, %333 : vector<8x128xf32>
    %335 = arith.negf %334 : vector<8x128xf32>
    %336 = math.exp %335 : vector<8x128xf32>
    %cst_200 = arith.constant 1.000000e+00 : f32
    %337 = vector.broadcast %cst_200 : f32 to vector<8x128xf32>
    %338 = arith.addf %337, %336 : vector<8x128xf32>
    %339 = arith.divf %337, %338 : vector<8x128xf32>
    %340 = arith.mulf %321, %293 : vector<8x128xf32>
    %341 = arith.mulf %310, %328 : vector<8x128xf32>
    %342 = arith.addf %340, %341 : vector<8x128xf32>
    %343 = math.tanh %342 : vector<8x128xf32>
    %344 = arith.mulf %339, %343 : vector<8x128xf32>
    %c0_201 = arith.constant 0 : index
    %c6_202 = arith.constant 6 : index
    %c0_203 = arith.constant 0 : index
    %345 = vector.load %arg4[%c0_201, %c6_202, %c0_203] : memref<8x8x128xf32, #tpu.memory_space<vmem>>, vector<8x1x128xf32>
    %346 = vector.shape_cast %345 : vector<8x1x128xf32> to vector<8x128xf32>
    %347 = vector.shape_cast %344 : vector<8x128xf32> to vector<8x1x128xf32>
    tpu.vector_store %arg4[%c0_201, %c6_202, %c0_203], %347 {strides = array<i32>} : memref<8x8x128xf32, #tpu.memory_space<vmem>>, vector<8x1x128xf32>,
    %348 = arith.truncf %344 : vector<8x128xf32> to vector<8x128xbf16>
    %c0_204 = arith.constant 0 : index
    %c0_205 = arith.constant 0 : index
    %349 = vector.load %arg3[%c0_204, %c0_205] : memref<128x512xbf16, #tpu.memory_space<vmem>>, vector<128x128xbf16>
    %cst_206 = arith.constant dense<0.000000e+00> : vector<8x128xf32>
    %350 = tpu.matmul %348, %349, %cst_206 {dimension_numbers = #tpu.dot_dimension_numbers<[1], [0], [0], [1], [0, 0, 1, 1], [], []>} : vector<8x128xbf16>, vector<128x128xbf16>, vector<8x128xf32> -> vector<8x128xf32>
    %c7 = arith.constant 7 : index
    %c0_207 = arith.constant 0 : index
    %c0_208 = arith.constant 0 : index
    %351 = vector.load %arg2[%c7, %c0_207, %c0_208] : memref<8x8x512xbf16, #tpu.memory_space<vmem>>, vector<1x8x128xbf16>
    %352 = vector.shape_cast %351 : vector<1x8x128xbf16> to vector<8x128xbf16>
    %353 = arith.extf %352 : vector<8x128xbf16> to vector<8x128xf32>
    %354 = arith.addf %350, %353 : vector<8x128xf32>
    %355 = arith.negf %354 : vector<8x128xf32>
    %356 = math.exp %355 : vector<8x128xf32>
    %cst_209 = arith.constant 1.000000e+00 : f32
    %357 = vector.broadcast %cst_209 : f32 to vector<8x128xf32>
    %358 = arith.addf %357, %356 : vector<8x128xf32>
    %359 = arith.divf %357, %358 : vector<8x128xf32>
    %c0_210 = arith.constant 0 : index
    %c128_211 = arith.constant 128 : index
    %360 = vector.load %arg3[%c0_210, %c128_211] : memref<128x512xbf16, #tpu.memory_space<vmem>>, vector<128x128xbf16>
    %cst_212 = arith.constant dense<0.000000e+00> : vector<8x128xf32>
    %361 = tpu.matmul %348, %360, %cst_212 {dimension_numbers = #tpu.dot_dimension_numbers<[1], [0], [0], [1], [0, 0, 1, 1], [], []>} : vector<8x128xbf16>, vector<128x128xbf16>, vector<8x128xf32> -> vector<8x128xf32>
    %c7_213 = arith.constant 7 : index
    %c0_214 = arith.constant 0 : index
    %c128_215 = arith.constant 128 : index
    %362 = vector.load %arg2[%c7_213, %c0_214, %c128_215] : memref<8x8x512xbf16, #tpu.memory_space<vmem>>, vector<1x8x128xbf16>
    %363 = vector.shape_cast %362 : vector<1x8x128xbf16> to vector<8x128xbf16>
    %364 = arith.extf %363 : vector<8x128xbf16> to vector<8x128xf32>
    %365 = arith.addf %361, %364 : vector<8x128xf32>
    %366 = arith.negf %365 : vector<8x128xf32>
    %367 = math.exp %366 : vector<8x128xf32>
    %cst_216 = arith.constant 1.000000e+00 : f32
    %368 = vector.broadcast %cst_216 : f32 to vector<8x128xf32>
    %369 = arith.addf %368, %367 : vector<8x128xf32>
    %370 = arith.divf %368, %369 : vector<8x128xf32>
    %c0_217 = arith.constant 0 : index
    %c256_218 = arith.constant 256 : index
    %371 = vector.load %arg3[%c0_217, %c256_218] : memref<128x512xbf16, #tpu.memory_space<vmem>>, vector<128x128xbf16>
    %cst_219 = arith.constant dense<0.000000e+00> : vector<8x128xf32>
    %372 = tpu.matmul %348, %371, %cst_219 {dimension_numbers = #tpu.dot_dimension_numbers<[1], [0], [0], [1], [0, 0, 1, 1], [], []>} : vector<8x128xbf16>, vector<128x128xbf16>, vector<8x128xf32> -> vector<8x128xf32>
    %c7_220 = arith.constant 7 : index
    %c0_221 = arith.constant 0 : index
    %c256_222 = arith.constant 256 : index
    %373 = vector.load %arg2[%c7_220, %c0_221, %c256_222] : memref<8x8x512xbf16, #tpu.memory_space<vmem>>, vector<1x8x128xbf16>
    %374 = vector.shape_cast %373 : vector<1x8x128xbf16> to vector<8x128xbf16>
    %375 = arith.extf %374 : vector<8x128xbf16> to vector<8x128xf32>
    %376 = arith.addf %372, %375 : vector<8x128xf32>
    %377 = math.tanh %376 : vector<8x128xf32>
    %c0_223 = arith.constant 0 : index
    %c384_224 = arith.constant 384 : index
    %378 = vector.load %arg3[%c0_223, %c384_224] : memref<128x512xbf16, #tpu.memory_space<vmem>>, vector<128x128xbf16>
    %cst_225 = arith.constant dense<0.000000e+00> : vector<8x128xf32>
    %379 = tpu.matmul %348, %378, %cst_225 {dimension_numbers = #tpu.dot_dimension_numbers<[1], [0], [0], [1], [0, 0, 1, 1], [], []>} : vector<8x128xbf16>, vector<128x128xbf16>, vector<8x128xf32> -> vector<8x128xf32>
    %c7_226 = arith.constant 7 : index
    %c0_227 = arith.constant 0 : index
    %c384_228 = arith.constant 384 : index
    %380 = vector.load %arg2[%c7_226, %c0_227, %c384_228] : memref<8x8x512xbf16, #tpu.memory_space<vmem>>, vector<1x8x128xbf16>
    %381 = vector.shape_cast %380 : vector<1x8x128xbf16> to vector<8x128xbf16>
    %382 = arith.extf %381 : vector<8x128xbf16> to vector<8x128xf32>
    %383 = arith.addf %379, %382 : vector<8x128xf32>
    %384 = arith.negf %383 : vector<8x128xf32>
    %385 = math.exp %384 : vector<8x128xf32>
    %cst_229 = arith.constant 1.000000e+00 : f32
    %386 = vector.broadcast %cst_229 : f32 to vector<8x128xf32>
    %387 = arith.addf %386, %385 : vector<8x128xf32>
    %388 = arith.divf %386, %387 : vector<8x128xf32>
    %389 = arith.mulf %370, %342 : vector<8x128xf32>
    %390 = arith.mulf %359, %377 : vector<8x128xf32>
    %391 = arith.addf %389, %390 : vector<8x128xf32>
    %392 = math.tanh %391 : vector<8x128xf32>
    %393 = arith.mulf %388, %392 : vector<8x128xf32>
    %c0_230 = arith.constant 0 : index
    %c7_231 = arith.constant 7 : index
    %c0_232 = arith.constant 0 : index
    %394 = vector.load %arg4[%c0_230, %c7_231, %c0_232] : memref<8x8x128xf32, #tpu.memory_space<vmem>>, vector<8x1x128xf32>
    %395 = vector.shape_cast %394 : vector<8x1x128xf32> to vector<8x128xf32>
    %396 = vector.shape_cast %393 : vector<8x128xf32> to vector<8x1x128xf32>
    tpu.vector_store %arg4[%c0_230, %c7_231, %c0_232], %396 {strides = array<i32>} : memref<8x8x128xf32, #tpu.memory_space<vmem>>, vector<8x1x128xf32>,
    %c0_233 = arith.constant 0 : index
    %c0_234 = arith.constant 0 : index
    %397 = vector.load %arg7[%c0_233, %c0_234] : memref<8x128xf32, #tpu.memory_space<vmem>>, vector<8x128xf32>
    tpu.vector_store %arg7[%c0_233, %c0_234], %393 {strides = array<i32>} : memref<8x128xf32, #tpu.memory_space<vmem>>, vector<8x128xf32>,
    %c0_235 = arith.constant 0 : index
    %c0_236 = arith.constant 0 : index
    %398 = vector.load %arg8[%c0_235, %c0_236] : memref<8x128xf32, #tpu.memory_space<vmem>>, vector<8x128xf32>
    tpu.vector_store %arg8[%c0_235, %c0_236], %391 {strides = array<i32>} : memref<8x128xf32, #tpu.memory_space<vmem>>, vector<8x128xf32>,
    %c0_i32_237 = arith.constant 0 : i32
    %399 = arith.cmpi eq, %arg1, %c0_i32_237 : i32
    %400 = arith.extui %399 : i1 to i32
    %c0_i32_238 = arith.constant 0 : i32
    %401 = arith.cmpi ne, %400, %c0_i32_238 : i32
    scf.if %401 {
      %c0_239 = arith.constant 0 : index
      %c0_240 = arith.constant 0 : index
      %402 = vector.load %arg5[%c0_239, %c0_240] : memref<8x128xf32, #tpu.memory_space<vmem>>, vector<8x128xf32>
      tpu.vector_store %arg5[%c0_239, %c0_240], %393 {strides = array<i32>} : memref<8x128xf32, #tpu.memory_space<vmem>>, vector<8x128xf32>,
      %c0_241 = arith.constant 0 : index
      %c0_242 = arith.constant 0 : index
      %403 = vector.load %arg6[%c0_241, %c0_242] : memref<8x128xf32, #tpu.memory_space<vmem>>, vector<8x128xf32>
      tpu.vector_store %arg6[%c0_241, %c0_242], %391 {strides = array<i32>} : memref<8x128xf32, #tpu.memory_space<vmem>>, vector<8x128xf32>,
    } else {
    }
    return
  }
  func.func @transform_0(%arg0: i32, %arg1: i32) -> (i32, i32, i32) {
    %c0_i32 = arith.constant 0 : i32
    %c0_i32_0 = arith.constant 0 : i32
    return %arg1, %arg0, %c0_i32 : i32, i32, i32
  }
  func.func @transform_1(%arg0: i32, %arg1: i32) -> (i32, i32) {
    %c0_i32 = arith.constant 0 : i32
    %c0_i32_0 = arith.constant 0 : i32
    %c0_i32_1 = arith.constant 0 : i32
    return %c0_i32, %c0_i32_0 : i32, i32
  }
  func.func @transform_2(%arg0: i32, %arg1: i32) -> (i32, i32, i32) {
    %c0_i32 = arith.constant 0 : i32
    %c0_i32_0 = arith.constant 0 : i32
    return %arg0, %arg1, %c0_i32 : i32, i32, i32
  }
  func.func @transform_3(%arg0: i32, %arg1: i32) -> (i32, i32) {
    %c0_i32 = arith.constant 0 : i32
    %c0_i32_0 = arith.constant 0 : i32
    return %arg0, %c0_i32 : i32, i32
  }
  func.func @transform_4(%arg0: i32, %arg1: i32) -> (i32, i32) {
    %c0_i32 = arith.constant 0 : i32
    %c0_i32_0 = arith.constant 0 : i32
    return %arg0, %c0_i32 : i32, i32
  }
}

</mosaic_0001>

<bundles_post_ra>
// kernel: encoder_forward.1
= control target key start
LH: loop header
LB: loop body
LE: loop exit
PB: predicated region body
PF: predicated region fallthrough
CT: control target
= control target key end

     0   :  { %v5825_v0 = vmov 0.0   ;;  %vm5826_vm0 = vmmov 0   ;;  %v5827_v20 = vmov 0.0|0.0   ;;  %s7311_s1 = inlined_call_operand.vmem [shape: bf16[128,512], index: 1, kind: input, shape index: {}]   ;;  %s7312_s0 = inlined_call_operand.vmem [shape: bf16[8,8,512], index: 0, kind: input, shape index: {}]   ;;  %s7313_s2 = inlined_call_operand.vmem [shape: f32[8,8,128], index: 2, kind: output, shape index: {0}]   ;;  %s7314_s4 = inlined_call_operand.vmem [shape: f32[8,128], index: 4, kind: output, shape index: {2}]   ;;  %s7315_s3 = inlined_call_operand.vmem [shape: f32[8,128], index: 3, kind: output, shape index: {1}]  }
   0x1   :  { %4797 = vmatprep.subr.bf16.mxu0 %v5825_v0  ;;  %4817 = vmatprep.subr.bf16.mxu1 %v5825_v0  ;;  %v5441_v1 = vld [vmem:[%s7311_s1 + $0xe0] ss:$16 sps:$4 sm:$0xff]   ;;  %v5442_v2 = vld [vmem:[%s7311_s1 + $0xe4] ss:$16 sps:$4 sm:$0xff]   ;;  %v5457_v17 = vld [vmem:[%s7311_s1 + $0xe8] ss:$16 sps:$4 sm:$0xff]  }
   0x2   :  { %4813 = vmatprep.mubr.msk.bf16.mxu0 %vm5826_vm0, %v5825_v0  ;;  %4833 = vmatprep.mubr.msk.bf16.mxu1 %vm5826_vm0, %v5825_v0  ;;  %v5443_v3 = vld [vmem:[%s7311_s1 + $0xc0] ss:$16 sps:$4 sm:$0xff]   ;;  %v5444_v4 = vld [vmem:[%s7311_s1 + $0xc4] ss:$16 sps:$4 sm:$0xff]   ;;  %v5458_v18 = vld [vmem:[%s7311_s1 + $0xec] ss:$16 sps:$4 sm:$0xff]  }
   0x3   :  { %4798 = vmatpush3.bf16.msra.mxu0 %v5441_v1  ;;  %4818 = vmatpush3.bf16.msra.mxu1 %v5442_v2  ;;  %v5445_v5 = vld [vmem:[%s7311_s1 + $0xa0] ss:$16 sps:$4 sm:$0xff]   ;;  %v5446_v6 = vld [vmem:[%s7311_s1 + $0xa4] ss:$16 sps:$4 sm:$0xff]   ;;  %v5459_v19 = vld [vmem:[%s7311_s1 + $0xc8] ss:$16 sps:$4 sm:$0xff]  }
   0x4   :  { %4799 = vmatprep.subr.bf16.mxu0 %v5825_v0  ;;  %4819 = vmatprep.subr.bf16.mxu1 %v5825_v0  ;;  %v5447_v7 = vld [vmem:[%s7311_s1 + $0x80] ss:$16 sps:$4 sm:$0xff]   ;;  %v5448_v8 = vld [vmem:[%s7311_s1 + $0x84] ss:$16 sps:$4 sm:$0xff]   ;;  %v5460_v21 = vld [vmem:[%s7311_s1 + $0xcc] ss:$16 sps:$4 sm:$0xff]  }
   0x5   :  { %v5449_v9 = vld [vmem:[%s7311_s1 + $0x60] ss:$16 sps:$4 sm:$0xff]   ;;  %v5450_v10 = vld [vmem:[%s7311_s1 + $0x64] ss:$16 sps:$4 sm:$0xff]   ;;  %v5461_v22 = vld [vmem:[%s7311_s1 + $0xa8] ss:$16 sps:$4 sm:$0xff]  }
   0x6   :  { %v5451_v11 = vld [vmem:[%s7311_s1 + $0x40] ss:$16 sps:$4 sm:$0xff]   ;;  %v5452_v12 = vld [vmem:[%s7311_s1 + $0x44] ss:$16 sps:$4 sm:$0xff]   ;;  %v5462_v23 = vld [vmem:[%s7311_s1 + $0xac] ss:$16 sps:$4 sm:$0xff]  }
   0x7   :  { %4800 = vmatpush3.bf16.msra.mxu0 %v5443_v3  ;;  %4820 = vmatpush3.bf16.msra.mxu1 %v5444_v4  ;;  %v5453_v13 = vld [vmem:[%s7311_s1 + $0x20] ss:$16 sps:$4 sm:$0xff]   ;;  %v5454_v14 = vld [vmem:[%s7311_s1 + $0x24] ss:$16 sps:$4 sm:$0xff]   ;;  %v5463_v24 = vld [vmem:[%s7311_s1 + $0x88] ss:$16 sps:$4 sm:$0xff]  }
   0x8   :  { %4801 = vmatprep.subr.bf16.mxu0 %v5825_v0  ;;  %4821 = vmatprep.subr.bf16.mxu1 %v5825_v0  ;;  %v5455_v15 = vld [vmem:[%s7311_s1] ss:$16 sps:$4 sm:$0xff]   ;;  %v5456_v16 = vld [vmem:[%s7311_s1 + $0x4] ss:$16 sps:$4 sm:$0xff]   ;;  %v5464_v25 = vld [vmem:[%s7311_s1 + $0x8c] ss:$16 sps:$4 sm:$0xff]  }
   0x9   :  { %v5465_v26 = vld [vmem:[%s7311_s1 + $0x68] ss:$16 sps:$4 sm:$0xff]   ;;  %v5466_v27 = vld [vmem:[%s7311_s1 + $0x6c] ss:$16 sps:$4 sm:$0xff]   ;;  %v5473_v34 = vld [vmem:[%s7311_s1 + $0xe0] ss:$16 sps:$4 sm:$0xff]  }
   0xa   :  { %v5467_v28 = vld [vmem:[%s7311_s1 + $0x48] ss:$16 sps:$4 sm:$0xff]   ;;  %v5468_v29 = vld [vmem:[%s7311_s1 + $0x4c] ss:$16 sps:$4 sm:$0xff]   ;;  %v5474_v35 = vld [vmem:[%s7311_s1 + $0xe4] ss:$16 sps:$4 sm:$0xff]  }
   0xb   :  { %4802 = vmatpush3.bf16.msra.mxu0 %v5445_v5  ;;  %4822 = vmatpush3.bf16.msra.mxu1 %v5446_v6  ;;  %v5469_v30 = vld [vmem:[%s7311_s1 + $0x28] ss:$16 sps:$4 sm:$0xff]   ;;  %v5470_v31 = vld [vmem:[%s7311_s1 + $0x2c] ss:$16 sps:$4 sm:$0xff]   ;;  %v5475_v36 = vld [vmem:[%s7311_s1 + $0xc0] ss:$16 sps:$4 sm:$0xff]  }
   0xc   :  { %4803 = vmatprep.subr.bf16.mxu0 %v5825_v0  ;;  %4823 = vmatprep.subr.bf16.mxu1 %v5825_v0  ;;  %v5471_v32 = vld [vmem:[%s7311_s1 + $0x8] ss:$16 sps:$4 sm:$0xff]   ;;  %v5472_v33 = vld [vmem:[%s7311_s1 + $0xc] ss:$16 sps:$4 sm:$0xff]   ;;  %v5476_v37 = vld [vmem:[%s7311_s1 + $0xc4] ss:$16 sps:$4 sm:$0xff]  }
   0xd   :  { %v5477_v38 = vld [vmem:[%s7311_s1 + $0xa0] ss:$16 sps:$4 sm:$0xff]   ;;  %v5478_v39 = vld [vmem:[%s7311_s1 + $0xa4] ss:$16 sps:$4 sm:$0xff]   ;;  %v264_v3 = vld [vmem:[%s7312_s0 + $0x8] sm:$0xff]  }
   0xe   :  { %v5479_v40 = vld [vmem:[%s7311_s1 + $0x80] ss:$16 sps:$4 sm:$0xff]   ;;  %v5480_v41 = vld [vmem:[%s7311_s1 + $0x84] ss:$16 sps:$4 sm:$0xff]   ;;  %v265_v6 = vunpack.c.l.bf16 %v264_v3 }
   0xf   :  { %4804 = vmatpush3.bf16.msra.mxu0 %v5447_v7  ;;  %4824 = vmatpush3.bf16.msra.mxu1 %v5448_v8  ;;  %v5481_v42 = vld [vmem:[%s7311_s1 + $0x60] ss:$16 sps:$4 sm:$0xff]   ;;  %v5482_v43 = vld [vmem:[%s7311_s1 + $0x64] ss:$16 sps:$4 sm:$0xff]   ;;  %v372_v8 = vunpack.c.h.bf16 %v264_v3  ;;  %v5504_v3 = vld [vmem:[%s7311_s1 + $0xc] ss:$16 sps:$4 sm:$0xff]  }
  0x10   :  { %4805 = vmatprep.subr.bf16.mxu0 %v5825_v0  ;;  %4825 = vmatprep.subr.bf16.mxu1 %v5825_v0  ;;  %v5483_v44 = vld [vmem:[%s7311_s1 + $0x40] ss:$16 sps:$4 sm:$0xff]   ;;  %v5484_v45 = vld [vmem:[%s7311_s1 + $0x44] ss:$16 sps:$4 sm:$0xff]  }
  0x11   :  { %v5485_v46 = vld [vmem:[%s7311_s1 + $0x20] ss:$16 sps:$4 sm:$0xff]   ;;  %v5486_v47 = vld [vmem:[%s7311_s1 + $0x24] ss:$16 sps:$4 sm:$0xff]  }
  0x12   :  { %v5487_v48 = vld [vmem:[%s7311_s1] ss:$16 sps:$4 sm:$0xff]   ;;  %v5488_v49 = vld [vmem:[%s7311_s1 + $0x4] ss:$16 sps:$4 sm:$0xff]  }
  0x13   :  { %4806 = vmatpush3.bf16.msra.mxu0 %v5449_v9  ;;  %4826 = vmatpush3.bf16.msra.mxu1 %v5450_v10  ;;  %v40_v50 = vld [vmem:[%s7312_s0] sm:$0xff]  }
  0x14   :  { %4807 = vmatprep.subr.bf16.mxu0 %v5825_v0  ;;  %4827 = vmatprep.subr.bf16.mxu1 %v5825_v0  ;;  %v153_v52 = vunpack.c.h.bf16 %v40_v50  ;;  %v41_v54 = vunpack.c.l.bf16 %v40_v50 }
  0x17   :  { %4808 = vmatpush3.bf16.msra.mxu0 %v5451_v11  ;;  %4828 = vmatpush3.bf16.msra.mxu1 %v5452_v12 }
  0x18   :  { %4809 = vmatprep.subr.bf16.mxu0 %v5825_v0  ;;  %4829 = vmatprep.subr.bf16.mxu1 %v5825_v0 }
  0x1b   :  { %4810 = vmatpush3.bf16.msra.mxu0 %v5453_v13  ;;  %4830 = vmatpush3.bf16.msra.mxu1 %v5454_v14 }
  0x1c   :  { %4811 = vmatprep.subr.bf16.mxu0 %v5825_v0  ;;  %4831 = vmatprep.subr.bf16.mxu1 %v5825_v0 }
  0x1f   :  { %4812 = vmatpush3.bf16.msra.mxu0 %v5455_v15  ;;  %4832 = vmatpush3.bf16.msra.mxu1 %v5456_v16 }
  0x20   :  { %4837 = vmatprep.subr.bf16.mxu0 %v5825_v0  ;;  %4857 = vmatprep.subr.bf16.mxu1 %v5825_v0 }
  0x22   :  { %4814 = vmatmul.mubr.bf16.vlgmr.msra.gmra.mxu0 %v5827_v20  ;;  %4834 = vmatmul.mubr.bf16.vlgmr.msra.gmra.mxu1 %v5827_v20 }
  0x23   :  { %4838 = vmatpush3.bf16.msra.mxu0 %v5457_v17  ;;  %4858 = vmatpush3.bf16.msra.mxu1 %v5458_v18 }
  0x24   :  { %4839 = vmatprep.subr.bf16.mxu0 %v5825_v0  ;;  %4859 = vmatprep.subr.bf16.mxu1 %v5825_v0 }
  0x25   :  { %4853 = vmatprep.mubr.msk.bf16.mxu0 %vm5826_vm0, %v5825_v0  ;;  %4873 = vmatprep.mubr.msk.bf16.mxu1 %vm5826_vm0, %v5825_v0 }
  0x27   :  { %4840 = vmatpush3.bf16.msra.mxu0 %v5459_v19  ;;  %4860 = vmatpush3.bf16.msra.mxu1 %v5460_v21 }
  0x28   :  { %4841 = vmatprep.subr.bf16.mxu0 %v5825_v0  ;;  %4861 = vmatprep.subr.bf16.mxu1 %v5825_v0 }
  0x2b   :  { %4842 = vmatpush3.bf16.msra.mxu0 %v5461_v22  ;;  %4862 = vmatpush3.bf16.msra.mxu1 %v5462_v23 }
  0x2c   :  { %4843 = vmatprep.subr.bf16.mxu0 %v5825_v0  ;;  %4863 = vmatprep.subr.bf16.mxu1 %v5825_v0 }
  0x2f   :  { %4844 = vmatpush3.bf16.msra.mxu0 %v5463_v24  ;;  %4864 = vmatpush3.bf16.msra.mxu1 %v5464_v25 }
  0x30   :  { %4845 = vmatprep.subr.bf16.mxu0 %v5825_v0  ;;  %4865 = vmatprep.subr.bf16.mxu1 %v5825_v0 }
  0x33   :  { %4846 = vmatpush3.bf16.msra.mxu0 %v5465_v26  ;;  %4866 = vmatpush3.bf16.msra.mxu1 %v5466_v27 }
  0x34   :  { %4847 = vmatprep.subr.bf16.mxu0 %v5825_v0  ;;  %4867 = vmatprep.subr.bf16.mxu1 %v5825_v0 }
  0x37   :  { %4848 = vmatpush3.bf16.msra.mxu0 %v5467_v28  ;;  %4868 = vmatpush3.bf16.msra.mxu1 %v5468_v29  ;;  %v5828_v28 = vmov 1966171168  }
  0x38   :  { %4849 = vmatprep.subr.bf16.mxu0 %v5825_v0  ;;  %4869 = vmatprep.subr.bf16.mxu1 %v5825_v0  ;;  %v475_v29 = vunpack.c.l.s4 %v5828_v28 }
  0x3b   :  { %4850 = vmatpush3.bf16.msra.mxu0 %v5469_v30  ;;  %4870 = vmatpush3.bf16.msra.mxu1 %v5470_v31  ;;  %v477_v30 = vlaneseq  ;;  %v476_v31 = vunpack.c.0.s8 %v475_v29 }
  0x3c   :  { %4851 = vmatprep.subr.bf16.mxu0 %v5825_v0  ;;  %4871 = vmatprep.subr.bf16.mxu1 %v5825_v0 }
  0x3f   :  { %4852 = vmatpush3.bf16.msra.mxu0 %v5471_v32  ;;  %4872 = vmatpush3.bf16.msra.mxu1 %v5472_v33  ;;  %v478_v32 = vshrl.u32 %v477_v30, 7 }
  0x40   :  { %4877 = vmatprep.subr.bf16.mxu0 %v5825_v0  ;;  %4897 = vmatprep.subr.bf16.mxu1 %v5825_v0 }
  0x42   :  { %4854 = vmatmul.mubr.bf16.vlgmr.msra.gmra.mxu0 %v5827_v20  ;;  %4874 = vmatmul.mubr.bf16.vlgmr.msra.gmra.mxu1 %v5827_v20 }
  0x43   :  { %4893 = vmatprep.mubr.msk.bf16.mxu0 %vm5826_vm0, %v5825_v0  ;;  %4913 = vmatprep.mubr.msk.bf16.mxu1 %vm5826_vm0, %v5825_v0 }
  0x44   :  { %4878 = vmatpush3.bf16.msra.mxu0 %v5473_v34  ;;  %4898 = vmatpush3.bf16.msra.mxu1 %v5474_v35  ;;  %v6069_v34 = vsub.s32 %v476_v31, %v478_v32 }
  0x45   :  { %4879 = vmatprep.subr.bf16.mxu0 %v5825_v0  ;;  %4899 = vmatprep.subr.bf16.mxu1 %v5825_v0 }
  0x48   :  { %4880 = vmatpush3.bf16.msra.mxu0 %v5475_v36  ;;  %4900 = vmatpush3.bf16.msra.mxu1 %v5476_v37  ;;  %v5489_v37 = vld [vmem:[%s7311_s1 + $0xe8] ss:$16 sps:$4 sm:$0xff]  }
  0x49   :  { %4881 = vmatprep.subr.bf16.mxu0 %v5825_v0  ;;  %4901 = vmatprep.subr.bf16.mxu1 %v5825_v0 }
  0x4c   :  { %4882 = vmatpush3.bf16.msra.mxu0 %v5477_v38  ;;  %4902 = vmatpush3.bf16.msra.mxu1 %v5478_v39  ;;  %v5490_v38 = vld [vmem:[%s7311_s1 + $0xec] ss:$16 sps:$4 sm:$0xff]  }
  0x4d   :  { %4883 = vmatprep.subr.bf16.mxu0 %v5825_v0  ;;  %4903 = vmatprep.subr.bf16.mxu1 %v5825_v0 }
  0x50   :  { %4884 = vmatpush3.bf16.msra.mxu0 %v5479_v40  ;;  %4904 = vmatpush3.bf16.msra.mxu1 %v5480_v41 }
  0x51   :  { %4885 = vmatprep.subr.bf16.mxu0 %v5825_v0  ;;  %4905 = vmatprep.subr.bf16.mxu1 %v5825_v0 }
  0x54   :  { %4886 = vmatpush3.bf16.msra.mxu0 %v5481_v42  ;;  %4906 = vmatpush3.bf16.msra.mxu1 %v5482_v43 }
  0x55   :  { %4887 = vmatprep.subr.bf16.mxu0 %v5825_v0  ;;  %4907 = vmatprep.subr.bf16.mxu1 %v5825_v0 }
  0x58   :  { %4888 = vmatpush3.bf16.msra.mxu0 %v5483_v44  ;;  %4908 = vmatpush3.bf16.msra.mxu1 %v5484_v45  ;;  %v5491_v45 = vld [vmem:[%s7311_s1 + $0xc8] ss:$16 sps:$4 sm:$0xff]  }
  0x59   :  { %4889 = vmatprep.subr.bf16.mxu0 %v5825_v0  ;;  %4909 = vmatprep.subr.bf16.mxu1 %v5825_v0 }
  0x5c   :  { %4890 = vmatpush3.bf16.msra.mxu0 %v5485_v46  ;;  %4910 = vmatpush3.bf16.msra.mxu1 %v5486_v47  ;;  %v5492_v46 = vld [vmem:[%s7311_s1 + $0xcc] ss:$16 sps:$4 sm:$0xff]  }
  0x5d   :  { %4891 = vmatprep.subr.bf16.mxu0 %v5825_v0  ;;  %4911 = vmatprep.subr.bf16.mxu1 %v5825_v0 }
  0x60   :  { %4892 = vmatpush3.bf16.msra.mxu0 %v5487_v48  ;;  %4912 = vmatpush3.bf16.msra.mxu1 %v5488_v49 }
  0x61   :  { %4917 = vmatprep.subr.bf16.mxu0 %v5825_v0  ;;  %4937 = vmatprep.subr.bf16.mxu1 %v5825_v0 }
  0xe2   :  { %v124_v51 = vpop.f32.mrf.mxu0  ;;  %v236_v53 = vpop.f32.mrf.mxu1 }
  0xe3   :  { %v237_v58 = vadd.f32 %v236_v53, %v153_v52  ;;  %v125_v60 = vadd.f32 %v124_v51, %v41_v54  ;;  %v5493_v54 = vld [vmem:[%s7311_s1 + $0xa8] ss:$16 sps:$4 sm:$0xff]  }
  0xe4   :  { %v4815_v55 = vpop.f32.mrf.mxu0  ;;  %v4835_v56 = vpop.f32.mrf.mxu1 }
  0xe5   :  { %v4186_v63 = vmul.f32 -1.442695, %v237_v58  ;;  %v4177_v1 = vmul.f32 -1.442695, %v125_v60  ;;  %v5494_v55 = vld [vmem:[%s7311_s1 + $0xac] ss:$16 sps:$4 sm:$0xff]  }
  0xe6   :  { %v127_v57 = vpop.f32.mrf.mxu0  ;;  %v239_v59 = vpop.f32.mrf.mxu1  ;;  %v5496_v58 = vld [vmem:[%s7311_s1 + $0x8c] ss:$16 sps:$4 sm:$0xff]  }
  0xe7   :  { %5697 = vpow2.f32 %v4186_v63  ;;  %v5495_v57 = vld [vmem:[%s7311_s1 + $0x88] ss:$16 sps:$4 sm:$0xff]   ;;  %v5498_v60 = vld [vmem:[%s7311_s1 + $0x6c] ss:$16 sps:$4 sm:$0xff]  }
  0xe8   :  { %v4816_v61 = vpop.f32.mrf.mxu0  ;;  %v4836_v62 = vpop.f32.mrf.mxu1  ;;  %5699 = vpow2.f32 %v4177_v1  ;;  %v5497_v59 = vld [vmem:[%s7311_s1 + $0x68] ss:$16 sps:$4 sm:$0xff]   ;;  %v5502_v1 = vld [vmem:[%s7311_s1 + $0x2c] ss:$16 sps:$4 sm:$0xff]  }
  0xe9   :  { %v5499_v61 = vld [vmem:[%s7311_s1 + $0x48] ss:$16 sps:$4 sm:$0xff]   ;;  %v5500_v62 = vld [vmem:[%s7311_s1 + $0x4c] ss:$16 sps:$4 sm:$0xff]  }
  0xea   :  { %v5501_v63 = vld [vmem:[%s7311_s1 + $0x28] ss:$16 sps:$4 sm:$0xff]  }
  0xf4   :  { %v5698_v2 = vpop.eup %5697 }
  0xf5   :  { %v5700_v4 = vpop.eup %5699  ;;  %v245_v5 = vadd.f32 1.0, %v5698_v2  ;;  %v5503_v2 = vld [vmem:[%s7311_s1 + $0x8] ss:$16 sps:$4 sm:$0xff]  }
  0xf6   :  { %v133_v7 = vadd.f32 1.0, %v5700_v4  ;;  %v5505_v4 = vld [vmem:[%s7311_s1 + $0xe0] ss:$16 sps:$4 sm:$0xff]  }
  0xf7   :  { %5701 = vrcp.f32 %v245_v5  ;;  %v5506_v5 = vld [vmem:[%s7311_s1 + $0xe4] ss:$16 sps:$4 sm:$0xff]  }
  0xf8   :  { %5703 = vrcp.f32 %v133_v7  ;;  %v5508_v7 = vld [vmem:[%s7311_s1 + $0xc4] ss:$16 sps:$4 sm:$0xff]  }
 0x102   :  { %v348_v9 = vpop.f32.mrf.mxu0  ;;  %v455_v11 = vpop.f32.mrf.mxu1 }
 0x103   :  { %v349_v10 = vadd.f32 %v348_v9, %v265_v6  ;;  %v456_v12 = vadd.f32 %v455_v11, %v372_v8  ;;  %v5507_v6 = vld [vmem:[%s7311_s1 + $0xc0] ss:$16 sps:$4 sm:$0xff]   ;;  %v5510_v9 = vld [vmem:[%s7311_s1 + $0xa4] ss:$16 sps:$4 sm:$0xff]  }
 0x104   :  { %v4855_v13 = vpop.f32.mrf.mxu0  ;;  %v4875_v14 = vpop.f32.mrf.mxu1  ;;  %v5509_v8 = vld [vmem:[%s7311_s1 + $0xa0] ss:$16 sps:$4 sm:$0xff]   ;;  %v5512_v11 = vld [vmem:[%s7311_s1 + $0x84] ss:$16 sps:$4 sm:$0xff]  }
 0x105   :  { %5705 = vtanh.f32 %v349_v10  ;;  %v4203_v15 = vmul.f32 -1.442695, %v456_v12  ;;  %v5702_v20 = vpop.eup %5701  ;;  %v5511_v10 = vld [vmem:[%s7311_s1 + $0x80] ss:$16 sps:$4 sm:$0xff]   ;;  %v5514_v13 = vld [vmem:[%s7311_s1 + $0x64] ss:$16 sps:$4 sm:$0xff]  }
 0x106   :  { %v351_v16 = vpop.f32.mrf.mxu0  ;;  %v458_v17 = vpop.f32.mrf.mxu1  ;;  %v467_v23 = vmul.f32 0.0, %v5702_v20  ;;  %v5513_v12 = vld [vmem:[%s7311_s1 + $0x60] ss:$16 sps:$4 sm:$0xff]  }
 0x107   :  { %5707 = vpow2.f32 %v4203_v15  ;;  %v5704_v21 = vpop.eup %5703  ;;  %v5515_v14 = vld [vmem:[%s7311_s1 + $0x40] ss:$16 sps:$4 sm:$0xff]   ;;  %v5516_v15 = vld [vmem:[%s7311_s1 + $0x44] ss:$16 sps:$4 sm:$0xff]  }
 0x108   :  { %v4856_v18 = vpop.f32.mrf.mxu0  ;;  %v4876_v19 = vpop.f32.mrf.mxu1  ;;  %v5517_v16 = vld [vmem:[%s7311_s1 + $0x20] ss:$16 sps:$4 sm:$0xff]   ;;  %v5518_v17 = vld [vmem:[%s7311_s1 + $0x24] ss:$16 sps:$4 sm:$0xff]  }
 0x109   :  { %v5519_v18 = vld [vmem:[%s7311_s1] ss:$16 sps:$4 sm:$0xff]   ;;  %v5520_v19 = vld [vmem:[%s7311_s1 + $0x4] ss:$16 sps:$4 sm:$0xff]  }
 0x10a   :  { %v4208_v20 = vld [vmem:[%s7312_s0 + $0x10] sm:$0xff]  }
 0x112   :  { %v5706_v22 = vpop.eup %5705 }
 0x113   :  { %v468_v24 = vmul.f32 %v5706_v22, %v5704_v21 }
 0x114   :  { %v5708_v25 = vpop.eup %5707 }
 0x115   :  { %v6066_v26 = vadd.f32 %v468_v24, %v467_v23  ;;  %v464_v27 = vadd.f32 1.0, %v5708_v25  ;;  %v669_v23 = vunpack.c.h.bf16 %v4208_v20  ;;  %v557_v24 = vunpack.c.l.bf16 %v4208_v20  ;;  %v5526_v20 = vld [vmem:[%s7311_s1 + $0xac] ss:$16 sps:$4 sm:$0xff]  }
 0x117   :  { %5709 = vtanh.f32 %v6066_v26 }
 0x118   :  { %5711 = vrcp.f32 %v464_v27 }
 0x124   :  { %v5710_v33 = vpop.eup %5709 }
 0x125   :  { %v5712_v35 = vpop.eup %5711 }
 0x126   :  { %v471_v36 = vmul.f32 %v5712_v35, %v5710_v33 }
 0x128   :  { %v473_v39 = vcombine.high %v471_v36, %v471_v36  ;;  %v480_v40 = vrot.slane %v471_v36, %v6069_v34  ;;  %v6078_v41 = vpack.c.bf16 %v471_v36, %v471_v36 }
 0x12a   :  { %v487_v42 = vrot.slane %v473_v39, %v6069_v34  ;;  %v488_v43 = vcombine.high %v480_v40, %v480_v40  ;;  %v496_v44 = vrot.slane %v480_v40, %v6069_v34  ;;  %4204 = vst.sshfl [vmem:[%s7313_s2] sm:$0x1 pattern:$0x73625140] %v480_v40  ;;  %4894 = vmatmul.mubr.bf16.vlgmr.msra.gmra.mxu0 %v6078_v41 }
 0x12b   :  { %4914 = vmatmul.mubr.bf16.vlgmr.msra.gmra.mxu1 %v6078_v41  ;;  %4918 = vmatpush3.bf16.msra.mxu0 %v5489_v37 }
 0x12c   :  { %4938 = vmatpush3.bf16.msra.mxu1 %v5490_v38  ;;  %v489_v47 = vcombine.high %v487_v42, %v487_v42  ;;  %v503_v48 = vrot.slane %v487_v42, %v6069_v34  ;;  %v510_v49 = vrot.slane %v488_v43, %v6069_v34  ;;  %v518_v50 = vcombine.high %v496_v44, %v496_v44  ;;  %v4228_v38 = vld [vmem:[%s7312_s0 + $0x18] sm:$0xff]  }
 0x12d   :  { %4205 = vst.sshfl [vmem:[%s7313_s2 + $0x8] sm:$0x1 pattern:$0x73625140] %v488_v43  ;;  %4919 = vmatprep.subr.bf16.mxu0 %v5825_v0  ;;  %4939 = vmatprep.subr.bf16.mxu1 %v5825_v0 }
 0x12e   :  { %4206 = vst.sshfl [vmem:[%s7313_s2 + $0x20] sm:$0x1 pattern:$0x73625140] %v487_v42  ;;  %4933 = vmatprep.mubr.msk.bf16.mxu0 %vm5826_vm0, %v5825_v0  ;;  %v517_v51 = vrot.slane %v489_v47, %v6069_v34  ;;  %v519_v52 = vcombine.high %v503_v48, %v503_v48  ;;  %v520_v53 = vcombine.high %v510_v49, %v510_v49  ;;  %532 = vst [vmem:[%s7313_s2 + $0x10] sm:$0x1] %v518_v50 }
 0x12f   :  { %4207 = vst.sshfl [vmem:[%s7313_s2 + $0x28] sm:$0x1 pattern:$0x73625140] %v489_v47  ;;  %4953 = vmatprep.mubr.msk.bf16.mxu1 %vm5826_vm0, %v5825_v0  ;;  %4920 = vmatpush3.bf16.msra.mxu0 %v5491_v45  ;;  %v888_v42 = vunpack.c.h.bf16 %v4228_v38 }
 0x130   :  { %4940 = vmatpush3.bf16.msra.mxu1 %v5492_v46  ;;  %v521_v56 = vcombine.high %v517_v51, %v517_v51  ;;  %533 = vst [vmem:[%s7313_s2 + $0x18] sm:$0x1] %v520_v53  ;;  %536 = vst [vmem:[%s7313_s2 + $0x30] sm:$0x1] %v519_v52  ;;  %4921 = vmatprep.subr.bf16.mxu0 %v5825_v0 }
 0x131   :  { %4941 = vmatprep.subr.bf16.mxu1 %v5825_v0 }
 0x132   :  { %537 = vst [vmem:[%s7313_s2 + $0x38] sm:$0x1] %v521_v56 }
 0x133   :  { %4922 = vmatpush3.bf16.msra.mxu0 %v5493_v54 }
 0x134   :  { %4942 = vmatpush3.bf16.msra.mxu1 %v5494_v55  ;;  %4923 = vmatprep.subr.bf16.mxu0 %v5825_v0 }
 0x135   :  { %4943 = vmatprep.subr.bf16.mxu1 %v5825_v0 }
 0x137   :  { %4924 = vmatpush3.bf16.msra.mxu0 %v5495_v57 }
 0x138   :  { %4944 = vmatpush3.bf16.msra.mxu1 %v5496_v58  ;;  %4925 = vmatprep.subr.bf16.mxu0 %v5825_v0 }
 0x139   :  { %4945 = vmatprep.subr.bf16.mxu1 %v5825_v0 }
 0x13b   :  { %4926 = vmatpush3.bf16.msra.mxu0 %v5497_v59 }
 0x13c   :  { %4946 = vmatpush3.bf16.msra.mxu1 %v5498_v60  ;;  %4927 = vmatprep.subr.bf16.mxu0 %v5825_v0 }
 0x13d   :  { %4947 = vmatprep.subr.bf16.mxu1 %v5825_v0 }
 0x13f   :  { %4928 = vmatpush3.bf16.msra.mxu0 %v5499_v61 }
 0x140   :  { %4948 = vmatpush3.bf16.msra.mxu1 %v5500_v62  ;;  %4929 = vmatprep.subr.bf16.mxu0 %v5825_v0 }
 0x141   :  { %4949 = vmatprep.subr.bf16.mxu1 %v5825_v0 }
 0x143   :  { %4930 = vmatpush3.bf16.msra.mxu0 %v5501_v63 }
 0x144   :  { %4950 = vmatpush3.bf16.msra.mxu1 %v5502_v1  ;;  %4931 = vmatprep.subr.bf16.mxu0 %v5825_v0 }
 0x145   :  { %4951 = vmatprep.subr.bf16.mxu1 %v5825_v0 }
 0x147   :  { %4932 = vmatpush3.bf16.msra.mxu0 %v5503_v2 }
 0x148   :  { %4952 = vmatpush3.bf16.msra.mxu1 %v5504_v3  ;;  %4957 = vmatprep.subr.bf16.mxu0 %v5825_v0  ;;  %v5521_v3 = vld [vmem:[%s7311_s1 + $0xe8] ss:$16 sps:$4 sm:$0xff]  }
 0x149   :  { %4977 = vmatprep.subr.bf16.mxu1 %v5825_v0 }
 0x14a   :  { %4934 = vmatmul.mubr.bf16.vlgmr.msra.gmra.mxu0 %v6078_v41 }
 0x14b   :  { %4954 = vmatmul.mubr.bf16.vlgmr.msra.gmra.mxu1 %v6078_v41  ;;  %4973 = vmatprep.mubr.msk.bf16.mxu0 %vm5826_vm0, %v5825_v0  ;;  %v781_v41 = vunpack.c.l.bf16 %v4228_v38  ;;  %v5541_v38 = vld [vmem:[%s7311_s1 + $0xa0] ss:$16 sps:$4 sm:$0xff]  }
 0x14c   :  { %4993 = vmatprep.mubr.msk.bf16.mxu1 %vm5826_vm0, %v5825_v0  ;;  %4958 = vmatpush3.bf16.msra.mxu0 %v5505_v4  ;;  %v5522_v4 = vld [vmem:[%s7311_s1 + $0xec] ss:$16 sps:$4 sm:$0xff]  }
 0x14d   :  { %4978 = vmatpush3.bf16.msra.mxu1 %v5506_v5  ;;  %4959 = vmatprep.subr.bf16.mxu0 %v5825_v0 }
 0x14e   :  { %4979 = vmatprep.subr.bf16.mxu1 %v5825_v0 }
 0x150   :  { %4960 = vmatpush3.bf16.msra.mxu0 %v5507_v6 }
 0x151   :  { %4980 = vmatpush3.bf16.msra.mxu1 %v5508_v7  ;;  %4961 = vmatprep.subr.bf16.mxu0 %v5825_v0 }
 0x152   :  { %4981 = vmatprep.subr.bf16.mxu1 %v5825_v0 }
 0x154   :  { %4962 = vmatpush3.bf16.msra.mxu0 %v5509_v8 }
 0x155   :  { %4982 = vmatpush3.bf16.msra.mxu1 %v5510_v9  ;;  %4963 = vmatprep.subr.bf16.mxu0 %v5825_v0 }
 0x156   :  { %4983 = vmatprep.subr.bf16.mxu1 %v5825_v0 }
 0x158   :  { %4964 = vmatpush3.bf16.msra.mxu0 %v5511_v10  ;;  %v5523_v10 = vld [vmem:[%s7311_s1 + $0xc8] ss:$16 sps:$4 sm:$0xff]  }
 0x159   :  { %4984 = vmatpush3.bf16.msra.mxu1 %v5512_v11  ;;  %4965 = vmatprep.subr.bf16.mxu0 %v5825_v0  ;;  %v5524_v11 = vld [vmem:[%s7311_s1 + $0xcc] ss:$16 sps:$4 sm:$0xff]  }
 0x15a   :  { %4985 = vmatprep.subr.bf16.mxu1 %v5825_v0 }
 0x15c   :  { %4966 = vmatpush3.bf16.msra.mxu0 %v5513_v12 }
 0x15d   :  { %4986 = vmatpush3.bf16.msra.mxu1 %v5514_v13  ;;  %4967 = vmatprep.subr.bf16.mxu0 %v5825_v0 }
 0x15e   :  { %4987 = vmatprep.subr.bf16.mxu1 %v5825_v0 }
 0x160   :  { %4968 = vmatpush3.bf16.msra.mxu0 %v5515_v14 }
 0x161   :  { %4988 = vmatpush3.bf16.msra.mxu1 %v5516_v15  ;;  %4969 = vmatprep.subr.bf16.mxu0 %v5825_v0 }
 0x162   :  { %4989 = vmatprep.subr.bf16.mxu1 %v5825_v0 }
 0x164   :  { %4970 = vmatpush3.bf16.msra.mxu0 %v5517_v16 }
 0x165   :  { %4990 = vmatpush3.bf16.msra.mxu1 %v5518_v17  ;;  %4971 = vmatprep.subr.bf16.mxu0 %v5825_v0 }
 0x166   :  { %4991 = vmatprep.subr.bf16.mxu1 %v5825_v0 }
 0x168   :  { %4972 = vmatpush3.bf16.msra.mxu0 %v5519_v18 }
 0x169   :  { %4992 = vmatpush3.bf16.msra.mxu1 %v5520_v19  ;;  %4997 = vmatprep.subr.bf16.mxu0 %v5825_v0  ;;  %v5525_v19 = vld [vmem:[%s7311_s1 + $0xa8] ss:$16 sps:$4 sm:$0xff]  }
 0x16a   :  { %5017 = vmatprep.subr.bf16.mxu1 %v5825_v0 }
 0x1ea   :  { %v640_v21 = vpop.f32.mrf.mxu0 }
 0x1eb   :  { %v752_v22 = vpop.f32.mrf.mxu1  ;;  %v641_v31 = vadd.f32 %v640_v21, %v557_v24  ;;  %v5529_v24 = vld [vmem:[%s7311_s1 + $0x68] ss:$16 sps:$4 sm:$0xff]  }
 0x1ec   :  { %v4895_v25 = vpop.f32.mrf.mxu0  ;;  %v753_v30 = vadd.f32 %v752_v22, %v669_v23  ;;  %v5527_v22 = vld [vmem:[%s7311_s1 + $0x88] ss:$16 sps:$4 sm:$0xff]   ;;  %v5528_v23 = vld [vmem:[%s7311_s1 + $0x8c] ss:$16 sps:$4 sm:$0xff]  }
 0x1ed   :  { %v4915_v27 = vpop.f32.mrf.mxu1  ;;  %v4217_v36 = vmul.f32 -1.442695, %v641_v31  ;;  %v5530_v25 = vld [vmem:[%s7311_s1 + $0x6c] ss:$16 sps:$4 sm:$0xff]   ;;  %v5535_v31 = vld [vmem:[%s7311_s1 + $0x8] ss:$16 sps:$4 sm:$0xff]  }
 0x1ee   :  { %v643_v28 = vpop.f32.mrf.mxu0  ;;  %v4227_v35 = vmul.f32 -1.442695, %v753_v30  ;;  %v5531_v27 = vld [vmem:[%s7311_s1 + $0x48] ss:$16 sps:$4 sm:$0xff]   ;;  %v5534_v30 = vld [vmem:[%s7311_s1 + $0x2c] ss:$16 sps:$4 sm:$0xff]  }
 0x1ef   :  { %v755_v29 = vpop.f32.mrf.mxu1  ;;  %v5532_v28 = vld [vmem:[%s7311_s1 + $0x4c] ss:$16 sps:$4 sm:$0xff]  }
 0x1f0   :  { %v4896_v32 = vpop.f32.mrf.mxu0  ;;  %5713 = vpow2.f32 %v4227_v35  ;;  %v5533_v29 = vld [vmem:[%s7311_s1 + $0x28] ss:$16 sps:$4 sm:$0xff]   ;;  %v5538_v35 = vld [vmem:[%s7311_s1 + $0xe4] ss:$16 sps:$4 sm:$0xff]  }
 0x1f1   :  { %v4916_v33 = vpop.f32.mrf.mxu1  ;;  %5715 = vpow2.f32 %v4217_v36  ;;  %v5536_v32 = vld [vmem:[%s7311_s1 + $0xc] ss:$16 sps:$4 sm:$0xff]   ;;  %v5539_v36 = vld [vmem:[%s7311_s1 + $0xc0] ss:$16 sps:$4 sm:$0xff]  }
 0x1f2   :  { %v5537_v33 = vld [vmem:[%s7311_s1 + $0xe0] ss:$16 sps:$4 sm:$0xff]  }
 0x1fd   :  { %v5714_v37 = vpop.eup %5713 }
 0x1fe   :  { %v5716_v39 = vpop.eup %5715  ;;  %v761_v40 = vadd.f32 1.0, %v5714_v37  ;;  %v5540_v37 = vld [vmem:[%s7311_s1 + $0xc4] ss:$16 sps:$4 sm:$0xff]  }
 0x1ff   :  { %v649_v43 = vadd.f32 1.0, %v5716_v39  ;;  %v5542_v39 = vld [vmem:[%s7311_s1 + $0xa4] ss:$16 sps:$4 sm:$0xff]  }
 0x200   :  { %5717 = vrcp.f32 %v761_v40  ;;  %v5543_v40 = vld [vmem:[%s7311_s1 + $0x80] ss:$16 sps:$4 sm:$0xff]  }
 0x201   :  { %5719 = vrcp.f32 %v649_v43  ;;  %v5546_v43 = vld [vmem:[%s7311_s1 + $0x64] ss:$16 sps:$4 sm:$0xff]  }
 0x20a   :  { %v864_v44 = vpop.f32.mrf.mxu0 }
 0x20b   :  { %v971_v45 = vpop.f32.mrf.mxu1  ;;  %v865_v46 = vadd.f32 %v864_v44, %v781_v41  ;;  %v5544_v41 = vld [vmem:[%s7311_s1 + $0x84] ss:$16 sps:$4 sm:$0xff]   ;;  %v5547_v44 = vld [vmem:[%s7311_s1 + $0x40] ss:$16 sps:$4 sm:$0xff]  }
 0x20c   :  { %v972_v47 = vadd.f32 %v971_v45, %v888_v42  ;;  %v4935_v48 = vpop.f32.mrf.mxu0  ;;  %v5545_v42 = vld [vmem:[%s7311_s1 + $0x60] ss:$16 sps:$4 sm:$0xff]   ;;  %v5548_v45 = vld [vmem:[%s7311_s1 + $0x44] ss:$16 sps:$4 sm:$0xff]  }
 0x20d   :  { %v4955_v49 = vpop.f32.mrf.mxu1  ;;  %5721 = vtanh.f32 %v865_v46  ;;  %v5718_v55 = vpop.eup %5717  ;;  %v5549_v46 = vld [vmem:[%s7311_s1 + $0x20] ss:$16 sps:$4 sm:$0xff]  }
 0x20e   :  { %v4246_v50 = vmul.f32 -1.442695, %v972_v47  ;;  %v867_v51 = vpop.f32.mrf.mxu0  ;;  %v5720_v56 = vpop.eup %5719  ;;  %v983_v58 = vmul.f32 %v5718_v55, %v6066_v26  ;;  %v5550_v47 = vld [vmem:[%s7311_s1 + $0x24] ss:$16 sps:$4 sm:$0xff]   ;;  %v5551_v48 = vld [vmem:[%s7311_s1] ss:$16 sps:$4 sm:$0xff]  }
 0x20f   :  { %v974_v52 = vpop.f32.mrf.mxu1  ;;  %v5552_v49 = vld [vmem:[%s7311_s1 + $0x4] ss:$16 sps:$4 sm:$0xff]  }
 0x210   :  { %5723 = vpow2.f32 %v4246_v50  ;;  %v4936_v53 = vpop.f32.mrf.mxu0  ;;  %v4251_v50 = vld [vmem:[%s7312_s0 + $0x20] sm:$0xff]  }
 0x211   :  { %v4956_v54 = vpop.f32.mrf.mxu1  ;;  %v1185_v53 = vunpack.c.h.bf16 %v4251_v50 }
 0x212   :  { %v1073_v54 = vunpack.c.l.bf16 %v4251_v50  ;;  %v5558_v50 = vld [vmem:[%s7311_s1 + $0xac] ss:$16 sps:$4 sm:$0xff]  }
 0x21a   :  { %v5722_v57 = vpop.eup %5721 }
 0x21b   :  { %v984_v59 = vmul.f32 %v5722_v57, %v5720_v56 }
 0x21d   :  { %v5724_v60 = vpop.eup %5723  ;;  %v6250_v61 = vadd.f32 %v984_v59, %v983_v58 }
 0x21e   :  { %v980_v62 = vadd.f32 1.0, %v5724_v60 }
 0x21f   :  { %5725 = vtanh.f32 %v6250_v61 }
 0x220   :  { %5727 = vrcp.f32 %v980_v62 }
 0x22c   :  { %v5726_v63 = vpop.eup %5725 }
 0x22d   :  { %v5728_v1 = vpop.eup %5727 }
 0x22e   :  { %v987_v2 = vmul.f32 %v5728_v1, %v5726_v63 }
 0x230   :  { %v989_v26 = vcombine.high %v987_v2, %v987_v2  ;;  %v996_v5 = vrot.slane %v987_v2, %v6069_v34  ;;  %v6260_v6 = vpack.c.bf16 %v987_v2, %v987_v2 }
 0x232   :  { %v1003_v7 = vrot.slane %v989_v26, %v6069_v34  ;;  %v1004_v8 = vcombine.high %v996_v5, %v996_v5  ;;  %v1012_v9 = vrot.slane %v996_v5, %v6069_v34  ;;  %4247 = vst.sshfl [vmem:[%s7313_s2 + $0x1] sm:$0x1 pattern:$0x73625140] %v996_v5  ;;  %4974 = vmatmul.mubr.bf16.vlgmr.msra.gmra.mxu0 %v6260_v6 }
 0x233   :  { %4994 = vmatmul.mubr.bf16.vlgmr.msra.gmra.mxu1 %v6260_v6  ;;  %4998 = vmatpush3.bf16.msra.mxu0 %v5521_v3 }
 0x234   :  { %5018 = vmatpush3.bf16.msra.mxu1 %v5522_v4  ;;  %v1005_v12 = vcombine.high %v1003_v7, %v1003_v7  ;;  %v1019_v13 = vrot.slane %v1003_v7, %v6069_v34  ;;  %v1026_v14 = vrot.slane %v1004_v8, %v6069_v34  ;;  %v1034_v15 = vcombine.high %v1012_v9, %v1012_v9  ;;  %v4271_v4 = vld [vmem:[%s7312_s0 + $0x28] sm:$0xff]  }
 0x235   :  { %4248 = vst.sshfl [vmem:[%s7313_s2 + $0x9] sm:$0x1 pattern:$0x73625140] %v1004_v8  ;;  %4999 = vmatprep.subr.bf16.mxu0 %v5825_v0  ;;  %5019 = vmatprep.subr.bf16.mxu1 %v5825_v0 }
 0x236   :  { %4249 = vst.sshfl [vmem:[%s7313_s2 + $0x21] sm:$0x1 pattern:$0x73625140] %v1003_v7  ;;  %5013 = vmatprep.mubr.msk.bf16.mxu0 %vm5826_vm0, %v5825_v0  ;;  %v1033_v16 = vrot.slane %v1005_v12, %v6069_v34  ;;  %v1035_v17 = vcombine.high %v1019_v13, %v1019_v13  ;;  %v1036_v18 = vcombine.high %v1026_v14, %v1026_v14  ;;  %1048 = vst [vmem:[%s7313_s2 + $0x11] sm:$0x1] %v1034_v15 }
 0x237   :  { %4250 = vst.sshfl [vmem:[%s7313_s2 + $0x29] sm:$0x1 pattern:$0x73625140] %v1005_v12  ;;  %5033 = vmatprep.mubr.msk.bf16.mxu1 %vm5826_vm0, %v5825_v0  ;;  %5000 = vmatpush3.bf16.msra.mxu0 %v5523_v10  ;;  %v1404_v7 = vunpack.c.h.bf16 %v4271_v4 }
 0x238   :  { %5020 = vmatpush3.bf16.msra.mxu1 %v5524_v11  ;;  %v1037_v21 = vcombine.high %v1033_v16, %v1033_v16  ;;  %1049 = vst [vmem:[%s7313_s2 + $0x19] sm:$0x1] %v1036_v18  ;;  %1052 = vst [vmem:[%s7313_s2 + $0x31] sm:$0x1] %v1035_v17  ;;  %5001 = vmatprep.subr.bf16.mxu0 %v5825_v0 }
 0x239   :  { %5021 = vmatprep.subr.bf16.mxu1 %v5825_v0 }
 0x23a   :  { %1053 = vst [vmem:[%s7313_s2 + $0x39] sm:$0x1] %v1037_v21 }
 0x23b   :  { %5002 = vmatpush3.bf16.msra.mxu0 %v5525_v19 }
 0x23c   :  { %5022 = vmatpush3.bf16.msra.mxu1 %v5526_v20  ;;  %5003 = vmatprep.subr.bf16.mxu0 %v5825_v0 }
 0x23d   :  { %5023 = vmatprep.subr.bf16.mxu1 %v5825_v0 }
 0x23f   :  { %5004 = vmatpush3.bf16.msra.mxu0 %v5527_v22 }
 0x240   :  { %5024 = vmatpush3.bf16.msra.mxu1 %v5528_v23  ;;  %5005 = vmatprep.subr.bf16.mxu0 %v5825_v0 }
 0x241   :  { %5025 = vmatprep.subr.bf16.mxu1 %v5825_v0 }
 0x243   :  { %5006 = vmatpush3.bf16.msra.mxu0 %v5529_v24 }
 0x244   :  { %5026 = vmatpush3.bf16.msra.mxu1 %v5530_v25  ;;  %5007 = vmatprep.subr.bf16.mxu0 %v5825_v0 }
 0x245   :  { %5027 = vmatprep.subr.bf16.mxu1 %v5825_v0 }
 0x247   :  { %5008 = vmatpush3.bf16.msra.mxu0 %v5531_v27 }
 0x248   :  { %5028 = vmatpush3.bf16.msra.mxu1 %v5532_v28  ;;  %5009 = vmatprep.subr.bf16.mxu0 %v5825_v0 }
 0x249   :  { %5029 = vmatprep.subr.bf16.mxu1 %v5825_v0 }
 0x24b   :  { %5010 = vmatpush3.bf16.msra.mxu0 %v5533_v29 }
 0x24c   :  { %5030 = vmatpush3.bf16.msra.mxu1 %v5534_v30  ;;  %5011 = vmatprep.subr.bf16.mxu0 %v5825_v0 }
 0x24d   :  { %5031 = vmatprep.subr.bf16.mxu1 %v5825_v0 }
 0x24f   :  { %5012 = vmatpush3.bf16.msra.mxu0 %v5535_v31 }
 0x250   :  { %5032 = vmatpush3.bf16.msra.mxu1 %v5536_v32  ;;  %5037 = vmatprep.subr.bf16.mxu0 %v5825_v0  ;;  %v5553_v32 = vld [vmem:[%s7311_s1 + $0xe8] ss:$16 sps:$4 sm:$0xff]  }
 0x251   :  { %5057 = vmatprep.subr.bf16.mxu1 %v5825_v0 }
 0x252   :  { %5014 = vmatmul.mubr.bf16.vlgmr.msra.gmra.mxu0 %v6260_v6 }
 0x253   :  { %5034 = vmatmul.mubr.bf16.vlgmr.msra.gmra.mxu1 %v6260_v6  ;;  %5053 = vmatprep.mubr.msk.bf16.mxu0 %vm5826_vm0, %v5825_v0  ;;  %v1297_v6 = vunpack.c.l.bf16 %v4271_v4  ;;  %v5573_v4 = vld [vmem:[%s7311_s1 + $0xa0] ss:$16 sps:$4 sm:$0xff]  }
 0x254   :  { %5073 = vmatprep.mubr.msk.bf16.mxu1 %vm5826_vm0, %v5825_v0  ;;  %5038 = vmatpush3.bf16.msra.mxu0 %v5537_v33  ;;  %v5554_v33 = vld [vmem:[%s7311_s1 + $0xec] ss:$16 sps:$4 sm:$0xff]  }
 0x255   :  { %5058 = vmatpush3.bf16.msra.mxu1 %v5538_v35  ;;  %5039 = vmatprep.subr.bf16.mxu0 %v5825_v0 }
 0x256   :  { %5059 = vmatprep.subr.bf16.mxu1 %v5825_v0 }
 0x258   :  { %5040 = vmatpush3.bf16.msra.mxu0 %v5539_v36 }
 0x259   :  { %5060 = vmatpush3.bf16.msra.mxu1 %v5540_v37  ;;  %5041 = vmatprep.subr.bf16.mxu0 %v5825_v0 }
 0x25a   :  { %5061 = vmatprep.subr.bf16.mxu1 %v5825_v0 }
 0x25c   :  { %5042 = vmatpush3.bf16.msra.mxu0 %v5541_v38 }
 0x25d   :  { %5062 = vmatpush3.bf16.msra.mxu1 %v5542_v39  ;;  %5043 = vmatprep.subr.bf16.mxu0 %v5825_v0 }
 0x25e   :  { %5063 = vmatprep.subr.bf16.mxu1 %v5825_v0 }
 0x260   :  { %5044 = vmatpush3.bf16.msra.mxu0 %v5543_v40  ;;  %v5555_v40 = vld [vmem:[%s7311_s1 + $0xc8] ss:$16 sps:$4 sm:$0xff]  }
 0x261   :  { %5064 = vmatpush3.bf16.msra.mxu1 %v5544_v41  ;;  %5045 = vmatprep.subr.bf16.mxu0 %v5825_v0  ;;  %v5556_v41 = vld [vmem:[%s7311_s1 + $0xcc] ss:$16 sps:$4 sm:$0xff]  }
 0x262   :  { %5065 = vmatprep.subr.bf16.mxu1 %v5825_v0 }
 0x264   :  { %5046 = vmatpush3.bf16.msra.mxu0 %v5545_v42 }
 0x265   :  { %5066 = vmatpush3.bf16.msra.mxu1 %v5546_v43  ;;  %5047 = vmatprep.subr.bf16.mxu0 %v5825_v0 }
 0x266   :  { %5067 = vmatprep.subr.bf16.mxu1 %v5825_v0 }
 0x268   :  { %5048 = vmatpush3.bf16.msra.mxu0 %v5547_v44 }
 0x269   :  { %5068 = vmatpush3.bf16.msra.mxu1 %v5548_v45  ;;  %5049 = vmatprep.subr.bf16.mxu0 %v5825_v0 }
 0x26a   :  { %5069 = vmatprep.subr.bf16.mxu1 %v5825_v0 }
 0x26c   :  { %5050 = vmatpush3.bf16.msra.mxu0 %v5549_v46 }
 0x26d   :  { %5070 = vmatpush3.bf16.msra.mxu1 %v5550_v47  ;;  %5051 = vmatprep.subr.bf16.mxu0 %v5825_v0 }
 0x26e   :  { %5071 = vmatprep.subr.bf16.mxu1 %v5825_v0 }
 0x270   :  { %5052 = vmatpush3.bf16.msra.mxu0 %v5551_v48 }
 0x271   :  { %5072 = vmatpush3.bf16.msra.mxu1 %v5552_v49  ;;  %5077 = vmatprep.subr.bf16.mxu0 %v5825_v0  ;;  %v5557_v49 = vld [vmem:[%s7311_s1 + $0xa8] ss:$16 sps:$4 sm:$0xff]  }
 0x272   :  { %5097 = vmatprep.subr.bf16.mxu1 %v5825_v0 }
 0x2f2   :  { %v1156_v51 = vpop.f32.mrf.mxu0 }
 0x2f3   :  { %v1268_v52 = vpop.f32.mrf.mxu1  ;;  %v1157_v60 = vadd.f32 %v1156_v51, %v1073_v54  ;;  %v5561_v54 = vld [vmem:[%s7311_s1 + $0x68] ss:$16 sps:$4 sm:$0xff]  }
 0x2f4   :  { %v4975_v55 = vpop.f32.mrf.mxu0  ;;  %v1269_v59 = vadd.f32 %v1268_v52, %v1185_v53  ;;  %v5559_v52 = vld [vmem:[%s7311_s1 + $0x88] ss:$16 sps:$4 sm:$0xff]   ;;  %v5560_v53 = vld [vmem:[%s7311_s1 + $0x8c] ss:$16 sps:$4 sm:$0xff]  }
 0x2f5   :  { %v4995_v56 = vpop.f32.mrf.mxu1  ;;  %v4260_v2 = vmul.f32 -1.442695, %v1157_v60  ;;  %v5562_v55 = vld [vmem:[%s7311_s1 + $0x6c] ss:$16 sps:$4 sm:$0xff]   ;;  %v5567_v60 = vld [vmem:[%s7311_s1 + $0x8] ss:$16 sps:$4 sm:$0xff]  }
 0x2f6   :  { %v1159_v57 = vpop.f32.mrf.mxu0  ;;  %v4270_v1 = vmul.f32 -1.442695, %v1269_v59  ;;  %v5563_v56 = vld [vmem:[%s7311_s1 + $0x48] ss:$16 sps:$4 sm:$0xff]   ;;  %v5566_v59 = vld [vmem:[%s7311_s1 + $0x2c] ss:$16 sps:$4 sm:$0xff]  }
 0x2f7   :  { %v1271_v58 = vpop.f32.mrf.mxu1  ;;  %v5564_v57 = vld [vmem:[%s7311_s1 + $0x4c] ss:$16 sps:$4 sm:$0xff]  }
 0x2f8   :  { %v4976_v62 = vpop.f32.mrf.mxu0  ;;  %5729 = vpow2.f32 %v4270_v1  ;;  %v5565_v58 = vld [vmem:[%s7311_s1 + $0x28] ss:$16 sps:$4 sm:$0xff]   ;;  %v5570_v1 = vld [vmem:[%s7311_s1 + $0xe4] ss:$16 sps:$4 sm:$0xff]  }
 0x2f9   :  { %v4996_v63 = vpop.f32.mrf.mxu1  ;;  %5731 = vpow2.f32 %v4260_v2  ;;  %v5568_v62 = vld [vmem:[%s7311_s1 + $0xc] ss:$16 sps:$4 sm:$0xff]   ;;  %v5571_v2 = vld [vmem:[%s7311_s1 + $0xc0] ss:$16 sps:$4 sm:$0xff]  }
 0x2fa   :  { %v5569_v63 = vld [vmem:[%s7311_s1 + $0xe0] ss:$16 sps:$4 sm:$0xff]  }
 0x305   :  { %v5730_v3 = vpop.eup %5729 }
 0x306   :  { %v5732_v26 = vpop.eup %5731  ;;  %v1277_v5 = vadd.f32 1.0, %v5730_v3  ;;  %v5572_v3 = vld [vmem:[%s7311_s1 + $0xc4] ss:$16 sps:$4 sm:$0xff]  }
 0x307   :  { %v1165_v8 = vadd.f32 1.0, %v5732_v26  ;;  %v5574_v26 = vld [vmem:[%s7311_s1 + $0xa4] ss:$16 sps:$4 sm:$0xff]  }
 0x308   :  { %5733 = vrcp.f32 %v1277_v5  ;;  %v5575_v5 = vld [vmem:[%s7311_s1 + $0x80] ss:$16 sps:$4 sm:$0xff]  }
 0x309   :  { %5735 = vrcp.f32 %v1165_v8  ;;  %v5578_v8 = vld [vmem:[%s7311_s1 + $0x64] ss:$16 sps:$4 sm:$0xff]  }
 0x312   :  { %v1380_v9 = vpop.f32.mrf.mxu0 }
 0x313   :  { %v1487_v10 = vpop.f32.mrf.mxu1  ;;  %v1381_v11 = vadd.f32 %v1380_v9, %v1297_v6  ;;  %v5576_v6 = vld [vmem:[%s7311_s1 + $0x84] ss:$16 sps:$4 sm:$0xff]   ;;  %v5579_v9 = vld [vmem:[%s7311_s1 + $0x40] ss:$16 sps:$4 sm:$0xff]  }
 0x314   :  { %v1488_v12 = vadd.f32 %v1487_v10, %v1404_v7  ;;  %v5015_v13 = vpop.f32.mrf.mxu0  ;;  %v5577_v7 = vld [vmem:[%s7311_s1 + $0x60] ss:$16 sps:$4 sm:$0xff]   ;;  %v5580_v10 = vld [vmem:[%s7311_s1 + $0x44] ss:$16 sps:$4 sm:$0xff]  }
 0x315   :  { %v5035_v14 = vpop.f32.mrf.mxu1  ;;  %5737 = vtanh.f32 %v1381_v11  ;;  %v5734_v20 = vpop.eup %5733  ;;  %v5581_v11 = vld [vmem:[%s7311_s1 + $0x20] ss:$16 sps:$4 sm:$0xff]  }
 0x316   :  { %v4289_v15 = vmul.f32 -1.442695, %v1488_v12  ;;  %v1383_v16 = vpop.f32.mrf.mxu0  ;;  %v5736_v21 = vpop.eup %5735  ;;  %v1499_v23 = vmul.f32 %v5734_v20, %v6250_v61  ;;  %v5582_v12 = vld [vmem:[%s7311_s1 + $0x24] ss:$16 sps:$4 sm:$0xff]   ;;  %v5583_v13 = vld [vmem:[%s7311_s1] ss:$16 sps:$4 sm:$0xff]  }
 0x317   :  { %v1490_v17 = vpop.f32.mrf.mxu1  ;;  %v5584_v14 = vld [vmem:[%s7311_s1 + $0x4] ss:$16 sps:$4 sm:$0xff]  }
 0x318   :  { %5739 = vpow2.f32 %v4289_v15  ;;  %v5016_v18 = vpop.f32.mrf.mxu0  ;;  %v4294_v15 = vld [vmem:[%s7312_s0 + $0x30] sm:$0xff]  }
 0x319   :  { %v5036_v19 = vpop.f32.mrf.mxu1  ;;  %v1701_v18 = vunpack.c.h.bf16 %v4294_v15 }
 0x31a   :  { %v1589_v19 = vunpack.c.l.bf16 %v4294_v15  ;;  %v5590_v15 = vld [vmem:[%s7311_s1 + $0xac] ss:$16 sps:$4 sm:$0xff]  }
 0x322   :  { %v5738_v22 = vpop.eup %5737 }
 0x323   :  { %v1500_v24 = vmul.f32 %v5738_v22, %v5736_v21 }
 0x325   :  { %v5740_v25 = vpop.eup %5739  ;;  %v6432_v27 = vadd.f32 %v1500_v24, %v1499_v23 }
 0x326   :  { %v1496_v28 = vadd.f32 1.0, %v5740_v25 }
 0x327   :  { %5741 = vtanh.f32 %v6432_v27 }
 0x328   :  { %5743 = vrcp.f32 %v1496_v28 }
 0x334   :  { %v5742_v29 = vpop.eup %5741 }
 0x335   :  { %v5744_v30 = vpop.eup %5743 }
 0x336   :  { %v1503_v31 = vmul.f32 %v5744_v30, %v5742_v29 }
 0x338   :  { %v1505_v61 = vcombine.high %v1503_v31, %v1503_v31  ;;  %v1512_v35 = vrot.slane %v1503_v31, %v6069_v34  ;;  %v6442_v36 = vpack.c.bf16 %v1503_v31, %v1503_v31 }
 0x33a   :  { %v1519_v37 = vrot.slane %v1505_v61, %v6069_v34  ;;  %v1520_v38 = vcombine.high %v1512_v35, %v1512_v35  ;;  %v1528_v39 = vrot.slane %v1512_v35, %v6069_v34  ;;  %4290 = vst.sshfl [vmem:[%s7313_s2 + $0x2] sm:$0x1 pattern:$0x73625140] %v1512_v35  ;;  %5054 = vmatmul.mubr.bf16.vlgmr.msra.gmra.mxu0 %v6442_v36 }
 0x33b   :  { %5074 = vmatmul.mubr.bf16.vlgmr.msra.gmra.mxu1 %v6442_v36  ;;  %5078 = vmatpush3.bf16.msra.mxu0 %v5553_v32 }
 0x33c   :  { %5098 = vmatpush3.bf16.msra.mxu1 %v5554_v33  ;;  %v1521_v42 = vcombine.high %v1519_v37, %v1519_v37  ;;  %v1535_v43 = vrot.slane %v1519_v37, %v6069_v34  ;;  %v1542_v44 = vrot.slane %v1520_v38, %v6069_v34  ;;  %v1550_v45 = vcombine.high %v1528_v39, %v1528_v39  ;;  %v4314_v33 = vld [vmem:[%s7312_s0 + $0x38] sm:$0xff]  }
 0x33d   :  { %4291 = vst.sshfl [vmem:[%s7313_s2 + $0xa] sm:$0x1 pattern:$0x73625140] %v1520_v38  ;;  %5079 = vmatprep.subr.bf16.mxu0 %v5825_v0  ;;  %5099 = vmatprep.subr.bf16.mxu1 %v5825_v0 }
 0x33e   :  { %4292 = vst.sshfl [vmem:[%s7313_s2 + $0x22] sm:$0x1 pattern:$0x73625140] %v1519_v37  ;;  %5093 = vmatprep.mubr.msk.bf16.mxu0 %vm5826_vm0, %v5825_v0  ;;  %v1549_v46 = vrot.slane %v1521_v42, %v6069_v34  ;;  %v1551_v47 = vcombine.high %v1535_v43, %v1535_v43  ;;  %v1552_v48 = vcombine.high %v1542_v44, %v1542_v44  ;;  %1564 = vst [vmem:[%s7313_s2 + $0x12] sm:$0x1] %v1550_v45 }
 0x33f   :  { %4293 = vst.sshfl [vmem:[%s7313_s2 + $0x2a] sm:$0x1 pattern:$0x73625140] %v1521_v42  ;;  %5113 = vmatprep.mubr.msk.bf16.mxu1 %vm5826_vm0, %v5825_v0  ;;  %5080 = vmatpush3.bf16.msra.mxu0 %v5555_v40  ;;  %v1920_v37 = vunpack.c.h.bf16 %v4314_v33 }
 0x340   :  { %5100 = vmatpush3.bf16.msra.mxu1 %v5556_v41  ;;  %v1553_v51 = vcombine.high %v1549_v46, %v1549_v46  ;;  %1565 = vst [vmem:[%s7313_s2 + $0x1a] sm:$0x1] %v1552_v48  ;;  %1568 = vst [vmem:[%s7313_s2 + $0x32] sm:$0x1] %v1551_v47  ;;  %5081 = vmatprep.subr.bf16.mxu0 %v5825_v0 }
 0x341   :  { %5101 = vmatprep.subr.bf16.mxu1 %v5825_v0 }
 0x342   :  { %1569 = vst [vmem:[%s7313_s2 + $0x3a] sm:$0x1] %v1553_v51 }
 0x343   :  { %5082 = vmatpush3.bf16.msra.mxu0 %v5557_v49 }
 0x344   :  { %5102 = vmatpush3.bf16.msra.mxu1 %v5558_v50  ;;  %5083 = vmatprep.subr.bf16.mxu0 %v5825_v0 }
 0x345   :  { %5103 = vmatprep.subr.bf16.mxu1 %v5825_v0 }
 0x347   :  { %5084 = vmatpush3.bf16.msra.mxu0 %v5559_v52 }
 0x348   :  { %5104 = vmatpush3.bf16.msra.mxu1 %v5560_v53  ;;  %5085 = vmatprep.subr.bf16.mxu0 %v5825_v0 }
 0x349   :  { %5105 = vmatprep.subr.bf16.mxu1 %v5825_v0 }
 0x34b   :  { %5086 = vmatpush3.bf16.msra.mxu0 %v5561_v54 }
 0x34c   :  { %5106 = vmatpush3.bf16.msra.mxu1 %v5562_v55  ;;  %5087 = vmatprep.subr.bf16.mxu0 %v5825_v0 }
 0x34d   :  { %5107 = vmatprep.subr.bf16.mxu1 %v5825_v0 }
 0x34f   :  { %5088 = vmatpush3.bf16.msra.mxu0 %v5563_v56 }
 0x350   :  { %5108 = vmatpush3.bf16.msra.mxu1 %v5564_v57  ;;  %5089 = vmatprep.subr.bf16.mxu0 %v5825_v0 }
 0x351   :  { %5109 = vmatprep.subr.bf16.mxu1 %v5825_v0 }
 0x353   :  { %5090 = vmatpush3.bf16.msra.mxu0 %v5565_v58 }
 0x354   :  { %5110 = vmatpush3.bf16.msra.mxu1 %v5566_v59  ;;  %5091 = vmatprep.subr.bf16.mxu0 %v5825_v0 }
 0x355   :  { %5111 = vmatprep.subr.bf16.mxu1 %v5825_v0 }
 0x357   :  { %5092 = vmatpush3.bf16.msra.mxu0 %v5567_v60 }
 0x358   :  { %5112 = vmatpush3.bf16.msra.mxu1 %v5568_v62  ;;  %5117 = vmatprep.subr.bf16.mxu0 %v5825_v0  ;;  %v5585_v62 = vld [vmem:[%s7311_s1 + $0xe8] ss:$16 sps:$4 sm:$0xff]  }
 0x359   :  { %5137 = vmatprep.subr.bf16.mxu1 %v5825_v0 }
 0x35a   :  { %5094 = vmatmul.mubr.bf16.vlgmr.msra.gmra.mxu0 %v6442_v36 }
 0x35b   :  { %5114 = vmatmul.mubr.bf16.vlgmr.msra.gmra.mxu1 %v6442_v36  ;;  %5133 = vmatprep.mubr.msk.bf16.mxu0 %vm5826_vm0, %v5825_v0  ;;  %v1813_v36 = vunpack.c.l.bf16 %v4314_v33  ;;  %v5605_v33 = vld [vmem:[%s7311_s1 + $0xa0] ss:$16 sps:$4 sm:$0xff]  }
 0x35c   :  { %5153 = vmatprep.mubr.msk.bf16.mxu1 %vm5826_vm0, %v5825_v0  ;;  %5118 = vmatpush3.bf16.msra.mxu0 %v5569_v63  ;;  %v5586_v63 = vld [vmem:[%s7311_s1 + $0xec] ss:$16 sps:$4 sm:$0xff]  }
 0x35d   :  { %5138 = vmatpush3.bf16.msra.mxu1 %v5570_v1  ;;  %5119 = vmatprep.subr.bf16.mxu0 %v5825_v0 }
 0x35e   :  { %5139 = vmatprep.subr.bf16.mxu1 %v5825_v0 }
 0x360   :  { %5120 = vmatpush3.bf16.msra.mxu0 %v5571_v2 }
 0x361   :  { %5140 = vmatpush3.bf16.msra.mxu1 %v5572_v3  ;;  %5121 = vmatprep.subr.bf16.mxu0 %v5825_v0 }
 0x362   :  { %5141 = vmatprep.subr.bf16.mxu1 %v5825_v0 }
 0x364   :  { %5122 = vmatpush3.bf16.msra.mxu0 %v5573_v4 }
 0x365   :  { %5142 = vmatpush3.bf16.msra.mxu1 %v5574_v26  ;;  %5123 = vmatprep.subr.bf16.mxu0 %v5825_v0 }
 0x366   :  { %5143 = vmatprep.subr.bf16.mxu1 %v5825_v0 }
 0x368   :  { %5124 = vmatpush3.bf16.msra.mxu0 %v5575_v5  ;;  %v5587_v5 = vld [vmem:[%s7311_s1 + $0xc8] ss:$16 sps:$4 sm:$0xff]  }
 0x369   :  { %5144 = vmatpush3.bf16.msra.mxu1 %v5576_v6  ;;  %5125 = vmatprep.subr.bf16.mxu0 %v5825_v0  ;;  %v5588_v6 = vld [vmem:[%s7311_s1 + $0xcc] ss:$16 sps:$4 sm:$0xff]  }
 0x36a   :  { %5145 = vmatprep.subr.bf16.mxu1 %v5825_v0 }
 0x36c   :  { %5126 = vmatpush3.bf16.msra.mxu0 %v5577_v7 }
 0x36d   :  { %5146 = vmatpush3.bf16.msra.mxu1 %v5578_v8  ;;  %5127 = vmatprep.subr.bf16.mxu0 %v5825_v0 }
 0x36e   :  { %5147 = vmatprep.subr.bf16.mxu1 %v5825_v0 }
 0x370   :  { %5128 = vmatpush3.bf16.msra.mxu0 %v5579_v9 }
 0x371   :  { %5148 = vmatpush3.bf16.msra.mxu1 %v5580_v10  ;;  %5129 = vmatprep.subr.bf16.mxu0 %v5825_v0 }
 0x372   :  { %5149 = vmatprep.subr.bf16.mxu1 %v5825_v0 }
 0x374   :  { %5130 = vmatpush3.bf16.msra.mxu0 %v5581_v11 }
 0x375   :  { %5150 = vmatpush3.bf16.msra.mxu1 %v5582_v12  ;;  %5131 = vmatprep.subr.bf16.mxu0 %v5825_v0 }
 0x376   :  { %5151 = vmatprep.subr.bf16.mxu1 %v5825_v0 }
 0x378   :  { %5132 = vmatpush3.bf16.msra.mxu0 %v5583_v13 }
 0x379   :  { %5152 = vmatpush3.bf16.msra.mxu1 %v5584_v14  ;;  %5157 = vmatprep.subr.bf16.mxu0 %v5825_v0  ;;  %v5589_v14 = vld [vmem:[%s7311_s1 + $0xa8] ss:$16 sps:$4 sm:$0xff]  }
 0x37a   :  { %5177 = vmatprep.subr.bf16.mxu1 %v5825_v0 }
 0x3fa   :  { %v1672_v16 = vpop.f32.mrf.mxu0 }
 0x3fb   :  { %v1784_v17 = vpop.f32.mrf.mxu1  ;;  %v1673_v25 = vadd.f32 %v1672_v16, %v1589_v19  ;;  %v5593_v19 = vld [vmem:[%s7311_s1 + $0x68] ss:$16 sps:$4 sm:$0xff]  }
 0x3fc   :  { %v5055_v20 = vpop.f32.mrf.mxu0  ;;  %v1785_v24 = vadd.f32 %v1784_v17, %v1701_v18  ;;  %v5591_v17 = vld [vmem:[%s7311_s1 + $0x88] ss:$16 sps:$4 sm:$0xff]   ;;  %v5592_v18 = vld [vmem:[%s7311_s1 + $0x8c] ss:$16 sps:$4 sm:$0xff]  }
 0x3fd   :  { %v5075_v21 = vpop.f32.mrf.mxu1  ;;  %v4303_v31 = vmul.f32 -1.442695, %v1673_v25  ;;  %v5594_v20 = vld [vmem:[%s7311_s1 + $0x6c] ss:$16 sps:$4 sm:$0xff]   ;;  %v5599_v25 = vld [vmem:[%s7311_s1 + $0x8] ss:$16 sps:$4 sm:$0xff]  }
 0x3fe   :  { %v1675_v22 = vpop.f32.mrf.mxu0  ;;  %v4313_v30 = vmul.f32 -1.442695, %v1785_v24  ;;  %v5595_v21 = vld [vmem:[%s7311_s1 + $0x48] ss:$16 sps:$4 sm:$0xff]   ;;  %v5598_v24 = vld [vmem:[%s7311_s1 + $0x2c] ss:$16 sps:$4 sm:$0xff]  }
 0x3ff   :  { %v1787_v23 = vpop.f32.mrf.mxu1  ;;  %v5596_v22 = vld [vmem:[%s7311_s1 + $0x4c] ss:$16 sps:$4 sm:$0xff]  }
 0x400   :  { %v5056_v28 = vpop.f32.mrf.mxu0  ;;  %5745 = vpow2.f32 %v4313_v30  ;;  %v5597_v23 = vld [vmem:[%s7311_s1 + $0x28] ss:$16 sps:$4 sm:$0xff]   ;;  %v5602_v30 = vld [vmem:[%s7311_s1 + $0xe4] ss:$16 sps:$4 sm:$0xff]  }
 0x401   :  { %v5076_v29 = vpop.f32.mrf.mxu1  ;;  %5747 = vpow2.f32 %v4303_v31  ;;  %v5600_v28 = vld [vmem:[%s7311_s1 + $0xc] ss:$16 sps:$4 sm:$0xff]   ;;  %v5603_v31 = vld [vmem:[%s7311_s1 + $0xc0] ss:$16 sps:$4 sm:$0xff]  }
 0x402   :  { %v5601_v29 = vld [vmem:[%s7311_s1 + $0xe0] ss:$16 sps:$4 sm:$0xff]  }
 0x40d   :  { %v5746_v32 = vpop.eup %5745 }
 0x40e   :  { %v5748_v61 = vpop.eup %5747  ;;  %v1793_v35 = vadd.f32 1.0, %v5746_v32  ;;  %v5604_v32 = vld [vmem:[%s7311_s1 + $0xc4] ss:$16 sps:$4 sm:$0xff]  }
 0x40f   :  { %v1681_v38 = vadd.f32 1.0, %v5748_v61  ;;  %v5606_v61 = vld [vmem:[%s7311_s1 + $0xa4] ss:$16 sps:$4 sm:$0xff]  }
 0x410   :  { %5749 = vrcp.f32 %v1793_v35  ;;  %v5607_v35 = vld [vmem:[%s7311_s1 + $0x80] ss:$16 sps:$4 sm:$0xff]  }
 0x411   :  { %5751 = vrcp.f32 %v1681_v38  ;;  %v5610_v38 = vld [vmem:[%s7311_s1 + $0x64] ss:$16 sps:$4 sm:$0xff]  }
 0x41a   :  { %v1896_v39 = vpop.f32.mrf.mxu0 }
 0x41b   :  { %v2003_v40 = vpop.f32.mrf.mxu1  ;;  %v1897_v41 = vadd.f32 %v1896_v39, %v1813_v36  ;;  %v5608_v36 = vld [vmem:[%s7311_s1 + $0x84] ss:$16 sps:$4 sm:$0xff]   ;;  %v5611_v39 = vld [vmem:[%s7311_s1 + $0x40] ss:$16 sps:$4 sm:$0xff]  }
 0x41c   :  { %v2004_v42 = vadd.f32 %v2003_v40, %v1920_v37  ;;  %v5095_v43 = vpop.f32.mrf.mxu0  ;;  %v5609_v37 = vld [vmem:[%s7311_s1 + $0x60] ss:$16 sps:$4 sm:$0xff]   ;;  %v5612_v40 = vld [vmem:[%s7311_s1 + $0x44] ss:$16 sps:$4 sm:$0xff]  }
 0x41d   :  { %v5115_v44 = vpop.f32.mrf.mxu1  ;;  %5753 = vtanh.f32 %v1897_v41  ;;  %v5750_v50 = vpop.eup %5749  ;;  %v5613_v41 = vld [vmem:[%s7311_s1 + $0x20] ss:$16 sps:$4 sm:$0xff]  }
 0x41e   :  { %v4332_v45 = vmul.f32 -1.442695, %v2004_v42  ;;  %v1899_v46 = vpop.f32.mrf.mxu0  ;;  %v5752_v51 = vpop.eup %5751  ;;  %v2015_v53 = vmul.f32 %v5750_v50, %v6432_v27  ;;  %v5614_v42 = vld [vmem:[%s7311_s1 + $0x24] ss:$16 sps:$4 sm:$0xff]   ;;  %v5615_v43 = vld [vmem:[%s7311_s1] ss:$16 sps:$4 sm:$0xff]  }
 0x41f   :  { %v2006_v47 = vpop.f32.mrf.mxu1  ;;  %v5616_v44 = vld [vmem:[%s7311_s1 + $0x4] ss:$16 sps:$4 sm:$0xff]  }
 0x420   :  { %5755 = vpow2.f32 %v4332_v45  ;;  %v5096_v48 = vpop.f32.mrf.mxu0  ;;  %v4337_v45 = vld [vmem:[%s7312_s0 + $0x40] sm:$0xff]  }
 0x421   :  { %v5116_v49 = vpop.f32.mrf.mxu1  ;;  %v2217_v48 = vunpack.c.h.bf16 %v4337_v45 }
 0x422   :  { %v2105_v49 = vunpack.c.l.bf16 %v4337_v45  ;;  %v5622_v45 = vld [vmem:[%s7311_s1 + $0xac] ss:$16 sps:$4 sm:$0xff]  }
 0x42a   :  { %v5754_v52 = vpop.eup %5753 }
 0x42b   :  { %v2016_v54 = vmul.f32 %v5754_v52, %v5752_v51 }
 0x42d   :  { %v5756_v55 = vpop.eup %5755  ;;  %v6614_v56 = vadd.f32 %v2016_v54, %v2015_v53 }
 0x42e   :  { %v2012_v57 = vadd.f32 1.0, %v5756_v55 }
 0x42f   :  { %5757 = vtanh.f32 %v6614_v56 }
 0x430   :  { %5759 = vrcp.f32 %v2012_v57 }
 0x43c   :  { %v5758_v58 = vpop.eup %5757 }
 0x43d   :  { %v5760_v59 = vpop.eup %5759 }
 0x43e   :  { %v2019_v60 = vmul.f32 %v5760_v59, %v5758_v58 }
 0x440   :  { %v2021_v27 = vcombine.high %v2019_v60, %v2019_v60  ;;  %v2028_v1 = vrot.slane %v2019_v60, %v6069_v34  ;;  %v6624_v2 = vpack.c.bf16 %v2019_v60, %v2019_v60 }
 0x442   :  { %v2035_v3 = vrot.slane %v2021_v27, %v6069_v34  ;;  %v2036_v4 = vcombine.high %v2028_v1, %v2028_v1  ;;  %v2044_v26 = vrot.slane %v2028_v1, %v6069_v34  ;;  %4333 = vst.sshfl [vmem:[%s7313_s2 + $0x3] sm:$0x1 pattern:$0x73625140] %v2028_v1  ;;  %5134 = vmatmul.mubr.bf16.vlgmr.msra.gmra.mxu0 %v6624_v2 }
 0x443   :  { %5154 = vmatmul.mubr.bf16.vlgmr.msra.gmra.mxu1 %v6624_v2  ;;  %5158 = vmatpush3.bf16.msra.mxu0 %v5585_v62 }
 0x444   :  { %5178 = vmatpush3.bf16.msra.mxu1 %v5586_v63  ;;  %v2037_v7 = vcombine.high %v2035_v3, %v2035_v3  ;;  %v2051_v8 = vrot.slane %v2035_v3, %v6069_v34  ;;  %v2058_v9 = vrot.slane %v2036_v4, %v6069_v34  ;;  %v2066_v10 = vcombine.high %v2044_v26, %v2044_v26  ;;  %v4357_v63 = vld [vmem:[%s7312_s0 + $0x48] sm:$0xff]  }
 0x445   :  { %4334 = vst.sshfl [vmem:[%s7313_s2 + $0xb] sm:$0x1 pattern:$0x73625140] %v2036_v4  ;;  %5159 = vmatprep.subr.bf16.mxu0 %v5825_v0  ;;  %5179 = vmatprep.subr.bf16.mxu1 %v5825_v0 }
 0x446   :  { %4335 = vst.sshfl [vmem:[%s7313_s2 + $0x23] sm:$0x1 pattern:$0x73625140] %v2035_v3  ;;  %5173 = vmatprep.mubr.msk.bf16.mxu0 %vm5826_vm0, %v5825_v0  ;;  %v2065_v11 = vrot.slane %v2037_v7, %v6069_v34  ;;  %v2067_v12 = vcombine.high %v2051_v8, %v2051_v8  ;;  %v2068_v13 = vcombine.high %v2058_v9, %v2058_v9  ;;  %2080 = vst [vmem:[%s7313_s2 + $0x13] sm:$0x1] %v2066_v10 }
 0x447   :  { %4336 = vst.sshfl [vmem:[%s7313_s2 + $0x2b] sm:$0x1 pattern:$0x73625140] %v2037_v7  ;;  %5193 = vmatprep.mubr.msk.bf16.mxu1 %vm5826_vm0, %v5825_v0  ;;  %5160 = vmatpush3.bf16.msra.mxu0 %v5587_v5  ;;  %v2436_v3 = vunpack.c.h.bf16 %v4357_v63 }
 0x448   :  { %5180 = vmatpush3.bf16.msra.mxu1 %v5588_v6  ;;  %v2069_v16 = vcombine.high %v2065_v11, %v2065_v11  ;;  %2081 = vst [vmem:[%s7313_s2 + $0x1b] sm:$0x1] %v2068_v13  ;;  %2084 = vst [vmem:[%s7313_s2 + $0x33] sm:$0x1] %v2067_v12  ;;  %5161 = vmatprep.subr.bf16.mxu0 %v5825_v0 }
 0x449   :  { %5181 = vmatprep.subr.bf16.mxu1 %v5825_v0 }
 0x44a   :  { %2085 = vst [vmem:[%s7313_s2 + $0x3b] sm:$0x1] %v2069_v16 }
 0x44b   :  { %5162 = vmatpush3.bf16.msra.mxu0 %v5589_v14 }
 0x44c   :  { %5182 = vmatpush3.bf16.msra.mxu1 %v5590_v15  ;;  %5163 = vmatprep.subr.bf16.mxu0 %v5825_v0 }
 0x44d   :  { %5183 = vmatprep.subr.bf16.mxu1 %v5825_v0 }
 0x44f   :  { %5164 = vmatpush3.bf16.msra.mxu0 %v5591_v17 }
 0x450   :  { %5184 = vmatpush3.bf16.msra.mxu1 %v5592_v18  ;;  %5165 = vmatprep.subr.bf16.mxu0 %v5825_v0 }
 0x451   :  { %5185 = vmatprep.subr.bf16.mxu1 %v5825_v0 }
 0x453   :  { %5166 = vmatpush3.bf16.msra.mxu0 %v5593_v19 }
 0x454   :  { %5186 = vmatpush3.bf16.msra.mxu1 %v5594_v20  ;;  %5167 = vmatprep.subr.bf16.mxu0 %v5825_v0 }
 0x455   :  { %5187 = vmatprep.subr.bf16.mxu1 %v5825_v0 }
 0x457   :  { %5168 = vmatpush3.bf16.msra.mxu0 %v5595_v21 }
 0x458   :  { %5188 = vmatpush3.bf16.msra.mxu1 %v5596_v22  ;;  %5169 = vmatprep.subr.bf16.mxu0 %v5825_v0 }
 0x459   :  { %5189 = vmatprep.subr.bf16.mxu1 %v5825_v0 }
 0x45b   :  { %5170 = vmatpush3.bf16.msra.mxu0 %v5597_v23 }
 0x45c   :  { %5190 = vmatpush3.bf16.msra.mxu1 %v5598_v24  ;;  %5171 = vmatprep.subr.bf16.mxu0 %v5825_v0 }
 0x45d   :  { %5191 = vmatprep.subr.bf16.mxu1 %v5825_v0 }
 0x45f   :  { %5172 = vmatpush3.bf16.msra.mxu0 %v5599_v25 }
 0x460   :  { %5192 = vmatpush3.bf16.msra.mxu1 %v5600_v28  ;;  %5197 = vmatprep.subr.bf16.mxu0 %v5825_v0  ;;  %v5617_v28 = vld [vmem:[%s7311_s1 + $0xe8] ss:$16 sps:$4 sm:$0xff]  }
 0x461   :  { %5217 = vmatprep.subr.bf16.mxu1 %v5825_v0 }
 0x462   :  { %5174 = vmatmul.mubr.bf16.vlgmr.msra.gmra.mxu0 %v6624_v2 }
 0x463   :  { %5194 = vmatmul.mubr.bf16.vlgmr.msra.gmra.mxu1 %v6624_v2  ;;  %5213 = vmatprep.mubr.msk.bf16.mxu0 %vm5826_vm0, %v5825_v0  ;;  %v2329_v2 = vunpack.c.l.bf16 %v4357_v63  ;;  %v5637_v63 = vld [vmem:[%s7311_s1 + $0xa0] ss:$16 sps:$4 sm:$0xff]  }
 0x464   :  { %5233 = vmatprep.mubr.msk.bf16.mxu1 %vm5826_vm0, %v5825_v0  ;;  %5198 = vmatpush3.bf16.msra.mxu0 %v5601_v29  ;;  %v5618_v29 = vld [vmem:[%s7311_s1 + $0xec] ss:$16 sps:$4 sm:$0xff]  }
 0x465   :  { %5218 = vmatpush3.bf16.msra.mxu1 %v5602_v30  ;;  %5199 = vmatprep.subr.bf16.mxu0 %v5825_v0 }
 0x466   :  { %5219 = vmatprep.subr.bf16.mxu1 %v5825_v0 }
 0x468   :  { %5200 = vmatpush3.bf16.msra.mxu0 %v5603_v31 }
 0x469   :  { %5220 = vmatpush3.bf16.msra.mxu1 %v5604_v32  ;;  %5201 = vmatprep.subr.bf16.mxu0 %v5825_v0 }
 0x46a   :  { %5221 = vmatprep.subr.bf16.mxu1 %v5825_v0 }
 0x46c   :  { %5202 = vmatpush3.bf16.msra.mxu0 %v5605_v33 }
 0x46d   :  { %5222 = vmatpush3.bf16.msra.mxu1 %v5606_v61  ;;  %5203 = vmatprep.subr.bf16.mxu0 %v5825_v0 }
 0x46e   :  { %5223 = vmatprep.subr.bf16.mxu1 %v5825_v0 }
 0x470   :  { %5204 = vmatpush3.bf16.msra.mxu0 %v5607_v35  ;;  %v5619_v35 = vld [vmem:[%s7311_s1 + $0xc8] ss:$16 sps:$4 sm:$0xff]  }
 0x471   :  { %5224 = vmatpush3.bf16.msra.mxu1 %v5608_v36  ;;  %5205 = vmatprep.subr.bf16.mxu0 %v5825_v0  ;;  %v5620_v36 = vld [vmem:[%s7311_s1 + $0xcc] ss:$16 sps:$4 sm:$0xff]  }
 0x472   :  { %5225 = vmatprep.subr.bf16.mxu1 %v5825_v0 }
 0x474   :  { %5206 = vmatpush3.bf16.msra.mxu0 %v5609_v37 }
 0x475   :  { %5226 = vmatpush3.bf16.msra.mxu1 %v5610_v38  ;;  %5207 = vmatprep.subr.bf16.mxu0 %v5825_v0 }
 0x476   :  { %5227 = vmatprep.subr.bf16.mxu1 %v5825_v0 }
 0x478   :  { %5208 = vmatpush3.bf16.msra.mxu0 %v5611_v39 }
 0x479   :  { %5228 = vmatpush3.bf16.msra.mxu1 %v5612_v40  ;;  %5209 = vmatprep.subr.bf16.mxu0 %v5825_v0 }
 0x47a   :  { %5229 = vmatprep.subr.bf16.mxu1 %v5825_v0 }
 0x47c   :  { %5210 = vmatpush3.bf16.msra.mxu0 %v5613_v41 }
 0x47d   :  { %5230 = vmatpush3.bf16.msra.mxu1 %v5614_v42  ;;  %5211 = vmatprep.subr.bf16.mxu0 %v5825_v0 }
 0x47e   :  { %5231 = vmatprep.subr.bf16.mxu1 %v5825_v0 }
 0x480   :  { %5212 = vmatpush3.bf16.msra.mxu0 %v5615_v43 }
 0x481   :  { %5232 = vmatpush3.bf16.msra.mxu1 %v5616_v44  ;;  %5237 = vmatprep.subr.bf16.mxu0 %v5825_v0  ;;  %v5621_v44 = vld [vmem:[%s7311_s1 + $0xa8] ss:$16 sps:$4 sm:$0xff]  }
 0x482   :  { %5257 = vmatprep.subr.bf16.mxu1 %v5825_v0 }
 0x502   :  { %v2188_v46 = vpop.f32.mrf.mxu0 }
 0x503   :  { %v2300_v47 = vpop.f32.mrf.mxu1  ;;  %v2189_v55 = vadd.f32 %v2188_v46, %v2105_v49  ;;  %v5625_v49 = vld [vmem:[%s7311_s1 + $0x68] ss:$16 sps:$4 sm:$0xff]  }
 0x504   :  { %v5135_v50 = vpop.f32.mrf.mxu0  ;;  %v2301_v54 = vadd.f32 %v2300_v47, %v2217_v48  ;;  %v5623_v47 = vld [vmem:[%s7311_s1 + $0x88] ss:$16 sps:$4 sm:$0xff]   ;;  %v5624_v48 = vld [vmem:[%s7311_s1 + $0x8c] ss:$16 sps:$4 sm:$0xff]  }
 0x505   :  { %v5155_v51 = vpop.f32.mrf.mxu1  ;;  %v4346_v60 = vmul.f32 -1.442695, %v2189_v55  ;;  %v5626_v50 = vld [vmem:[%s7311_s1 + $0x6c] ss:$16 sps:$4 sm:$0xff]   ;;  %v5631_v55 = vld [vmem:[%s7311_s1 + $0x8] ss:$16 sps:$4 sm:$0xff]  }
 0x506   :  { %v2191_v52 = vpop.f32.mrf.mxu0  ;;  %v4356_v59 = vmul.f32 -1.442695, %v2301_v54  ;;  %v5627_v51 = vld [vmem:[%s7311_s1 + $0x48] ss:$16 sps:$4 sm:$0xff]   ;;  %v5630_v54 = vld [vmem:[%s7311_s1 + $0x2c] ss:$16 sps:$4 sm:$0xff]  }
 0x507   :  { %v2303_v53 = vpop.f32.mrf.mxu1  ;;  %v5628_v52 = vld [vmem:[%s7311_s1 + $0x4c] ss:$16 sps:$4 sm:$0xff]  }
 0x508   :  { %v5136_v57 = vpop.f32.mrf.mxu0  ;;  %5761 = vpow2.f32 %v4356_v59  ;;  %v5629_v53 = vld [vmem:[%s7311_s1 + $0x28] ss:$16 sps:$4 sm:$0xff]   ;;  %v5634_v59 = vld [vmem:[%s7311_s1 + $0xe4] ss:$16 sps:$4 sm:$0xff]  }
 0x509   :  { %v5156_v58 = vpop.f32.mrf.mxu1  ;;  %5763 = vpow2.f32 %v4346_v60  ;;  %v5632_v57 = vld [vmem:[%s7311_s1 + $0xc] ss:$16 sps:$4 sm:$0xff]   ;;  %v5635_v60 = vld [vmem:[%s7311_s1 + $0xc0] ss:$16 sps:$4 sm:$0xff]  }
 0x50a   :  { %v5633_v58 = vld [vmem:[%s7311_s1 + $0xe0] ss:$16 sps:$4 sm:$0xff]  }
 0x515   :  { %v5762_v62 = vpop.eup %5761 }
 0x516   :  { %v5764_v27 = vpop.eup %5763  ;;  %v2309_v1 = vadd.f32 1.0, %v5762_v62  ;;  %v5636_v62 = vld [vmem:[%s7311_s1 + $0xc4] ss:$16 sps:$4 sm:$0xff]  }
 0x517   :  { %v2197_v4 = vadd.f32 1.0, %v5764_v27  ;;  %v5638_v27 = vld [vmem:[%s7311_s1 + $0xa4] ss:$16 sps:$4 sm:$0xff]  }
 0x518   :  { %5765 = vrcp.f32 %v2309_v1  ;;  %v5639_v1 = vld [vmem:[%s7311_s1 + $0x80] ss:$16 sps:$4 sm:$0xff]  }
 0x519   :  { %5767 = vrcp.f32 %v2197_v4  ;;  %v5642_v4 = vld [vmem:[%s7311_s1 + $0x64] ss:$16 sps:$4 sm:$0xff]  }
 0x522   :  { %v2412_v26 = vpop.f32.mrf.mxu0 }
 0x523   :  { %v2519_v5 = vpop.f32.mrf.mxu1  ;;  %v2413_v6 = vadd.f32 %v2412_v26, %v2329_v2  ;;  %v5640_v2 = vld [vmem:[%s7311_s1 + $0x84] ss:$16 sps:$4 sm:$0xff]   ;;  %v5643_v26 = vld [vmem:[%s7311_s1 + $0x40] ss:$16 sps:$4 sm:$0xff]  }
 0x524   :  { %v2520_v7 = vadd.f32 %v2519_v5, %v2436_v3  ;;  %v5175_v8 = vpop.f32.mrf.mxu0  ;;  %v5641_v3 = vld [vmem:[%s7311_s1 + $0x60] ss:$16 sps:$4 sm:$0xff]   ;;  %v5644_v5 = vld [vmem:[%s7311_s1 + $0x44] ss:$16 sps:$4 sm:$0xff]  }
 0x525   :  { %v5195_v9 = vpop.f32.mrf.mxu1  ;;  %5769 = vtanh.f32 %v2413_v6  ;;  %v5766_v15 = vpop.eup %5765  ;;  %v5645_v6 = vld [vmem:[%s7311_s1 + $0x20] ss:$16 sps:$4 sm:$0xff]  }
 0x526   :  { %v4375_v10 = vmul.f32 -1.442695, %v2520_v7  ;;  %v2415_v11 = vpop.f32.mrf.mxu0  ;;  %v5768_v16 = vpop.eup %5767  ;;  %v2531_v18 = vmul.f32 %v5766_v15, %v6614_v56  ;;  %v5646_v7 = vld [vmem:[%s7311_s1 + $0x24] ss:$16 sps:$4 sm:$0xff]   ;;  %v5647_v8 = vld [vmem:[%s7311_s1] ss:$16 sps:$4 sm:$0xff]  }
 0x527   :  { %v2522_v12 = vpop.f32.mrf.mxu1  ;;  %v5648_v9 = vld [vmem:[%s7311_s1 + $0x4] ss:$16 sps:$4 sm:$0xff]  }
 0x528   :  { %5771 = vpow2.f32 %v4375_v10  ;;  %v5176_v13 = vpop.f32.mrf.mxu0  ;;  %v4380_v10 = vld [vmem:[%s7312_s0 + $0x50] sm:$0xff]  }
 0x529   :  { %v5196_v14 = vpop.f32.mrf.mxu1  ;;  %v2733_v13 = vunpack.c.h.bf16 %v4380_v10 }
 0x52a   :  { %v2621_v14 = vunpack.c.l.bf16 %v4380_v10  ;;  %v5654_v10 = vld [vmem:[%s7311_s1 + $0xac] ss:$16 sps:$4 sm:$0xff]  }
 0x532   :  { %v5770_v17 = vpop.eup %5769 }
 0x533   :  { %v2532_v19 = vmul.f32 %v5770_v17, %v5768_v16 }
 0x535   :  { %v5772_v20 = vpop.eup %5771  ;;  %v6796_v21 = vadd.f32 %v2532_v19, %v2531_v18 }
 0x536   :  { %v2528_v22 = vadd.f32 1.0, %v5772_v20 }
 0x537   :  { %5773 = vtanh.f32 %v6796_v21 }
 0x538   :  { %5775 = vrcp.f32 %v2528_v22 }
 0x544   :  { %v5774_v23 = vpop.eup %5773 }
 0x545   :  { %v5776_v24 = vpop.eup %5775 }
 0x546   :  { %v2535_v25 = vmul.f32 %v5776_v24, %v5774_v23 }
 0x548   :  { %v2537_v56 = vcombine.high %v2535_v25, %v2535_v25  ;;  %v2544_v30 = vrot.slane %v2535_v25, %v6069_v34  ;;  %v6806_v31 = vpack.c.bf16 %v2535_v25, %v2535_v25 }
 0x54a   :  { %v2551_v32 = vrot.slane %v2537_v56, %v6069_v34  ;;  %v2552_v33 = vcombine.high %v2544_v30, %v2544_v30  ;;  %v2560_v61 = vrot.slane %v2544_v30, %v6069_v34  ;;  %4376 = vst.sshfl [vmem:[%s7313_s2 + $0x4] sm:$0x1 pattern:$0x73625140] %v2544_v30  ;;  %5214 = vmatmul.mubr.bf16.vlgmr.msra.gmra.mxu0 %v6806_v31 }
 0x54b   :  { %5234 = vmatmul.mubr.bf16.vlgmr.msra.gmra.mxu1 %v6806_v31  ;;  %5238 = vmatpush3.bf16.msra.mxu0 %v5617_v28 }
 0x54c   :  { %5258 = vmatpush3.bf16.msra.mxu1 %v5618_v29  ;;  %v2553_v37 = vcombine.high %v2551_v32, %v2551_v32  ;;  %v2567_v38 = vrot.slane %v2551_v32, %v6069_v34  ;;  %v2574_v39 = vrot.slane %v2552_v33, %v6069_v34  ;;  %v2582_v40 = vcombine.high %v2560_v61, %v2560_v61  ;;  %v4400_v29 = vld [vmem:[%s7312_s0 + $0x58] sm:$0xff]  }
 0x54d   :  { %4377 = vst.sshfl [vmem:[%s7313_s2 + $0xc] sm:$0x1 pattern:$0x73625140] %v2552_v33  ;;  %5239 = vmatprep.subr.bf16.mxu0 %v5825_v0  ;;  %5259 = vmatprep.subr.bf16.mxu1 %v5825_v0 }
 0x54e   :  { %4378 = vst.sshfl [vmem:[%s7313_s2 + $0x24] sm:$0x1 pattern:$0x73625140] %v2551_v32  ;;  %5253 = vmatprep.mubr.msk.bf16.mxu0 %vm5826_vm0, %v5825_v0  ;;  %v2581_v41 = vrot.slane %v2553_v37, %v6069_v34  ;;  %v2583_v42 = vcombine.high %v2567_v38, %v2567_v38  ;;  %v2584_v43 = vcombine.high %v2574_v39, %v2574_v39  ;;  %2596 = vst [vmem:[%s7313_s2 + $0x14] sm:$0x1] %v2582_v40 }
 0x54f   :  { %4379 = vst.sshfl [vmem:[%s7313_s2 + $0x2c] sm:$0x1 pattern:$0x73625140] %v2553_v37  ;;  %5273 = vmatprep.mubr.msk.bf16.mxu1 %vm5826_vm0, %v5825_v0  ;;  %5240 = vmatpush3.bf16.msra.mxu0 %v5619_v35  ;;  %v2952_v32 = vunpack.c.h.bf16 %v4400_v29 }
 0x550   :  { %5260 = vmatpush3.bf16.msra.mxu1 %v5620_v36  ;;  %v2585_v46 = vcombine.high %v2581_v41, %v2581_v41  ;;  %2597 = vst [vmem:[%s7313_s2 + $0x1c] sm:$0x1] %v2584_v43  ;;  %2600 = vst [vmem:[%s7313_s2 + $0x34] sm:$0x1] %v2583_v42  ;;  %5241 = vmatprep.subr.bf16.mxu0 %v5825_v0 }
 0x551   :  { %5261 = vmatprep.subr.bf16.mxu1 %v5825_v0 }
 0x552   :  { %2601 = vst [vmem:[%s7313_s2 + $0x3c] sm:$0x1] %v2585_v46 }
 0x553   :  { %5242 = vmatpush3.bf16.msra.mxu0 %v5621_v44 }
 0x554   :  { %5262 = vmatpush3.bf16.msra.mxu1 %v5622_v45  ;;  %5243 = vmatprep.subr.bf16.mxu0 %v5825_v0 }
 0x555   :  { %5263 = vmatprep.subr.bf16.mxu1 %v5825_v0 }
 0x557   :  { %5244 = vmatpush3.bf16.msra.mxu0 %v5623_v47 }
 0x558   :  { %5264 = vmatpush3.bf16.msra.mxu1 %v5624_v48  ;;  %5245 = vmatprep.subr.bf16.mxu0 %v5825_v0 }
 0x559   :  { %5265 = vmatprep.subr.bf16.mxu1 %v5825_v0 }
 0x55b   :  { %5246 = vmatpush3.bf16.msra.mxu0 %v5625_v49 }
 0x55c   :  { %5266 = vmatpush3.bf16.msra.mxu1 %v5626_v50  ;;  %5247 = vmatprep.subr.bf16.mxu0 %v5825_v0 }
 0x55d   :  { %5267 = vmatprep.subr.bf16.mxu1 %v5825_v0 }
 0x55f   :  { %5248 = vmatpush3.bf16.msra.mxu0 %v5627_v51 }
 0x560   :  { %5268 = vmatpush3.bf16.msra.mxu1 %v5628_v52  ;;  %5249 = vmatprep.subr.bf16.mxu0 %v5825_v0 }
 0x561   :  { %5269 = vmatprep.subr.bf16.mxu1 %v5825_v0 }
 0x563   :  { %5250 = vmatpush3.bf16.msra.mxu0 %v5629_v53 }
 0x564   :  { %5270 = vmatpush3.bf16.msra.mxu1 %v5630_v54  ;;  %5251 = vmatprep.subr.bf16.mxu0 %v5825_v0 }
 0x565   :  { %5271 = vmatprep.subr.bf16.mxu1 %v5825_v0 }
 0x567   :  { %5252 = vmatpush3.bf16.msra.mxu0 %v5631_v55 }
 0x568   :  { %5272 = vmatpush3.bf16.msra.mxu1 %v5632_v57  ;;  %5277 = vmatprep.subr.bf16.mxu0 %v5825_v0  ;;  %v5649_v57 = vld [vmem:[%s7311_s1 + $0xe8] ss:$16 sps:$4 sm:$0xff]  }
 0x569   :  { %5297 = vmatprep.subr.bf16.mxu1 %v5825_v0 }
 0x56a   :  { %5254 = vmatmul.mubr.bf16.vlgmr.msra.gmra.mxu0 %v6806_v31 }
 0x56b   :  { %5274 = vmatmul.mubr.bf16.vlgmr.msra.gmra.mxu1 %v6806_v31  ;;  %5293 = vmatprep.mubr.msk.bf16.mxu0 %vm5826_vm0, %v5825_v0  ;;  %v2845_v31 = vunpack.c.l.bf16 %v4400_v29  ;;  %v5669_v29 = vld [vmem:[%s7311_s1 + $0xa0] ss:$16 sps:$4 sm:$0xff]  }
 0x56c   :  { %5313 = vmatprep.mubr.msk.bf16.mxu1 %vm5826_vm0, %v5825_v0  ;;  %5278 = vmatpush3.bf16.msra.mxu0 %v5633_v58  ;;  %v5650_v58 = vld [vmem:[%s7311_s1 + $0xec] ss:$16 sps:$4 sm:$0xff]  }
 0x56d   :  { %5298 = vmatpush3.bf16.msra.mxu1 %v5634_v59  ;;  %5279 = vmatprep.subr.bf16.mxu0 %v5825_v0 }
 0x56e   :  { %5299 = vmatprep.subr.bf16.mxu1 %v5825_v0 }
 0x570   :  { %5280 = vmatpush3.bf16.msra.mxu0 %v5635_v60 }
 0x571   :  { %5300 = vmatpush3.bf16.msra.mxu1 %v5636_v62  ;;  %5281 = vmatprep.subr.bf16.mxu0 %v5825_v0 }
 0x572   :  { %5301 = vmatprep.subr.bf16.mxu1 %v5825_v0 }
 0x574   :  { %5282 = vmatpush3.bf16.msra.mxu0 %v5637_v63 }
 0x575   :  { %5302 = vmatpush3.bf16.msra.mxu1 %v5638_v27  ;;  %5283 = vmatprep.subr.bf16.mxu0 %v5825_v0 }
 0x576   :  { %5303 = vmatprep.subr.bf16.mxu1 %v5825_v0 }
 0x578   :  { %5284 = vmatpush3.bf16.msra.mxu0 %v5639_v1  ;;  %v5651_v1 = vld [vmem:[%s7311_s1 + $0xc8] ss:$16 sps:$4 sm:$0xff]  }
 0x579   :  { %5304 = vmatpush3.bf16.msra.mxu1 %v5640_v2  ;;  %5285 = vmatprep.subr.bf16.mxu0 %v5825_v0  ;;  %v5652_v2 = vld [vmem:[%s7311_s1 + $0xcc] ss:$16 sps:$4 sm:$0xff]  }
 0x57a   :  { %5305 = vmatprep.subr.bf16.mxu1 %v5825_v0 }
 0x57c   :  { %5286 = vmatpush3.bf16.msra.mxu0 %v5641_v3 }
 0x57d   :  { %5306 = vmatpush3.bf16.msra.mxu1 %v5642_v4  ;;  %5287 = vmatprep.subr.bf16.mxu0 %v5825_v0 }
 0x57e   :  { %5307 = vmatprep.subr.bf16.mxu1 %v5825_v0 }
 0x580   :  { %5288 = vmatpush3.bf16.msra.mxu0 %v5643_v26 }
 0x581   :  { %5308 = vmatpush3.bf16.msra.mxu1 %v5644_v5  ;;  %5289 = vmatprep.subr.bf16.mxu0 %v5825_v0 }
 0x582   :  { %5309 = vmatprep.subr.bf16.mxu1 %v5825_v0 }
 0x584   :  { %5290 = vmatpush3.bf16.msra.mxu0 %v5645_v6 }
 0x585   :  { %5310 = vmatpush3.bf16.msra.mxu1 %v5646_v7  ;;  %5291 = vmatprep.subr.bf16.mxu0 %v5825_v0 }
 0x586   :  { %5311 = vmatprep.subr.bf16.mxu1 %v5825_v0 }
 0x588   :  { %5292 = vmatpush3.bf16.msra.mxu0 %v5647_v8 }
 0x589   :  { %5312 = vmatpush3.bf16.msra.mxu1 %v5648_v9  ;;  %5317 = vmatprep.subr.bf16.mxu0 %v5825_v0  ;;  %v5653_v9 = vld [vmem:[%s7311_s1 + $0xa8] ss:$16 sps:$4 sm:$0xff]  }
 0x58a   :  { %5337 = vmatprep.subr.bf16.mxu1 %v5825_v0 }
 0x60a   :  { %v2704_v11 = vpop.f32.mrf.mxu0 }
 0x60b   :  { %v2816_v12 = vpop.f32.mrf.mxu1  ;;  %v2705_v20 = vadd.f32 %v2704_v11, %v2621_v14  ;;  %v5657_v14 = vld [vmem:[%s7311_s1 + $0x68] ss:$16 sps:$4 sm:$0xff]  }
 0x60c   :  { %v5215_v15 = vpop.f32.mrf.mxu0  ;;  %v2817_v19 = vadd.f32 %v2816_v12, %v2733_v13  ;;  %v5655_v12 = vld [vmem:[%s7311_s1 + $0x88] ss:$16 sps:$4 sm:$0xff]   ;;  %v5656_v13 = vld [vmem:[%s7311_s1 + $0x8c] ss:$16 sps:$4 sm:$0xff]  }
 0x60d   :  { %v5235_v16 = vpop.f32.mrf.mxu1  ;;  %v4389_v25 = vmul.f32 -1.442695, %v2705_v20  ;;  %v5658_v15 = vld [vmem:[%s7311_s1 + $0x6c] ss:$16 sps:$4 sm:$0xff]   ;;  %v5663_v20 = vld [vmem:[%s7311_s1 + $0x8] ss:$16 sps:$4 sm:$0xff]  }
 0x60e   :  { %v2707_v17 = vpop.f32.mrf.mxu0  ;;  %v4399_v24 = vmul.f32 -1.442695, %v2817_v19  ;;  %v5659_v16 = vld [vmem:[%s7311_s1 + $0x48] ss:$16 sps:$4 sm:$0xff]   ;;  %v5662_v19 = vld [vmem:[%s7311_s1 + $0x2c] ss:$16 sps:$4 sm:$0xff]  }
 0x60f   :  { %v2819_v18 = vpop.f32.mrf.mxu1  ;;  %v5660_v17 = vld [vmem:[%s7311_s1 + $0x4c] ss:$16 sps:$4 sm:$0xff]  }
 0x610   :  { %v5216_v22 = vpop.f32.mrf.mxu0  ;;  %5777 = vpow2.f32 %v4399_v24  ;;  %v5661_v18 = vld [vmem:[%s7311_s1 + $0x28] ss:$16 sps:$4 sm:$0xff]   ;;  %v5666_v24 = vld [vmem:[%s7311_s1 + $0xe4] ss:$16 sps:$4 sm:$0xff]  }
 0x611   :  { %v5236_v23 = vpop.f32.mrf.mxu1  ;;  %5779 = vpow2.f32 %v4389_v25  ;;  %v5664_v22 = vld [vmem:[%s7311_s1 + $0xc] ss:$16 sps:$4 sm:$0xff]   ;;  %v5667_v25 = vld [vmem:[%s7311_s1 + $0xc0] ss:$16 sps:$4 sm:$0xff]  }
 0x612   :  { %v5665_v23 = vld [vmem:[%s7311_s1 + $0xe0] ss:$16 sps:$4 sm:$0xff]  }
 0x61d   :  { %v5778_v28 = vpop.eup %5777 }
 0x61e   :  { %v5780_v56 = vpop.eup %5779  ;;  %v2825_v30 = vadd.f32 1.0, %v5778_v28  ;;  %v5668_v28 = vld [vmem:[%s7311_s1 + $0xc4] ss:$16 sps:$4 sm:$0xff]  }
 0x61f   :  { %v2713_v33 = vadd.f32 1.0, %v5780_v56  ;;  %v5670_v56 = vld [vmem:[%s7311_s1 + $0xa4] ss:$16 sps:$4 sm:$0xff]  }
 0x620   :  { %5781 = vrcp.f32 %v2825_v30  ;;  %v5671_v30 = vld [vmem:[%s7311_s1 + $0x80] ss:$16 sps:$4 sm:$0xff]  }
 0x621   :  { %5783 = vrcp.f32 %v2713_v33  ;;  %v5674_v33 = vld [vmem:[%s7311_s1 + $0x64] ss:$16 sps:$4 sm:$0xff]  }
 0x62a   :  { %v2928_v61 = vpop.f32.mrf.mxu0 }
 0x62b   :  { %v3035_v35 = vpop.f32.mrf.mxu1  ;;  %v2929_v36 = vadd.f32 %v2928_v61, %v2845_v31  ;;  %v5672_v31 = vld [vmem:[%s7311_s1 + $0x84] ss:$16 sps:$4 sm:$0xff]   ;;  %v5675_v61 = vld [vmem:[%s7311_s1 + $0x40] ss:$16 sps:$4 sm:$0xff]  }
 0x62c   :  { %v3036_v37 = vadd.f32 %v3035_v35, %v2952_v32  ;;  %v5255_v38 = vpop.f32.mrf.mxu0  ;;  %v5673_v32 = vld [vmem:[%s7311_s1 + $0x60] ss:$16 sps:$4 sm:$0xff]   ;;  %v5676_v35 = vld [vmem:[%s7311_s1 + $0x44] ss:$16 sps:$4 sm:$0xff]  }
 0x62d   :  { %v5275_v39 = vpop.f32.mrf.mxu1  ;;  %5785 = vtanh.f32 %v2929_v36  ;;  %v5782_v45 = vpop.eup %5781  ;;  %v5677_v36 = vld [vmem:[%s7311_s1 + $0x20] ss:$16 sps:$4 sm:$0xff]  }
 0x62e   :  { %v4418_v40 = vmul.f32 -1.442695, %v3036_v37  ;;  %v2931_v41 = vpop.f32.mrf.mxu0  ;;  %v5784_v46 = vpop.eup %5783  ;;  %v3047_v48 = vmul.f32 %v5782_v45, %v6796_v21  ;;  %v5678_v37 = vld [vmem:[%s7311_s1 + $0x24] ss:$16 sps:$4 sm:$0xff]   ;;  %v5679_v38 = vld [vmem:[%s7311_s1] ss:$16 sps:$4 sm:$0xff]  }
 0x62f   :  { %v3038_v42 = vpop.f32.mrf.mxu1  ;;  %v5680_v39 = vld [vmem:[%s7311_s1 + $0x4] ss:$16 sps:$4 sm:$0xff]  }
 0x630   :  { %5787 = vpow2.f32 %v4418_v40  ;;  %v5256_v43 = vpop.f32.mrf.mxu0  ;;  %v4423_v40 = vld [vmem:[%s7312_s0 + $0x60] sm:$0xff]  }
 0x631   :  { %v5276_v44 = vpop.f32.mrf.mxu1  ;;  %v3249_v43 = vunpack.c.h.bf16 %v4423_v40 }
 0x632   :  { %v3137_v44 = vunpack.c.l.bf16 %v4423_v40  ;;  %v5686_v40 = vld [vmem:[%s7311_s1 + $0xac] ss:$16 sps:$4 sm:$0xff]  }
 0x63a   :  { %v5786_v47 = vpop.eup %5785 }
 0x63b   :  { %v3048_v49 = vmul.f32 %v5786_v47, %v5784_v46 }
 0x63d   :  { %v5788_v50 = vpop.eup %5787  ;;  %v6978_v51 = vadd.f32 %v3048_v49, %v3047_v48 }
 0x63e   :  { %v3044_v52 = vadd.f32 1.0, %v5788_v50 }
 0x63f   :  { %5789 = vtanh.f32 %v6978_v51 }
 0x640   :  { %5791 = vrcp.f32 %v3044_v52 }
 0x64c   :  { %v5790_v53 = vpop.eup %5789 }
 0x64d   :  { %v5792_v54 = vpop.eup %5791 }
 0x64e   :  { %v3051_v55 = vmul.f32 %v5792_v54, %v5790_v53 }
 0x650   :  { %v3053_v21 = vcombine.high %v3051_v55, %v3051_v55  ;;  %v3060_v59 = vrot.slane %v3051_v55, %v6069_v34  ;;  %v6988_v60 = vpack.c.bf16 %v3051_v55, %v3051_v55 }
 0x652   :  { %v3067_v62 = vrot.slane %v3053_v21, %v6069_v34  ;;  %v3068_v63 = vcombine.high %v3060_v59, %v3060_v59  ;;  %v3076_v27 = vrot.slane %v3060_v59, %v6069_v34  ;;  %4419 = vst.sshfl [vmem:[%s7313_s2 + $0x5] sm:$0x1 pattern:$0x73625140] %v3060_v59  ;;  %5294 = vmatmul.mubr.bf16.vlgmr.msra.gmra.mxu0 %v6988_v60 }
 0x653   :  { %5314 = vmatmul.mubr.bf16.vlgmr.msra.gmra.mxu1 %v6988_v60  ;;  %5318 = vmatpush3.bf16.msra.mxu0 %v5649_v57 }
 0x654   :  { %5338 = vmatpush3.bf16.msra.mxu1 %v5650_v58  ;;  %v3069_v3 = vcombine.high %v3067_v62, %v3067_v62  ;;  %v3083_v4 = vrot.slane %v3067_v62, %v6069_v34  ;;  %v3090_v26 = vrot.slane %v3068_v63, %v6069_v34  ;;  %v3098_v5 = vcombine.high %v3076_v27, %v3076_v27  ;;  %v4443_v58 = vld [vmem:[%s7312_s0 + $0x68] sm:$0xff]  }
 0x655   :  { %4420 = vst.sshfl [vmem:[%s7313_s2 + $0xd] sm:$0x1 pattern:$0x73625140] %v3068_v63  ;;  %5319 = vmatprep.subr.bf16.mxu0 %v5825_v0  ;;  %5339 = vmatprep.subr.bf16.mxu1 %v5825_v0 }
 0x656   :  { %4421 = vst.sshfl [vmem:[%s7313_s2 + $0x25] sm:$0x1 pattern:$0x73625140] %v3067_v62  ;;  %5333 = vmatprep.mubr.msk.bf16.mxu0 %vm5826_vm0, %v5825_v0  ;;  %v3097_v6 = vrot.slane %v3069_v3, %v6069_v34  ;;  %v3099_v7 = vcombine.high %v3083_v4, %v3083_v4  ;;  %v3100_v8 = vcombine.high %v3090_v26, %v3090_v26  ;;  %3112 = vst [vmem:[%s7313_s2 + $0x15] sm:$0x1] %v3098_v5 }
 0x657   :  { %4422 = vst.sshfl [vmem:[%s7313_s2 + $0x2d] sm:$0x1 pattern:$0x73625140] %v3069_v3  ;;  %5353 = vmatprep.mubr.msk.bf16.mxu1 %vm5826_vm0, %v5825_v0  ;;  %5320 = vmatpush3.bf16.msra.mxu0 %v5651_v1  ;;  %v3468_v62 = vunpack.c.h.bf16 %v4443_v58 }
 0x658   :  { %5340 = vmatpush3.bf16.msra.mxu1 %v5652_v2  ;;  %v3101_v11 = vcombine.high %v3097_v6, %v3097_v6  ;;  %3113 = vst [vmem:[%s7313_s2 + $0x1d] sm:$0x1] %v3100_v8  ;;  %3116 = vst [vmem:[%s7313_s2 + $0x35] sm:$0x1] %v3099_v7  ;;  %5321 = vmatprep.subr.bf16.mxu0 %v5825_v0 }
 0x659   :  { %5341 = vmatprep.subr.bf16.mxu1 %v5825_v0 }
 0x65a   :  { %3117 = vst [vmem:[%s7313_s2 + $0x3d] sm:$0x1] %v3101_v11 }
 0x65b   :  { %5322 = vmatpush3.bf16.msra.mxu0 %v5653_v9 }
 0x65c   :  { %5342 = vmatpush3.bf16.msra.mxu1 %v5654_v10  ;;  %5323 = vmatprep.subr.bf16.mxu0 %v5825_v0 }
 0x65d   :  { %5343 = vmatprep.subr.bf16.mxu1 %v5825_v0 }
 0x65f   :  { %5324 = vmatpush3.bf16.msra.mxu0 %v5655_v12 }
 0x660   :  { %5344 = vmatpush3.bf16.msra.mxu1 %v5656_v13  ;;  %5325 = vmatprep.subr.bf16.mxu0 %v5825_v0 }
 0x661   :  { %5345 = vmatprep.subr.bf16.mxu1 %v5825_v0 }
 0x663   :  { %5326 = vmatpush3.bf16.msra.mxu0 %v5657_v14 }
 0x664   :  { %5346 = vmatpush3.bf16.msra.mxu1 %v5658_v15  ;;  %5327 = vmatprep.subr.bf16.mxu0 %v5825_v0 }
 0x665   :  { %5347 = vmatprep.subr.bf16.mxu1 %v5825_v0 }
 0x667   :  { %5328 = vmatpush3.bf16.msra.mxu0 %v5659_v16 }
 0x668   :  { %5348 = vmatpush3.bf16.msra.mxu1 %v5660_v17  ;;  %5329 = vmatprep.subr.bf16.mxu0 %v5825_v0 }
 0x669   :  { %5349 = vmatprep.subr.bf16.mxu1 %v5825_v0 }
 0x66b   :  { %5330 = vmatpush3.bf16.msra.mxu0 %v5661_v18 }
 0x66c   :  { %5350 = vmatpush3.bf16.msra.mxu1 %v5662_v19  ;;  %5331 = vmatprep.subr.bf16.mxu0 %v5825_v0 }
 0x66d   :  { %5351 = vmatprep.subr.bf16.mxu1 %v5825_v0 }
 0x66f   :  { %5332 = vmatpush3.bf16.msra.mxu0 %v5663_v20 }
 0x670   :  { %5352 = vmatpush3.bf16.msra.mxu1 %v5664_v22  ;;  %5357 = vmatprep.subr.bf16.mxu0 %v5825_v0  ;;  %v5681_v22 = vld [vmem:[%s7311_s1 + $0xe8] ss:$16 sps:$4 sm:$0xff]  }
 0x671   :  { %5377 = vmatprep.subr.bf16.mxu1 %v5825_v0 }
 0x672   :  { %5334 = vmatmul.mubr.bf16.vlgmr.msra.gmra.mxu0 %v6988_v60 }
 0x673   :  { %5354 = vmatmul.mubr.bf16.vlgmr.msra.gmra.mxu1 %v6988_v60  ;;  %5373 = vmatprep.mubr.msk.bf16.mxu0 %vm5826_vm0, %v5825_v0  ;;  %v3361_v60 = vunpack.c.l.bf16 %v4443_v58 }
 0x674   :  { %5393 = vmatprep.mubr.msk.bf16.mxu1 %vm5826_vm0, %v5825_v0  ;;  %5358 = vmatpush3.bf16.msra.mxu0 %v5665_v23  ;;  %v5682_v23 = vld [vmem:[%s7311_s1 + $0xec] ss:$16 sps:$4 sm:$0xff]  }
 0x675   :  { %5378 = vmatpush3.bf16.msra.mxu1 %v5666_v24  ;;  %5359 = vmatprep.subr.bf16.mxu0 %v5825_v0 }
 0x676   :  { %5379 = vmatprep.subr.bf16.mxu1 %v5825_v0 }
 0x678   :  { %5360 = vmatpush3.bf16.msra.mxu0 %v5667_v25 }
 0x679   :  { %5380 = vmatpush3.bf16.msra.mxu1 %v5668_v28  ;;  %5361 = vmatprep.subr.bf16.mxu0 %v5825_v0 }
 0x67a   :  { %5381 = vmatprep.subr.bf16.mxu1 %v5825_v0 }
 0x67c   :  { %5362 = vmatpush3.bf16.msra.mxu0 %v5669_v29 }
 0x67d   :  { %5382 = vmatpush3.bf16.msra.mxu1 %v5670_v56  ;;  %5363 = vmatprep.subr.bf16.mxu0 %v5825_v0 }
 0x67e   :  { %5383 = vmatprep.subr.bf16.mxu1 %v5825_v0 }
 0x680   :  { %5364 = vmatpush3.bf16.msra.mxu0 %v5671_v30  ;;  %v5683_v30 = vld [vmem:[%s7311_s1 + $0xc8] ss:$16 sps:$4 sm:$0xff]  }
 0x681   :  { %5384 = vmatpush3.bf16.msra.mxu1 %v5672_v31  ;;  %5365 = vmatprep.subr.bf16.mxu0 %v5825_v0  ;;  %v5684_v31 = vld [vmem:[%s7311_s1 + $0xcc] ss:$16 sps:$4 sm:$0xff]  }
 0x682   :  { %5385 = vmatprep.subr.bf16.mxu1 %v5825_v0 }
 0x684   :  { %5366 = vmatpush3.bf16.msra.mxu0 %v5673_v32 }
 0x685   :  { %5386 = vmatpush3.bf16.msra.mxu1 %v5674_v33  ;;  %5367 = vmatprep.subr.bf16.mxu0 %v5825_v0 }
 0x686   :  { %5387 = vmatprep.subr.bf16.mxu1 %v5825_v0 }
 0x688   :  { %5368 = vmatpush3.bf16.msra.mxu0 %v5675_v61 }
 0x689   :  { %5388 = vmatpush3.bf16.msra.mxu1 %v5676_v35  ;;  %5369 = vmatprep.subr.bf16.mxu0 %v5825_v0 }
 0x68a   :  { %5389 = vmatprep.subr.bf16.mxu1 %v5825_v0 }
 0x68c   :  { %5370 = vmatpush3.bf16.msra.mxu0 %v5677_v36 }
 0x68d   :  { %5390 = vmatpush3.bf16.msra.mxu1 %v5678_v37  ;;  %5371 = vmatprep.subr.bf16.mxu0 %v5825_v0 }
 0x68e   :  { %5391 = vmatprep.subr.bf16.mxu1 %v5825_v0 }
 0x690   :  { %5372 = vmatpush3.bf16.msra.mxu0 %v5679_v38 }
 0x691   :  { %5392 = vmatpush3.bf16.msra.mxu1 %v5680_v39  ;;  %5397 = vmatprep.subr.bf16.mxu0 %v5825_v0  ;;  %v5685_v39 = vld [vmem:[%s7311_s1 + $0xa8] ss:$16 sps:$4 sm:$0xff]  }
 0x692   :  { %5417 = vmatprep.subr.bf16.mxu1 %v5825_v0 }
 0x712   :  { %v3220_v41 = vpop.f32.mrf.mxu0 }
 0x713   :  { %v3332_v42 = vpop.f32.mrf.mxu1  ;;  %v3221_v50 = vadd.f32 %v3220_v41, %v3137_v44  ;;  %v5689_v44 = vld [vmem:[%s7311_s1 + $0x68] ss:$16 sps:$4 sm:$0xff]  }
 0x714   :  { %v5295_v45 = vpop.f32.mrf.mxu0  ;;  %v3333_v49 = vadd.f32 %v3332_v42, %v3249_v43  ;;  %v5687_v42 = vld [vmem:[%s7311_s1 + $0x88] ss:$16 sps:$4 sm:$0xff]   ;;  %v5688_v43 = vld [vmem:[%s7311_s1 + $0x8c] ss:$16 sps:$4 sm:$0xff]  }
 0x715   :  { %v5315_v46 = vpop.f32.mrf.mxu1  ;;  %v4432_v55 = vmul.f32 -1.442695, %v3221_v50  ;;  %v5690_v45 = vld [vmem:[%s7311_s1 + $0x6c] ss:$16 sps:$4 sm:$0xff]   ;;  %v5695_v50 = vld [vmem:[%s7311_s1 + $0x8] ss:$16 sps:$4 sm:$0xff]  }
 0x716   :  { %v3223_v47 = vpop.f32.mrf.mxu0  ;;  %v4442_v54 = vmul.f32 -1.442695, %v3333_v49  ;;  %v5691_v46 = vld [vmem:[%s7311_s1 + $0x48] ss:$16 sps:$4 sm:$0xff]   ;;  %v5694_v49 = vld [vmem:[%s7311_s1 + $0x2c] ss:$16 sps:$4 sm:$0xff]  }
 0x717   :  { %v3335_v48 = vpop.f32.mrf.mxu1  ;;  %v5692_v47 = vld [vmem:[%s7311_s1 + $0x4c] ss:$16 sps:$4 sm:$0xff]  }
 0x718   :  { %v5296_v52 = vpop.f32.mrf.mxu0  ;;  %5793 = vpow2.f32 %v4442_v54  ;;  %v5693_v48 = vld [vmem:[%s7311_s1 + $0x28] ss:$16 sps:$4 sm:$0xff]  }
 0x719   :  { %v5316_v53 = vpop.f32.mrf.mxu1  ;;  %5795 = vpow2.f32 %v4432_v55  ;;  %v5696_v52 = vld [vmem:[%s7311_s1 + $0xc] ss:$16 sps:$4 sm:$0xff]  }
 0x71a   :  { %v4466_v53 = vld [vmem:[%s7312_s0 + $0x70] sm:$0xff]  }
 0x71b   :  { %v3653_v58 = vunpack.c.l.bf16 %v4466_v53 }
 0x725   :  { %v5794_v57 = vpop.eup %5793 }
 0x726   :  { %v5796_v21 = vpop.eup %5795  ;;  %v3341_v59 = vadd.f32 1.0, %v5794_v57  ;;  %v3765_v57 = vunpack.c.h.bf16 %v4466_v53 }
 0x727   :  { %v3229_v63 = vadd.f32 1.0, %v5796_v21 }
 0x728   :  { %5797 = vrcp.f32 %v3341_v59 }
 0x729   :  { %5799 = vrcp.f32 %v3229_v63 }
 0x732   :  { %v3444_v27 = vpop.f32.mrf.mxu0 }
 0x733   :  { %v3551_v1 = vpop.f32.mrf.mxu1  ;;  %v3445_v2 = vadd.f32 %v3444_v27, %v3361_v60 }
 0x734   :  { %v3552_v3 = vadd.f32 %v3551_v1, %v3468_v62  ;;  %v5335_v4 = vpop.f32.mrf.mxu0 }
 0x735   :  { %v5355_v26 = vpop.f32.mrf.mxu1  ;;  %5801 = vtanh.f32 %v3445_v2  ;;  %v5798_v10 = vpop.eup %5797 }
 0x736   :  { %v4461_v5 = vmul.f32 -1.442695, %v3552_v3  ;;  %v3447_v6 = vpop.f32.mrf.mxu0  ;;  %v5800_v11 = vpop.eup %5799  ;;  %v3563_v13 = vmul.f32 %v5798_v10, %v6978_v51  ;;  %v4486_v26 = vld [vmem:[%s7312_s0 + $0x78] sm:$0xf] }
 0x737   :  { %v3554_v7 = vpop.f32.mrf.mxu1 }
 0x738   :  { %5803 = vpow2.f32 %v4461_v5  ;;  %v5336_v8 = vpop.f32.mrf.mxu0  ;;  %v4495_v5 = vld [vmem:[%s7312_s0 + $0x7c] sm:$0xf] }
 0x739   :  { %v5356_v9 = vpop.f32.mrf.mxu1  ;;  %v3877_v8 = vunpack.c.l.bf16 %v4486_v26 }
 0x73a   :  { %v3984_v9 = vunpack.c.l.bf16 %v4495_v5 }
 0x742   :  { %v5802_v12 = vpop.eup %5801 }
 0x743   :  { %v3564_v14 = vmul.f32 %v5802_v12, %v5800_v11 }
 0x745   :  { %v5804_v15 = vpop.eup %5803  ;;  %v7160_v16 = vadd.f32 %v3564_v14, %v3563_v13 }
 0x746   :  { %v3560_v17 = vadd.f32 1.0, %v5804_v15 }
 0x747   :  { %5805 = vtanh.f32 %v7160_v16 }
 0x748   :  { %5807 = vrcp.f32 %v3560_v17 }
 0x754   :  { %v5806_v18 = vpop.eup %5805 }
 0x755   :  { %v5808_v19 = vpop.eup %5807 }
 0x756   :  { %v3567_v20 = vmul.f32 %v5808_v19, %v5806_v18 }
 0x758   :  { %v3569_v51 = vcombine.high %v3567_v20, %v3567_v20  ;;  %v3576_v24 = vrot.slane %v3567_v20, %v6069_v34  ;;  %v7170_v25 = vpack.c.bf16 %v3567_v20, %v3567_v20 }
 0x75a   :  { %v3583_v28 = vrot.slane %v3569_v51, %v6069_v34  ;;  %v3584_v29 = vcombine.high %v3576_v24, %v3576_v24  ;;  %v3592_v56 = vrot.slane %v3576_v24, %v6069_v34  ;;  %4462 = vst.sshfl [vmem:[%s7313_s2 + $0x6] sm:$0x1 pattern:$0x73625140] %v3576_v24  ;;  %5374 = vmatmul.mubr.bf16.vlgmr.msra.gmra.mxu0 %v7170_v25 }
 0x75b   :  { %5394 = vmatmul.mubr.bf16.vlgmr.msra.gmra.mxu1 %v7170_v25  ;;  %5398 = vmatpush3.bf16.msra.mxu0 %v5681_v22 }
 0x75c   :  { %5418 = vmatpush3.bf16.msra.mxu1 %v5682_v23  ;;  %v3585_v32 = vcombine.high %v3583_v28, %v3583_v28  ;;  %v3599_v33 = vrot.slane %v3583_v28, %v6069_v34  ;;  %v3606_v61 = vrot.slane %v3584_v29, %v6069_v34  ;;  %v3614_v35 = vcombine.high %v3592_v56, %v3592_v56 }
 0x75d   :  { %4463 = vst.sshfl [vmem:[%s7313_s2 + $0xe] sm:$0x1 pattern:$0x73625140] %v3584_v29  ;;  %5399 = vmatprep.subr.bf16.mxu0 %v5825_v0  ;;  %5419 = vmatprep.subr.bf16.mxu1 %v5825_v0 }
 0x75e   :  { %4464 = vst.sshfl [vmem:[%s7313_s2 + $0x26] sm:$0x1 pattern:$0x73625140] %v3583_v28  ;;  %5413 = vmatprep.mubr.msk.bf16.mxu0 %vm5826_vm0, %v5825_v0  ;;  %v3613_v36 = vrot.slane %v3585_v32, %v6069_v34  ;;  %v3615_v37 = vcombine.high %v3599_v33, %v3599_v33  ;;  %v3616_v38 = vcombine.high %v3606_v61, %v3606_v61  ;;  %3628 = vst [vmem:[%s7313_s2 + $0x16] sm:$0x1] %v3614_v35 }
 0x75f   :  { %4465 = vst.sshfl [vmem:[%s7313_s2 + $0x2e] sm:$0x1 pattern:$0x73625140] %v3585_v32  ;;  %5433 = vmatprep.mubr.msk.bf16.mxu1 %vm5826_vm0, %v5825_v0  ;;  %5400 = vmatpush3.bf16.msra.mxu0 %v5683_v30 }
 0x760   :  { %5420 = vmatpush3.bf16.msra.mxu1 %v5684_v31  ;;  %v3617_v41 = vcombine.high %v3613_v36, %v3613_v36  ;;  %3629 = vst [vmem:[%s7313_s2 + $0x1e] sm:$0x1] %v3616_v38  ;;  %3632 = vst [vmem:[%s7313_s2 + $0x36] sm:$0x1] %v3615_v37  ;;  %5401 = vmatprep.subr.bf16.mxu0 %v5825_v0 }
 0x761   :  { %5421 = vmatprep.subr.bf16.mxu1 %v5825_v0 }
 0x762   :  { %3633 = vst [vmem:[%s7313_s2 + $0x3e] sm:$0x1] %v3617_v41 }
 0x763   :  { %5402 = vmatpush3.bf16.msra.mxu0 %v5685_v39 }
 0x764   :  { %5422 = vmatpush3.bf16.msra.mxu1 %v5686_v40  ;;  %5403 = vmatprep.subr.bf16.mxu0 %v5825_v0 }
 0x765   :  { %5423 = vmatprep.subr.bf16.mxu1 %v5825_v0 }
 0x767   :  { %5404 = vmatpush3.bf16.msra.mxu0 %v5687_v42 }
 0x768   :  { %5424 = vmatpush3.bf16.msra.mxu1 %v5688_v43  ;;  %5405 = vmatprep.subr.bf16.mxu0 %v5825_v0 }
 0x769   :  { %5425 = vmatprep.subr.bf16.mxu1 %v5825_v0 }
 0x76b   :  { %5406 = vmatpush3.bf16.msra.mxu0 %v5689_v44 }
 0x76c   :  { %5426 = vmatpush3.bf16.msra.mxu1 %v5690_v45  ;;  %5407 = vmatprep.subr.bf16.mxu0 %v5825_v0 }
 0x76d   :  { %5427 = vmatprep.subr.bf16.mxu1 %v5825_v0 }
 0x76f   :  { %5408 = vmatpush3.bf16.msra.mxu0 %v5691_v46 }
 0x770   :  { %5428 = vmatpush3.bf16.msra.mxu1 %v5692_v47  ;;  %5409 = vmatprep.subr.bf16.mxu0 %v5825_v0 }
 0x771   :  { %5429 = vmatprep.subr.bf16.mxu1 %v5825_v0 }
 0x773   :  { %5410 = vmatpush3.bf16.msra.mxu0 %v5693_v48 }
 0x774   :  { %5430 = vmatpush3.bf16.msra.mxu1 %v5694_v49  ;;  %5411 = vmatprep.subr.bf16.mxu0 %v5825_v0 }
 0x775   :  { %5431 = vmatprep.subr.bf16.mxu1 %v5825_v0 }
 0x777   :  { %5412 = vmatpush3.bf16.msra.mxu0 %v5695_v50 }
 0x778   :  { %5432 = vmatpush3.bf16.msra.mxu1 %v5696_v52 }
 0x77a   :  { %5414 = vmatmul.mubr.bf16.vlgmr.msra.gmra.mxu0 %v7170_v25 }
 0x77b   :  { %5434 = vmatmul.mubr.bf16.vlgmr.msra.gmra.mxu1 %v7170_v25 }
 0x81a   :  { %v3736_v54 = vpop.f32.mrf.mxu0 }
 0x81b   :  { %v3848_v55 = vpop.f32.mrf.mxu1  ;;  %v3737_v0 = vadd.f32 %v3736_v54, %v3653_v58 }
 0x81c   :  { %v5375_v21 = vpop.f32.mrf.mxu0  ;;  %v3849_v63 = vadd.f32 %v3848_v55, %v3765_v57 }
 0x81d   :  { %v5395_v59 = vpop.f32.mrf.mxu1  ;;  %v4475_v3 = vmul.f32 -1.442695, %v3737_v0 }
 0x81e   :  { %v3739_v60 = vpop.f32.mrf.mxu0  ;;  %v4485_v2 = vmul.f32 -1.442695, %v3849_v63 }
 0x81f   :  { %v3851_v62 = vpop.f32.mrf.mxu1 }
 0x820   :  { %v5376_v27 = vpop.f32.mrf.mxu0  ;;  %5809 = vpow2.f32 %v4485_v2 }
 0x821   :  { %v5396_v1 = vpop.f32.mrf.mxu1  ;;  %5811 = vpow2.f32 %v4475_v3 }
 0x82d   :  { %v5810_v4 = vpop.eup %5809 }
 0x82e   :  { %v5812_v6 = vpop.eup %5811  ;;  %v3857_v7 = vadd.f32 1.0, %v5810_v4 }
 0x82f   :  { %v3745_v10 = vadd.f32 1.0, %v5812_v6 }
 0x830   :  { %5813 = vrcp.f32 %v3857_v7 }
 0x831   :  { %5815 = vrcp.f32 %v3745_v10 }
 0x83a   :  { %v3960_v11 = vpop.f32.mrf.mxu0 }
 0x83b   :  { %v4067_v12 = vpop.f32.mrf.mxu1  ;;  %v3961_v13 = vadd.f32 %v3960_v11, %v3877_v8 }
 0x83c   :  { %v4068_v14 = vadd.f32 %v4067_v12, %v3984_v9  ;;  %v5415_v15 = vpop.f32.mrf.mxu0 }
 0x83d   :  { %v5435_v17 = vpop.f32.mrf.mxu1  ;;  %5817 = vtanh.f32 %v3961_v13  ;;  %v5814_v51 = vpop.eup %5813 }
 0x83e   :  { %v4504_v18 = vmul.f32 -1.442695, %v4068_v14  ;;  %v3963_v19 = vpop.f32.mrf.mxu0  ;;  %v5816_v24 = vpop.eup %5815  ;;  %v4079_v28 = vmul.f32 %v5814_v51, %v7160_v16 }
 0x83f   :  { %v4070_v20 = vpop.f32.mrf.mxu1 }
 0x840   :  { %5819 = vpow2.f32 %v4504_v18  ;;  %v5416_v22 = vpop.f32.mrf.mxu0 }
 0x841   :  { %v5436_v23 = vpop.f32.mrf.mxu1 }
 0x84a   :  { %v5818_v25 = vpop.eup %5817 }
 0x84b   :  { %v4080_v29 = vmul.f32 %v5818_v25, %v5816_v24 }
 0x84d   :  { %v5820_v56 = vpop.eup %5819  ;;  %v4081_v30 = vadd.f32 %v4080_v29, %v4079_v28 }
 0x84e   :  { %v4076_v31 = vadd.f32 1.0, %v5820_v56 }
 0x84f   :  { %5821 = vtanh.f32 %v4081_v30  ;;  %4156 = vst [vmem:[%s7314_s4] sm:$0xff] %v4081_v30 }
 0x850   :  { %5823 = vrcp.f32 %v4076_v31 }
 0x85c   :  { %v5822_v32 = vpop.eup %5821 }
 0x85d   :  { %v5824_v33 = vpop.eup %5823 }
 0x85e   :  { %v4083_v61 = vmul.f32 %v5824_v33, %v5822_v32 }
 0x860   :  { %v4085_v35 = vcombine.high %v4083_v61, %v4083_v61  ;;  %v4092_v36 = vrot.slane %v4083_v61, %v6069_v34  ;;  %4155 = vst [vmem:[%s7315_s3] sm:$0xff] %v4083_v61 }
 0x862   :  { %v4099_v16 = vrot.slane %v4085_v35, %v6069_v34  ;;  %v4100_v37 = vcombine.high %v4092_v36, %v4092_v36  ;;  %v4108_v38 = vrot.slane %v4092_v36, %v6069_v34  ;;  %4505 = vst.sshfl [vmem:[%s7313_s2 + $0x7] sm:$0x1 pattern:$0x73625140] %v4092_v36 }
 0x864   :  { %v4101_v39 = vcombine.high %v4099_v16, %v4099_v16  ;;  %v4115_v40 = vrot.slane %v4099_v16, %v6069_v34  ;;  %v4122_v41 = vrot.slane %v4100_v37, %v6069_v34  ;;  %v4130_v42 = vcombine.high %v4108_v38, %v4108_v38  ;;  %4506 = vst.sshfl [vmem:[%s7313_s2 + $0xf] sm:$0x1 pattern:$0x73625140] %v4100_v37 }
 0x865   :  { %4507 = vst.sshfl [vmem:[%s7313_s2 + $0x27] sm:$0x1 pattern:$0x73625140] %v4099_v16 }
 0x866   :  { %v4129_v43 = vrot.slane %v4101_v39, %v6069_v34  ;;  %v4131_v44 = vcombine.high %v4115_v40, %v4115_v40  ;;  %v4132_v45 = vcombine.high %v4122_v41, %v4122_v41  ;;  %4144 = vst [vmem:[%s7313_s2 + $0x17] sm:$0x1] %v4130_v42  ;;  %4508 = vst.sshfl [vmem:[%s7313_s2 + $0x2f] sm:$0x1 pattern:$0x73625140] %v4101_v39 }
 0x868   :  { %v4133_v46 = vcombine.high %v4129_v43, %v4129_v43  ;;  %4145 = vst [vmem:[%s7313_s2 + $0x1f] sm:$0x1] %v4132_v45  ;;  %4148 = vst [vmem:[%s7313_s2 + $0x37] sm:$0x1] %v4131_v44 }
 0x86a   :  { %4149 = vst [vmem:[%s7313_s2 + $0x3f] sm:$0x1] %v4133_v46 }

</bundles_post_ra>
